<compile_context>
chip_gen: v6e
topology: v6e:2x2x1
jax: 0.10.0
libtpu: 0.0.40
codegen_flags: <defaults>
</compile_context>

<pallas_src>
import jax
import jax.numpy as jnp
from jax.experimental import pallas as pl
from jax.experimental.pallas import tpu as pltpu

QP = 256                 # flattened zero-padded 16x16 spatial grid (14x14 + pad 1)
HALO = 17                # lane halo: 3x3 tap offsets (kh-1)*16+(kw-1) lie in [-17, 17]
WEXT = QP + 2 * HALO     # 290


# ---------------------------------------------------------------------------
# Fused Pallas kernel: conv1 -> conv2 -> {path MLP} -> fc1 -> {softmax head, critic}
# ---------------------------------------------------------------------------
def _qnet_kernel(x_ref, y_ref, mask_ref,
                 w1_ref, b1_ref, w2_ref, b2_ref,
                 wp1_ref, bp1_ref, wp2_ref, bp2_ref,
                 wf1_img_ref, wf1_path_ref, bf1_ref,
                 whead_ref, bhead_ref,
                 out_ref, critic_ref,
                 a1_ext_ref):
    f32 = jnp.float32
    cdt = wf1_img_ref.dtype                    # bf16 compute dtype for big matmuls
    B = y_ref.shape[0]

    mask = mask_ref[...]                       # (1, QP): 1 on 14x14 interior, else 0

    # -------- conv1 (3x3, pad=1) + ReLU: 9 shifted-tap matmuls ------------------
    acc1 = jnp.zeros((b1_ref.shape[0], QP), f32)            # (16*B, 256)
    for k in range(9):
        kh, kw = k // 3, k % 3
        off = HALO + (kh - 1) * 16 + (kw - 1)
        tap = x_ref[:, off:off + QP]                        # (2*B, 256) static slice
        acc1 = acc1 + jnp.dot(w1_ref[k], tap, preferred_element_type=f32)
    a1 = jnp.maximum(acc1 + b1_ref[...], 0.0) * mask        # zero at grid padding

    # stage conv1 activations into a zero-haloed VMEM buffer for conv2's taps
    a1_ext_ref[...] = jnp.zeros(a1_ext_ref.shape, f32)
    a1_ext_ref[:, HALO:HALO + QP] = a1

    # -------- conv2 (3x3, pad=1) + ReLU -----------------------------------------
    acc2 = jnp.zeros((b2_ref.shape[0], QP), f32)            # (32*B, 256)
    for k in range(9):
        kh, kw = k // 3, k % 3
        off = HALO + (kh - 1) * 16 + (kw - 1)
        tap = a1_ext_ref[:, off:off + QP]                   # (16*B, 256)
        acc2 = acc2 + jnp.dot(w2_ref[k], tap, preferred_element_type=f32)
    # padding columns need no masking: fc1's image weight is zero on those rows.
    a2 = jnp.maximum(acc2 + b2_ref[...], 0.0).astype(cdt)   # (32*B, 256)

    # -------- fc1, image part: 32 per-channel matmuls into one f32 accumulator ---
    z = jnp.zeros((B, 128), f32)
    for c in range(wf1_img_ref.shape[0]):                   # 32 channels
        a2_c = a2[c * B:(c + 1) * B, :]                     # (B, 256) batch rows
        z = z + jnp.dot(a2_c, wf1_img_ref[c], preferred_element_type=f32)

    # -------- path branch: path_fc1 -> ReLU -> path_fc2 -> ReLU ------------------
    y = y_ref[...].astype(cdt)                              # (B, 128)
    h1 = jnp.maximum(
        jnp.dot(y, wp1_ref[...], preferred_element_type=f32) + bp1_ref[...], 0.0)
    h2 = jnp.maximum(
        jnp.dot(h1.astype(cdt), wp2_ref[...], preferred_element_type=f32)
        + bp2_ref[...], 0.0)                                # (B, 32)

    # -------- fc1: add path part + bias, ReLU ------------------------------------
    z = z + jnp.dot(h2.astype(cdt), wf1_path_ref[...], preferred_element_type=f32)
    z = jnp.maximum(z + bf1_ref[...], 0.0)                  # (B, 128)

    # -------- fused heads: [fc2 | fc_v] in one (128, 4) matmul -------------------
    logits = (jnp.dot(z.astype(cdt), whead_ref[...], preferred_element_type=f32)
              + bhead_ref[...])                             # (B, 4)
    lg = logits[:, 0:3]
    m = jnp.max(lg, axis=-1, keepdims=True)
    e = jnp.exp(lg - m)
    out_ref[...] = (e / jnp.sum(e, axis=-1, keepdims=True)).astype(out_ref.dtype)
    critic_ref[...] = logits[:, 3:4].astype(critic_ref.dtype)


# ---------------------------------------------------------------------------
# Parameter init (PyTorch-style layout + uniform fan-in bounds)
# ---------------------------------------------------------------------------
def init_params(key):
    def uniform(k, shape, fan_in):
        bound = 1.0 / jnp.sqrt(jnp.float32(fan_in))
        return jax.random.uniform(k, shape, jnp.float32, -bound, bound)

    ks = jax.random.split(key, 14)
    p = {}
    p["conv1_w"] = uniform(ks[0], (16, 2, 3, 3), 2 * 9)
    p["conv1_b"] = uniform(ks[1], (16,), 2 * 9)
    p["conv2_w"] = uniform(ks[2], (32, 16, 3, 3), 16 * 9)
    p["conv2_b"] = uniform(ks[3], (32,), 16 * 9)
    p["path_fc1_w"] = uniform(ks[4], (128, 128), 128)          # stored (in, out)
    p["path_fc1_b"] = uniform(ks[5], (128,), 128)
    p["path_fc2_w"] = uniform(ks[6], (128, 32), 128)
    p["path_fc2_b"] = uniform(ks[7], (32,), 128)
    p["fc1_w"] = uniform(ks[8], (32 * 14 * 14 + 32, 128), 32 * 14 * 14 + 32)
    p["fc1_b"] = uniform(ks[9], (128,), 32 * 14 * 14 + 32)
    p["fc2_w"] = uniform(ks[10], (128, 3), 128)
    p["fc2_b"] = uniform(ks[11], (3,), 128)
    p["fc_v_w"] = uniform(ks[12], (128, 1), 128)
    p["fc_v_b"] = uniform(ks[13], (1,), 128)
    return p


# ---------------------------------------------------------------------------
# One-time parameter preparation for the fused kernel (layout + dtype transforms)
# ---------------------------------------------------------------------------
def prepare_params(p, batch_size, compute_dtype=jnp.bfloat16):
    B = batch_size
    f32 = jnp.float32
    eye = jnp.eye(B, dtype=f32)

    def block_diag_conv(w_oikk):
        # (O, C, 3, 3) -> (9, O*B, C*B): rows/cols ordered (chan*B + batch), so one
        # 2-D matmul per 3x3 tap handles all batch elements without mixing them.
        O, C, _, _ = w_oikk.shape
        wk = w_oikk.transpose(2, 3, 0, 1).reshape(9, O, C).astype(f32)
        return jnp.einsum("koc,bd->kobcd", wk, eye).reshape(9, O * B, C * B)

    kp = {}
    kp["w1_bd"] = block_diag_conv(p["conv1_w"])                 # (9, 16B, 2B) f32
    kp["b1_bd"] = jnp.repeat(p["conv1_b"].astype(f32), B)[:, None]
    kp["w2_bd"] = block_diag_conv(p["conv2_w"])                 # (9, 32B, 16B) f32
    kp["b2_bd"] = jnp.repeat(p["conv2_b"].astype(f32), B)[:, None]

    r = jnp.arange(16)
    inside = ((r >= 1) & (r <= 14)).astype(f32)
    kp["mask"] = (inside[:, None] * inside[None, :]).reshape(1, QP)   # (1, 256)

    kp["wp1"] = p["path_fc1_w"].astype(compute_dtype)           # (128, 128)
    kp["bp1"] = p["path_fc1_b"].astype(f32)[None, :]            # (1, 128)
    kp["wp2"] = p["path_fc2_w"].astype(compute_dtype)           # (128, 32)
    kp["bp2"] = p["path_fc2_b"].astype(f32)[None, :]            # (1, 32)

    # fc1: split image rows (6272 in (c,h,w) order) from path rows (32); scatter the
    # image rows onto the zero-padded 16x16 grid so the kernel consumes the conv
    # activations directly in their padded layout (zero rows at padding positions).
    w_img = p["fc1_w"][: 32 * 14 * 14].reshape(32, 14, 14, 128)
    w_img_pad = jnp.zeros((32, 16, 16, 128), p["fc1_w"].dtype)
    w_img_pad = w_img_pad.at[:, 1:15, 1:15, :].set(w_img)
    kp["wf1_img"] = w_img_pad.reshape(32, QP, 128).astype(compute_dtype)   # (32,256,128)
    kp["wf1_path"] = p["fc1_w"][32 * 14 * 14:].astype(compute_dtype)       # (32, 128)
    kp["bf1"] = p["fc1_b"].astype(f32)[None, :]                            # (1, 128)

    kp["whead"] = jnp.concatenate([p["fc2_w"], p["fc_v_w"]], axis=1).astype(compute_dtype)
    kp["bhead"] = jnp.concatenate([p["fc2_b"], p["fc_v_b"]])[None, :].astype(f32)
    return kp


# ---------------------------------------------------------------------------
# Qnet.forward (single fused pallas_call)
# ---------------------------------------------------------------------------
def qnet_forward(kparams, x, y):
    """x: (B, 2, 14, 14) NCHW, y: (B, 128) -> (softmax probs (B,3), critic (B,1))."""
    B, C0, H, W = x.shape
    assert (C0, H, W) == (2, 14, 14), "Qnet is pinned to 2x14x14 inputs by fc1"
    assert kparams["b1_bd"].shape[0] == 16 * B, "params prepared for a different batch"

    # zero-pad spatially (conv pad=1), channel-major rows (c*B + b), flatten the 16x16
    # grid onto lanes, and add the 17-lane halo used by the in-kernel 3x3 taps.
    xpad = jnp.pad(x.astype(jnp.float32), ((0, 0), (0, 0), (1, 1), (1, 1)))
    a0 = xpad.transpose(1, 0, 2, 3).reshape(C0 * B, QP)
    a0 = jnp.pad(a0, ((0, 0), (HALO, HALO)))                                 # (2B, 290)

    args = (a0, y.astype(jnp.float32), kparams["mask"],
            kparams["w1_bd"], kparams["b1_bd"], kparams["w2_bd"], kparams["b2_bd"],
            kparams["wp1"], kparams["bp1"], kparams["wp2"], kparams["bp2"],
            kparams["wf1_img"], kparams["wf1_path"], kparams["bf1"],
            kparams["whead"], kparams["bhead"])

    flops = (2 * QP * 9 * ((16 * B) * (2 * B) + (32 * B) * (16 * B))
             + 2 * B * (32 * QP * 128 + 128 * 128 + 128 * 32 + 32 * 128 + 128 * 4))
    bytes_accessed = sum(int(a.size) * a.dtype.itemsize for a in args) + B * 4 * 4

    out, critic = pl.pallas_call(
        _qnet_kernel,
        out_shape=(jax.ShapeDtypeStruct((B, 3), jnp.float32),
                   jax.ShapeDtypeStruct((B, 1), jnp.float32)),
        in_specs=[pl.BlockSpec(memory_space=pltpu.MemorySpace.VMEM) for _ in args],
        out_specs=(pl.BlockSpec(memory_space=pltpu.MemorySpace.VMEM),
                   pl.BlockSpec(memory_space=pltpu.MemorySpace.VMEM)),
        scratch_shapes=[pltpu.VMEM((16 * B, WEXT), jnp.float32)],
        cost_estimate=pl.CostEstimate(flops=flops, transcendentals=3 * B,
                                      bytes_accessed=bytes_accessed),
    )(*args)
    return out, critic


# ---------------------------------------------------------------------------
# Pure-JAX reference (mirrors the PyTorch module, f32) for a correctness check
# ---------------------------------------------------------------------------
def qnet_reference(p, x, y):
    dn = ("NCHW", "OIHW", "NCHW")
    h = jax.lax.conv_general_dilated(x, p["conv1_w"], (1, 1), ((1, 1), (1, 1)),
                                     dimension_numbers=dn)
    h = jax.nn.relu(h + p["conv1_b"][None, :, None, None])
    h = jax.lax.conv_general_dilated(h, p["conv2_w"], (1, 1), ((1, 1), (1, 1)),
                                     dimension_numbers=dn)
    h = jax.nn.relu(h + p["conv2_b"][None, :, None, None])
    h = h.reshape(h.shape[0], -1)
    yp = jax.nn.relu(y @ p["path_fc1_w"] + p["path_fc1_b"])
    yp = jax.nn.relu(yp @ p["path_fc2_w"] + p["path_fc2_b"])
    z = jnp.concatenate([h, yp], axis=1)
    z = jax.nn.relu(z @ p["fc1_w"] + p["fc1_b"])
    out = jax.nn.softmax(z @ p["fc2_w"] + p["fc2_b"], axis=1)
    critic = z @ p["fc_v_w"] + p["fc_v_b"]
    return out, critic


if __name__ == "__main__":
    key = jax.random.PRNGKey(0)
    kx, ky, kp_key = jax.random.split(key, 3)
    # Spatial size is pinned to 14x14 by fc1 = Linear(32*14*14 + 32, 128).
    x = jax.random.normal(kx, (2, 2, 14, 14), jnp.float32)      # NCHW, like PyTorch
    y = jax.random.normal(ky, (2, 128), jnp.float32)

    params = init_params(kp_key)
    kparams = prepare_params(params, batch_size=2)              # one-time transform

    fwd = jax.jit(qnet_forward)
    out, critic = fwd(kparams, x, y)
    out, critic = jax.block_until_ready((out, critic))

    assert out.shape == (2, 3) and critic.shape == (2, 1)
    assert bool(jnp.all(jnp.isfinite(out))) and bool(jnp.all(jnp.isfinite(critic)))
    assert bool(jnp.allclose(jnp.sum(out, axis=1), 1.0, atol=1e-4))

    out_ref, critic_ref = qnet_reference(params, x, y)
    assert bool(jnp.allclose(out, out_ref, atol=2e-2)), "softmax head mismatch"
    assert bool(jnp.allclose(critic, critic_ref, atol=2e-2)), "critic head mismatch"

    print("KERNEL_OK")
</pallas_src>

<mosaic_0001>
module attributes {stable_mosaic.version = 11 : i64} {
  func.func @_qnet_kernel(%arg0: memref<4x290xf32, #tpu.memory_space<vmem>>, %arg1: memref<2x128xf32, #tpu.memory_space<vmem>>, %arg2: memref<1x256xf32, #tpu.memory_space<vmem>>, %arg3: memref<9x32x4xf32, #tpu.memory_space<vmem>>, %arg4: memref<32x1xf32, #tpu.memory_space<vmem>>, %arg5: memref<9x64x32xf32, #tpu.memory_space<vmem>>, %arg6: memref<64x1xf32, #tpu.memory_space<vmem>>, %arg7: memref<128x128xbf16, #tpu.memory_space<vmem>>, %arg8: memref<1x128xf32, #tpu.memory_space<vmem>>, %arg9: memref<128x32xbf16, #tpu.memory_space<vmem>>, %arg10: memref<1x32xf32, #tpu.memory_space<vmem>>, %arg11: memref<32x256x128xbf16, #tpu.memory_space<vmem>>, %arg12: memref<32x128xbf16, #tpu.memory_space<vmem>>, %arg13: memref<1x128xf32, #tpu.memory_space<vmem>>, %arg14: memref<128x4xbf16, #tpu.memory_space<vmem>>, %arg15: memref<1x4xf32, #tpu.memory_space<vmem>>, %arg16: memref<2x3xf32, #tpu.memory_space<vmem>>, %arg17: memref<2x1xf32, #tpu.memory_space<vmem>>, %arg18: memref<32x290xf32, #tpu.memory_space<vmem>>) attributes {dimension_semantics = [], scalar_prefetch = 0 : i64, scratch_operands = 1 : i64, tpu.core_type = #tpu.core_type<tc>} {
    %c0 = arith.constant 0 : index
    %c0_0 = arith.constant 0 : index
    %0 = vector.load %arg2[%c0, %c0_0] : memref<1x256xf32, #tpu.memory_space<vmem>>, vector<1x256xf32>
    %cst = arith.constant 0.000000e+00 : f32
    %1 = vector.broadcast %cst : f32 to vector<32x256xf32>
    %c0_1 = arith.constant 0 : index
    %c0_2 = arith.constant 0 : index
    %2 = vector.load %arg0[%c0_1, %c0_2] : memref<4x290xf32, #tpu.memory_space<vmem>>, vector<4x256xf32>
    %c0_3 = arith.constant 0 : index
    %c0_4 = arith.constant 0 : index
    %c0_5 = arith.constant 0 : index
    %3 = vector.load %arg3[%c0_3, %c0_4, %c0_5] : memref<9x32x4xf32, #tpu.memory_space<vmem>>, vector<1x32x4xf32>
    %4 = vector.shape_cast %3 : vector<1x32x4xf32> to vector<32x4xf32>
    %cst_6 = arith.constant dense<0.000000e+00> : vector<32x256xf32>
    %5 = tpu.matmul %4, %2, %cst_6 {dimension_numbers = #tpu.dot_dimension_numbers<[1], [0], [0], [1], [0, 0, 1, 1], [], []>} : vector<32x4xf32>, vector<4x256xf32>, vector<32x256xf32> -> vector<32x256xf32>
    %6 = arith.addf %1, %5 : vector<32x256xf32>
    %c0_7 = arith.constant 0 : index
    %c1 = arith.constant 1 : index
    %7 = vector.load %arg0[%c0_7, %c1] : memref<4x290xf32, #tpu.memory_space<vmem>>, vector<4x256xf32>
    %c1_8 = arith.constant 1 : index
    %c0_9 = arith.constant 0 : index
    %c0_10 = arith.constant 0 : index
    %8 = vector.load %arg3[%c1_8, %c0_9, %c0_10] : memref<9x32x4xf32, #tpu.memory_space<vmem>>, vector<1x32x4xf32>
    %9 = vector.shape_cast %8 : vector<1x32x4xf32> to vector<32x4xf32>
    %cst_11 = arith.constant dense<0.000000e+00> : vector<32x256xf32>
    %10 = tpu.matmul %9, %7, %cst_11 {dimension_numbers = #tpu.dot_dimension_numbers<[1], [0], [0], [1], [0, 0, 1, 1], [], []>} : vector<32x4xf32>, vector<4x256xf32>, vector<32x256xf32> -> vector<32x256xf32>
    %11 = arith.addf %6, %10 : vector<32x256xf32>
    %c0_12 = arith.constant 0 : index
    %c2 = arith.constant 2 : index
    %12 = vector.load %arg0[%c0_12, %c2] : memref<4x290xf32, #tpu.memory_space<vmem>>, vector<4x256xf32>
    %c2_13 = arith.constant 2 : index
    %c0_14 = arith.constant 0 : index
    %c0_15 = arith.constant 0 : index
    %13 = vector.load %arg3[%c2_13, %c0_14, %c0_15] : memref<9x32x4xf32, #tpu.memory_space<vmem>>, vector<1x32x4xf32>
    %14 = vector.shape_cast %13 : vector<1x32x4xf32> to vector<32x4xf32>
    %cst_16 = arith.constant dense<0.000000e+00> : vector<32x256xf32>
    %15 = tpu.matmul %14, %12, %cst_16 {dimension_numbers = #tpu.dot_dimension_numbers<[1], [0], [0], [1], [0, 0, 1, 1], [], []>} : vector<32x4xf32>, vector<4x256xf32>, vector<32x256xf32> -> vector<32x256xf32>
    %16 = arith.addf %11, %15 : vector<32x256xf32>
    %c0_17 = arith.constant 0 : index
    %c16 = arith.constant 16 : index
    %17 = vector.load %arg0[%c0_17, %c16] : memref<4x290xf32, #tpu.memory_space<vmem>>, vector<4x256xf32>
    %c3 = arith.constant 3 : index
    %c0_18 = arith.constant 0 : index
    %c0_19 = arith.constant 0 : index
    %18 = vector.load %arg3[%c3, %c0_18, %c0_19] : memref<9x32x4xf32, #tpu.memory_space<vmem>>, vector<1x32x4xf32>
    %19 = vector.shape_cast %18 : vector<1x32x4xf32> to vector<32x4xf32>
    %cst_20 = arith.constant dense<0.000000e+00> : vector<32x256xf32>
    %20 = tpu.matmul %19, %17, %cst_20 {dimension_numbers = #tpu.dot_dimension_numbers<[1], [0], [0], [1], [0, 0, 1, 1], [], []>} : vector<32x4xf32>, vector<4x256xf32>, vector<32x256xf32> -> vector<32x256xf32>
    %21 = arith.addf %16, %20 : vector<32x256xf32>
    %c0_21 = arith.constant 0 : index
    %c17 = arith.constant 17 : index
    %22 = vector.load %arg0[%c0_21, %c17] : memref<4x290xf32, #tpu.memory_space<vmem>>, vector<4x256xf32>
    %c4 = arith.constant 4 : index
    %c0_22 = arith.constant 0 : index
    %c0_23 = arith.constant 0 : index
    %23 = vector.load %arg3[%c4, %c0_22, %c0_23] : memref<9x32x4xf32, #tpu.memory_space<vmem>>, vector<1x32x4xf32>
    %24 = vector.shape_cast %23 : vector<1x32x4xf32> to vector<32x4xf32>
    %cst_24 = arith.constant dense<0.000000e+00> : vector<32x256xf32>
    %25 = tpu.matmul %24, %22, %cst_24 {dimension_numbers = #tpu.dot_dimension_numbers<[1], [0], [0], [1], [0, 0, 1, 1], [], []>} : vector<32x4xf32>, vector<4x256xf32>, vector<32x256xf32> -> vector<32x256xf32>
    %26 = arith.addf %21, %25 : vector<32x256xf32>
    %c0_25 = arith.constant 0 : index
    %c18 = arith.constant 18 : index
    %27 = vector.load %arg0[%c0_25, %c18] : memref<4x290xf32, #tpu.memory_space<vmem>>, vector<4x256xf32>
    %c5 = arith.constant 5 : index
    %c0_26 = arith.constant 0 : index
    %c0_27 = arith.constant 0 : index
    %28 = vector.load %arg3[%c5, %c0_26, %c0_27] : memref<9x32x4xf32, #tpu.memory_space<vmem>>, vector<1x32x4xf32>
    %29 = vector.shape_cast %28 : vector<1x32x4xf32> to vector<32x4xf32>
    %cst_28 = arith.constant dense<0.000000e+00> : vector<32x256xf32>
    %30 = tpu.matmul %29, %27, %cst_28 {dimension_numbers = #tpu.dot_dimension_numbers<[1], [0], [0], [1], [0, 0, 1, 1], [], []>} : vector<32x4xf32>, vector<4x256xf32>, vector<32x256xf32> -> vector<32x256xf32>
    %31 = arith.addf %26, %30 : vector<32x256xf32>
    %c0_29 = arith.constant 0 : index
    %c32 = arith.constant 32 : index
    %32 = vector.load %arg0[%c0_29, %c32] : memref<4x290xf32, #tpu.memory_space<vmem>>, vector<4x256xf32>
    %c6 = arith.constant 6 : index
    %c0_30 = arith.constant 0 : index
    %c0_31 = arith.constant 0 : index
    %33 = vector.load %arg3[%c6, %c0_30, %c0_31] : memref<9x32x4xf32, #tpu.memory_space<vmem>>, vector<1x32x4xf32>
    %34 = vector.shape_cast %33 : vector<1x32x4xf32> to vector<32x4xf32>
    %cst_32 = arith.constant dense<0.000000e+00> : vector<32x256xf32>
    %35 = tpu.matmul %34, %32, %cst_32 {dimension_numbers = #tpu.dot_dimension_numbers<[1], [0], [0], [1], [0, 0, 1, 1], [], []>} : vector<32x4xf32>, vector<4x256xf32>, vector<32x256xf32> -> vector<32x256xf32>
    %36 = arith.addf %31, %35 : vector<32x256xf32>
    %c0_33 = arith.constant 0 : index
    %c33 = arith.constant 33 : index
    %37 = vector.load %arg0[%c0_33, %c33] : memref<4x290xf32, #tpu.memory_space<vmem>>, vector<4x256xf32>
    %c7 = arith.constant 7 : index
    %c0_34 = arith.constant 0 : index
    %c0_35 = arith.constant 0 : index
    %38 = vector.load %arg3[%c7, %c0_34, %c0_35] : memref<9x32x4xf32, #tpu.memory_space<vmem>>, vector<1x32x4xf32>
    %39 = vector.shape_cast %38 : vector<1x32x4xf32> to vector<32x4xf32>
    %cst_36 = arith.constant dense<0.000000e+00> : vector<32x256xf32>
    %40 = tpu.matmul %39, %37, %cst_36 {dimension_numbers = #tpu.dot_dimension_numbers<[1], [0], [0], [1], [0, 0, 1, 1], [], []>} : vector<32x4xf32>, vector<4x256xf32>, vector<32x256xf32> -> vector<32x256xf32>
    %41 = arith.addf %36, %40 : vector<32x256xf32>
    %c0_37 = arith.constant 0 : index
    %c34 = arith.constant 34 : index
    %42 = vector.load %arg0[%c0_37, %c34] : memref<4x290xf32, #tpu.memory_space<vmem>>, vector<4x256xf32>
    %c8 = arith.constant 8 : index
    %c0_38 = arith.constant 0 : index
    %c0_39 = arith.constant 0 : index
    %43 = vector.load %arg3[%c8, %c0_38, %c0_39] : memref<9x32x4xf32, #tpu.memory_space<vmem>>, vector<1x32x4xf32>
    %44 = vector.shape_cast %43 : vector<1x32x4xf32> to vector<32x4xf32>
    %cst_40 = arith.constant dense<0.000000e+00> : vector<32x256xf32>
    %45 = tpu.matmul %44, %42, %cst_40 {dimension_numbers = #tpu.dot_dimension_numbers<[1], [0], [0], [1], [0, 0, 1, 1], [], []>} : vector<32x4xf32>, vector<4x256xf32>, vector<32x256xf32> -> vector<32x256xf32>
    %46 = arith.addf %41, %45 : vector<32x256xf32>
    %c0_41 = arith.constant 0 : index
    %c0_42 = arith.constant 0 : index
    %47 = vector.load %arg4[%c0_41, %c0_42] : memref<32x1xf32, #tpu.memory_space<vmem>>, vector<32x1xf32>
    %48 = vector.broadcast %47 : vector<32x1xf32> to vector<32x256xf32>
    %49 = arith.addf %46, %48 : vector<32x256xf32>
    %cst_43 = arith.constant 0.000000e+00 : f32
    %50 = vector.broadcast %cst_43 : f32 to vector<32x256xf32>
    %51 = arith.maximumf %49, %50 : vector<32x256xf32>
    %52 = vector.broadcast %0 : vector<1x256xf32> to vector<32x256xf32>
    %53 = arith.mulf %51, %52 : vector<32x256xf32>
    %cst_44 = arith.constant 0.000000e+00 : f32
    %54 = vector.broadcast %cst_44 : f32 to vector<32x290xf32>
    %c0_45 = arith.constant 0 : index
    %c0_46 = arith.constant 0 : index
    %55 = vector.load %arg18[%c0_45, %c0_46] : memref<32x290xf32, #tpu.memory_space<vmem>>, vector<32x290xf32>
    tpu.vector_store %arg18[%c0_45, %c0_46], %54 {strides = array<i32>} : memref<32x290xf32, #tpu.memory_space<vmem>>, vector<32x290xf32>,
    %c0_47 = arith.constant 0 : index
    %c17_48 = arith.constant 17 : index
    %56 = vector.load %arg18[%c0_47, %c17_48] : memref<32x290xf32, #tpu.memory_space<vmem>>, vector<32x256xf32>
    tpu.vector_store %arg18[%c0_47, %c17_48], %53 {strides = array<i32>} : memref<32x290xf32, #tpu.memory_space<vmem>>, vector<32x256xf32>,
    %cst_49 = arith.constant 0.000000e+00 : f32
    %57 = vector.broadcast %cst_49 : f32 to vector<64x256xf32>
    %c0_50 = arith.constant 0 : index
    %c0_51 = arith.constant 0 : index
    %58 = vector.load %arg18[%c0_50, %c0_51] : memref<32x290xf32, #tpu.memory_space<vmem>>, vector<32x256xf32>
    %c0_52 = arith.constant 0 : index
    %c0_53 = arith.constant 0 : index
    %c0_54 = arith.constant 0 : index
    %59 = vector.load %arg5[%c0_52, %c0_53, %c0_54] : memref<9x64x32xf32, #tpu.memory_space<vmem>>, vector<1x64x32xf32>
    %60 = vector.shape_cast %59 : vector<1x64x32xf32> to vector<64x32xf32>
    %cst_55 = arith.constant dense<0.000000e+00> : vector<64x256xf32>
    %61 = tpu.matmul %60, %58, %cst_55 {dimension_numbers = #tpu.dot_dimension_numbers<[1], [0], [0], [1], [0, 0, 1, 1], [], []>} : vector<64x32xf32>, vector<32x256xf32>, vector<64x256xf32> -> vector<64x256xf32>
    %62 = arith.addf %57, %61 : vector<64x256xf32>
    %c0_56 = arith.constant 0 : index
    %c1_57 = arith.constant 1 : index
    %63 = vector.load %arg18[%c0_56, %c1_57] : memref<32x290xf32, #tpu.memory_space<vmem>>, vector<32x256xf32>
    %c1_58 = arith.constant 1 : index
    %c0_59 = arith.constant 0 : index
    %c0_60 = arith.constant 0 : index
    %64 = vector.load %arg5[%c1_58, %c0_59, %c0_60] : memref<9x64x32xf32, #tpu.memory_space<vmem>>, vector<1x64x32xf32>
    %65 = vector.shape_cast %64 : vector<1x64x32xf32> to vector<64x32xf32>
    %cst_61 = arith.constant dense<0.000000e+00> : vector<64x256xf32>
    %66 = tpu.matmul %65, %63, %cst_61 {dimension_numbers = #tpu.dot_dimension_numbers<[1], [0], [0], [1], [0, 0, 1, 1], [], []>} : vector<64x32xf32>, vector<32x256xf32>, vector<64x256xf32> -> vector<64x256xf32>
    %67 = arith.addf %62, %66 : vector<64x256xf32>
    %c0_62 = arith.constant 0 : index
    %c2_63 = arith.constant 2 : index
    %68 = vector.load %arg18[%c0_62, %c2_63] : memref<32x290xf32, #tpu.memory_space<vmem>>, vector<32x256xf32>
    %c2_64 = arith.constant 2 : index
    %c0_65 = arith.constant 0 : index
    %c0_66 = arith.constant 0 : index
    %69 = vector.load %arg5[%c2_64, %c0_65, %c0_66] : memref<9x64x32xf32, #tpu.memory_space<vmem>>, vector<1x64x32xf32>
    %70 = vector.shape_cast %69 : vector<1x64x32xf32> to vector<64x32xf32>
    %cst_67 = arith.constant dense<0.000000e+00> : vector<64x256xf32>
    %71 = tpu.matmul %70, %68, %cst_67 {dimension_numbers = #tpu.dot_dimension_numbers<[1], [0], [0], [1], [0, 0, 1, 1], [], []>} : vector<64x32xf32>, vector<32x256xf32>, vector<64x256xf32> -> vector<64x256xf32>
    %72 = arith.addf %67, %71 : vector<64x256xf32>
    %c0_68 = arith.constant 0 : index
    %c16_69 = arith.constant 16 : index
    %73 = vector.load %arg18[%c0_68, %c16_69] : memref<32x290xf32, #tpu.memory_space<vmem>>, vector<32x256xf32>
    %c3_70 = arith.constant 3 : index
    %c0_71 = arith.constant 0 : index
    %c0_72 = arith.constant 0 : index
    %74 = vector.load %arg5[%c3_70, %c0_71, %c0_72] : memref<9x64x32xf32, #tpu.memory_space<vmem>>, vector<1x64x32xf32>
    %75 = vector.shape_cast %74 : vector<1x64x32xf32> to vector<64x32xf32>
    %cst_73 = arith.constant dense<0.000000e+00> : vector<64x256xf32>
    %76 = tpu.matmul %75, %73, %cst_73 {dimension_numbers = #tpu.dot_dimension_numbers<[1], [0], [0], [1], [0, 0, 1, 1], [], []>} : vector<64x32xf32>, vector<32x256xf32>, vector<64x256xf32> -> vector<64x256xf32>
    %77 = arith.addf %72, %76 : vector<64x256xf32>
    %c0_74 = arith.constant 0 : index
    %c17_75 = arith.constant 17 : index
    %78 = vector.load %arg18[%c0_74, %c17_75] : memref<32x290xf32, #tpu.memory_space<vmem>>, vector<32x256xf32>
    %c4_76 = arith.constant 4 : index
    %c0_77 = arith.constant 0 : index
    %c0_78 = arith.constant 0 : index
    %79 = vector.load %arg5[%c4_76, %c0_77, %c0_78] : memref<9x64x32xf32, #tpu.memory_space<vmem>>, vector<1x64x32xf32>
    %80 = vector.shape_cast %79 : vector<1x64x32xf32> to vector<64x32xf32>
    %cst_79 = arith.constant dense<0.000000e+00> : vector<64x256xf32>
    %81 = tpu.matmul %80, %78, %cst_79 {dimension_numbers = #tpu.dot_dimension_numbers<[1], [0], [0], [1], [0, 0, 1, 1], [], []>} : vector<64x32xf32>, vector<32x256xf32>, vector<64x256xf32> -> vector<64x256xf32>
    %82 = arith.addf %77, %81 : vector<64x256xf32>
    %c0_80 = arith.constant 0 : index
    %c18_81 = arith.constant 18 : index
    %83 = vector.load %arg18[%c0_80, %c18_81] : memref<32x290xf32, #tpu.memory_space<vmem>>, vector<32x256xf32>
    %c5_82 = arith.constant 5 : index
    %c0_83 = arith.constant 0 : index
    %c0_84 = arith.constant 0 : index
    %84 = vector.load %arg5[%c5_82, %c0_83, %c0_84] : memref<9x64x32xf32, #tpu.memory_space<vmem>>, vector<1x64x32xf32>
    %85 = vector.shape_cast %84 : vector<1x64x32xf32> to vector<64x32xf32>
    %cst_85 = arith.constant dense<0.000000e+00> : vector<64x256xf32>
    %86 = tpu.matmul %85, %83, %cst_85 {dimension_numbers = #tpu.dot_dimension_numbers<[1], [0], [0], [1], [0, 0, 1, 1], [], []>} : vector<64x32xf32>, vector<32x256xf32>, vector<64x256xf32> -> vector<64x256xf32>
    %87 = arith.addf %82, %86 : vector<64x256xf32>
    %c0_86 = arith.constant 0 : index
    %c32_87 = arith.constant 32 : index
    %88 = vector.load %arg18[%c0_86, %c32_87] : memref<32x290xf32, #tpu.memory_space<vmem>>, vector<32x256xf32>
    %c6_88 = arith.constant 6 : index
    %c0_89 = arith.constant 0 : index
    %c0_90 = arith.constant 0 : index
    %89 = vector.load %arg5[%c6_88, %c0_89, %c0_90] : memref<9x64x32xf32, #tpu.memory_space<vmem>>, vector<1x64x32xf32>
    %90 = vector.shape_cast %89 : vector<1x64x32xf32> to vector<64x32xf32>
    %cst_91 = arith.constant dense<0.000000e+00> : vector<64x256xf32>
    %91 = tpu.matmul %90, %88, %cst_91 {dimension_numbers = #tpu.dot_dimension_numbers<[1], [0], [0], [1], [0, 0, 1, 1], [], []>} : vector<64x32xf32>, vector<32x256xf32>, vector<64x256xf32> -> vector<64x256xf32>
    %92 = arith.addf %87, %91 : vector<64x256xf32>
    %c0_92 = arith.constant 0 : index
    %c33_93 = arith.constant 33 : index
    %93 = vector.load %arg18[%c0_92, %c33_93] : memref<32x290xf32, #tpu.memory_space<vmem>>, vector<32x256xf32>
    %c7_94 = arith.constant 7 : index
    %c0_95 = arith.constant 0 : index
    %c0_96 = arith.constant 0 : index
    %94 = vector.load %arg5[%c7_94, %c0_95, %c0_96] : memref<9x64x32xf32, #tpu.memory_space<vmem>>, vector<1x64x32xf32>
    %95 = vector.shape_cast %94 : vector<1x64x32xf32> to vector<64x32xf32>
    %cst_97 = arith.constant dense<0.000000e+00> : vector<64x256xf32>
    %96 = tpu.matmul %95, %93, %cst_97 {dimension_numbers = #tpu.dot_dimension_numbers<[1], [0], [0], [1], [0, 0, 1, 1], [], []>} : vector<64x32xf32>, vector<32x256xf32>, vector<64x256xf32> -> vector<64x256xf32>
    %97 = arith.addf %92, %96 : vector<64x256xf32>
    %c0_98 = arith.constant 0 : index
    %c34_99 = arith.constant 34 : index
    %98 = vector.load %arg18[%c0_98, %c34_99] : memref<32x290xf32, #tpu.memory_space<vmem>>, vector<32x256xf32>
    %c8_100 = arith.constant 8 : index
    %c0_101 = arith.constant 0 : index
    %c0_102 = arith.constant 0 : index
    %99 = vector.load %arg5[%c8_100, %c0_101, %c0_102] : memref<9x64x32xf32, #tpu.memory_space<vmem>>, vector<1x64x32xf32>
    %100 = vector.shape_cast %99 : vector<1x64x32xf32> to vector<64x32xf32>
    %cst_103 = arith.constant dense<0.000000e+00> : vector<64x256xf32>
    %101 = tpu.matmul %100, %98, %cst_103 {dimension_numbers = #tpu.dot_dimension_numbers<[1], [0], [0], [1], [0, 0, 1, 1], [], []>} : vector<64x32xf32>, vector<32x256xf32>, vector<64x256xf32> -> vector<64x256xf32>
    %102 = arith.addf %97, %101 : vector<64x256xf32>
    %c0_104 = arith.constant 0 : index
    %c0_105 = arith.constant 0 : index
    %103 = vector.load %arg6[%c0_104, %c0_105] : memref<64x1xf32, #tpu.memory_space<vmem>>, vector<64x1xf32>
    %104 = vector.broadcast %103 : vector<64x1xf32> to vector<64x256xf32>
    %105 = arith.addf %102, %104 : vector<64x256xf32>
    %cst_106 = arith.constant 0.000000e+00 : f32
    %106 = vector.broadcast %cst_106 : f32 to vector<64x256xf32>
    %107 = arith.maximumf %105, %106 : vector<64x256xf32>
    %108 = arith.truncf %107 : vector<64x256xf32> to vector<64x256xbf16>
    %cst_107 = arith.constant 0.000000e+00 : f32
    %109 = vector.broadcast %cst_107 : f32 to vector<2x128xf32>
    %110 = vector.extract_strided_slice %108 {offsets = [0, 0], sizes = [2, 256], strides = [1, 1]} : vector<64x256xbf16> to vector<2x256xbf16>
    %c0_108 = arith.constant 0 : index
    %c0_109 = arith.constant 0 : index
    %c0_110 = arith.constant 0 : index
    %111 = vector.load %arg11[%c0_108, %c0_109, %c0_110] : memref<32x256x128xbf16, #tpu.memory_space<vmem>>, vector<1x256x128xbf16>
    %112 = vector.shape_cast %111 : vector<1x256x128xbf16> to vector<256x128xbf16>
    %cst_111 = arith.constant dense<0.000000e+00> : vector<2x128xf32>
    %113 = tpu.matmul %110, %112, %cst_111 {dimension_numbers = #tpu.dot_dimension_numbers<[1], [0], [0], [1], [0, 0, 1, 1], [], []>} : vector<2x256xbf16>, vector<256x128xbf16>, vector<2x128xf32> -> vector<2x128xf32>
    %114 = arith.addf %109, %113 : vector<2x128xf32>
    %115 = vector.extract_strided_slice %108 {offsets = [2, 0], sizes = [2, 256], strides = [1, 1]} : vector<64x256xbf16> to vector<2x256xbf16>
    %c1_112 = arith.constant 1 : index
    %c0_113 = arith.constant 0 : index
    %c0_114 = arith.constant 0 : index
    %116 = vector.load %arg11[%c1_112, %c0_113, %c0_114] : memref<32x256x128xbf16, #tpu.memory_space<vmem>>, vector<1x256x128xbf16>
    %117 = vector.shape_cast %116 : vector<1x256x128xbf16> to vector<256x128xbf16>
    %cst_115 = arith.constant dense<0.000000e+00> : vector<2x128xf32>
    %118 = tpu.matmul %115, %117, %cst_115 {dimension_numbers = #tpu.dot_dimension_numbers<[1], [0], [0], [1], [0, 0, 1, 1], [], []>} : vector<2x256xbf16>, vector<256x128xbf16>, vector<2x128xf32> -> vector<2x128xf32>
    %119 = arith.addf %114, %118 : vector<2x128xf32>
    %120 = vector.extract_strided_slice %108 {offsets = [4, 0], sizes = [2, 256], strides = [1, 1]} : vector<64x256xbf16> to vector<2x256xbf16>
    %c2_116 = arith.constant 2 : index
    %c0_117 = arith.constant 0 : index
    %c0_118 = arith.constant 0 : index
    %121 = vector.load %arg11[%c2_116, %c0_117, %c0_118] : memref<32x256x128xbf16, #tpu.memory_space<vmem>>, vector<1x256x128xbf16>
    %122 = vector.shape_cast %121 : vector<1x256x128xbf16> to vector<256x128xbf16>
    %cst_119 = arith.constant dense<0.000000e+00> : vector<2x128xf32>
    %123 = tpu.matmul %120, %122, %cst_119 {dimension_numbers = #tpu.dot_dimension_numbers<[1], [0], [0], [1], [0, 0, 1, 1], [], []>} : vector<2x256xbf16>, vector<256x128xbf16>, vector<2x128xf32> -> vector<2x128xf32>
    %124 = arith.addf %119, %123 : vector<2x128xf32>
    %125 = vector.extract_strided_slice %108 {offsets = [6, 0], sizes = [2, 256], strides = [1, 1]} : vector<64x256xbf16> to vector<2x256xbf16>
    %c3_120 = arith.constant 3 : index
    %c0_121 = arith.constant 0 : index
    %c0_122 = arith.constant 0 : index
    %126 = vector.load %arg11[%c3_120, %c0_121, %c0_122] : memref<32x256x128xbf16, #tpu.memory_space<vmem>>, vector<1x256x128xbf16>
    %127 = vector.shape_cast %126 : vector<1x256x128xbf16> to vector<256x128xbf16>
    %cst_123 = arith.constant dense<0.000000e+00> : vector<2x128xf32>
    %128 = tpu.matmul %125, %127, %cst_123 {dimension_numbers = #tpu.dot_dimension_numbers<[1], [0], [0], [1], [0, 0, 1, 1], [], []>} : vector<2x256xbf16>, vector<256x128xbf16>, vector<2x128xf32> -> vector<2x128xf32>
    %129 = arith.addf %124, %128 : vector<2x128xf32>
    %130 = vector.extract_strided_slice %108 {offsets = [8, 0], sizes = [2, 256], strides = [1, 1]} : vector<64x256xbf16> to vector<2x256xbf16>
    %c4_124 = arith.constant 4 : index
    %c0_125 = arith.constant 0 : index
    %c0_126 = arith.constant 0 : index
    %131 = vector.load %arg11[%c4_124, %c0_125, %c0_126] : memref<32x256x128xbf16, #tpu.memory_space<vmem>>, vector<1x256x128xbf16>
    %132 = vector.shape_cast %131 : vector<1x256x128xbf16> to vector<256x128xbf16>
    %cst_127 = arith.constant dense<0.000000e+00> : vector<2x128xf32>
    %133 = tpu.matmul %130, %132, %cst_127 {dimension_numbers = #tpu.dot_dimension_numbers<[1], [0], [0], [1], [0, 0, 1, 1], [], []>} : vector<2x256xbf16>, vector<256x128xbf16>, vector<2x128xf32> -> vector<2x128xf32>
    %134 = arith.addf %129, %133 : vector<2x128xf32>
    %135 = vector.extract_strided_slice %108 {offsets = [10, 0], sizes = [2, 256], strides = [1, 1]} : vector<64x256xbf16> to vector<2x256xbf16>
    %c5_128 = arith.constant 5 : index
    %c0_129 = arith.constant 0 : index
    %c0_130 = arith.constant 0 : index
    %136 = vector.load %arg11[%c5_128, %c0_129, %c0_130] : memref<32x256x128xbf16, #tpu.memory_space<vmem>>, vector<1x256x128xbf16>
    %137 = vector.shape_cast %136 : vector<1x256x128xbf16> to vector<256x128xbf16>
    %cst_131 = arith.constant dense<0.000000e+00> : vector<2x128xf32>
    %138 = tpu.matmul %135, %137, %cst_131 {dimension_numbers = #tpu.dot_dimension_numbers<[1], [0], [0], [1], [0, 0, 1, 1], [], []>} : vector<2x256xbf16>, vector<256x128xbf16>, vector<2x128xf32> -> vector<2x128xf32>
    %139 = arith.addf %134, %138 : vector<2x128xf32>
    %140 = vector.extract_strided_slice %108 {offsets = [12, 0], sizes = [2, 256], strides = [1, 1]} : vector<64x256xbf16> to vector<2x256xbf16>
    %c6_132 = arith.constant 6 : index
    %c0_133 = arith.constant 0 : index
    %c0_134 = arith.constant 0 : index
    %141 = vector.load %arg11[%c6_132, %c0_133, %c0_134] : memref<32x256x128xbf16, #tpu.memory_space<vmem>>, vector<1x256x128xbf16>
    %142 = vector.shape_cast %141 : vector<1x256x128xbf16> to vector<256x128xbf16>
    %cst_135 = arith.constant dense<0.000000e+00> : vector<2x128xf32>
    %143 = tpu.matmul %140, %142, %cst_135 {dimension_numbers = #tpu.dot_dimension_numbers<[1], [0], [0], [1], [0, 0, 1, 1], [], []>} : vector<2x256xbf16>, vector<256x128xbf16>, vector<2x128xf32> -> vector<2x128xf32>
    %144 = arith.addf %139, %143 : vector<2x128xf32>
    %145 = vector.extract_strided_slice %108 {offsets = [14, 0], sizes = [2, 256], strides = [1, 1]} : vector<64x256xbf16> to vector<2x256xbf16>
    %c7_136 = arith.constant 7 : index
    %c0_137 = arith.constant 0 : index
    %c0_138 = arith.constant 0 : index
    %146 = vector.load %arg11[%c7_136, %c0_137, %c0_138] : memref<32x256x128xbf16, #tpu.memory_space<vmem>>, vector<1x256x128xbf16>
    %147 = vector.shape_cast %146 : vector<1x256x128xbf16> to vector<256x128xbf16>
    %cst_139 = arith.constant dense<0.000000e+00> : vector<2x128xf32>
    %148 = tpu.matmul %145, %147, %cst_139 {dimension_numbers = #tpu.dot_dimension_numbers<[1], [0], [0], [1], [0, 0, 1, 1], [], []>} : vector<2x256xbf16>, vector<256x128xbf16>, vector<2x128xf32> -> vector<2x128xf32>
    %149 = arith.addf %144, %148 : vector<2x128xf32>
    %150 = vector.extract_strided_slice %108 {offsets = [16, 0], sizes = [2, 256], strides = [1, 1]} : vector<64x256xbf16> to vector<2x256xbf16>
    %c8_140 = arith.constant 8 : index
    %c0_141 = arith.constant 0 : index
    %c0_142 = arith.constant 0 : index
    %151 = vector.load %arg11[%c8_140, %c0_141, %c0_142] : memref<32x256x128xbf16, #tpu.memory_space<vmem>>, vector<1x256x128xbf16>
    %152 = vector.shape_cast %151 : vector<1x256x128xbf16> to vector<256x128xbf16>
    %cst_143 = arith.constant dense<0.000000e+00> : vector<2x128xf32>
    %153 = tpu.matmul %150, %152, %cst_143 {dimension_numbers = #tpu.dot_dimension_numbers<[1], [0], [0], [1], [0, 0, 1, 1], [], []>} : vector<2x256xbf16>, vector<256x128xbf16>, vector<2x128xf32> -> vector<2x128xf32>
    %154 = arith.addf %149, %153 : vector<2x128xf32>
    %155 = vector.extract_strided_slice %108 {offsets = [18, 0], sizes = [2, 256], strides = [1, 1]} : vector<64x256xbf16> to vector<2x256xbf16>
    %c9 = arith.constant 9 : index
    %c0_144 = arith.constant 0 : index
    %c0_145 = arith.constant 0 : index
    %156 = vector.load %arg11[%c9, %c0_144, %c0_145] : memref<32x256x128xbf16, #tpu.memory_space<vmem>>, vector<1x256x128xbf16>
    %157 = vector.shape_cast %156 : vector<1x256x128xbf16> to vector<256x128xbf16>
    %cst_146 = arith.constant dense<0.000000e+00> : vector<2x128xf32>
    %158 = tpu.matmul %155, %157, %cst_146 {dimension_numbers = #tpu.dot_dimension_numbers<[1], [0], [0], [1], [0, 0, 1, 1], [], []>} : vector<2x256xbf16>, vector<256x128xbf16>, vector<2x128xf32> -> vector<2x128xf32>
    %159 = arith.addf %154, %158 : vector<2x128xf32>
    %160 = vector.extract_strided_slice %108 {offsets = [20, 0], sizes = [2, 256], strides = [1, 1]} : vector<64x256xbf16> to vector<2x256xbf16>
    %c10 = arith.constant 10 : index
    %c0_147 = arith.constant 0 : index
    %c0_148 = arith.constant 0 : index
    %161 = vector.load %arg11[%c10, %c0_147, %c0_148] : memref<32x256x128xbf16, #tpu.memory_space<vmem>>, vector<1x256x128xbf16>
    %162 = vector.shape_cast %161 : vector<1x256x128xbf16> to vector<256x128xbf16>
    %cst_149 = arith.constant dense<0.000000e+00> : vector<2x128xf32>
    %163 = tpu.matmul %160, %162, %cst_149 {dimension_numbers = #tpu.dot_dimension_numbers<[1], [0], [0], [1], [0, 0, 1, 1], [], []>} : vector<2x256xbf16>, vector<256x128xbf16>, vector<2x128xf32> -> vector<2x128xf32>
    %164 = arith.addf %159, %163 : vector<2x128xf32>
    %165 = vector.extract_strided_slice %108 {offsets = [22, 0], sizes = [2, 256], strides = [1, 1]} : vector<64x256xbf16> to vector<2x256xbf16>
    %c11 = arith.constant 11 : index
    %c0_150 = arith.constant 0 : index
    %c0_151 = arith.constant 0 : index
    %166 = vector.load %arg11[%c11, %c0_150, %c0_151] : memref<32x256x128xbf16, #tpu.memory_space<vmem>>, vector<1x256x128xbf16>
    %167 = vector.shape_cast %166 : vector<1x256x128xbf16> to vector<256x128xbf16>
    %cst_152 = arith.constant dense<0.000000e+00> : vector<2x128xf32>
    %168 = tpu.matmul %165, %167, %cst_152 {dimension_numbers = #tpu.dot_dimension_numbers<[1], [0], [0], [1], [0, 0, 1, 1], [], []>} : vector<2x256xbf16>, vector<256x128xbf16>, vector<2x128xf32> -> vector<2x128xf32>
    %169 = arith.addf %164, %168 : vector<2x128xf32>
    %170 = vector.extract_strided_slice %108 {offsets = [24, 0], sizes = [2, 256], strides = [1, 1]} : vector<64x256xbf16> to vector<2x256xbf16>
    %c12 = arith.constant 12 : index
    %c0_153 = arith.constant 0 : index
    %c0_154 = arith.constant 0 : index
    %171 = vector.load %arg11[%c12, %c0_153, %c0_154] : memref<32x256x128xbf16, #tpu.memory_space<vmem>>, vector<1x256x128xbf16>
    %172 = vector.shape_cast %171 : vector<1x256x128xbf16> to vector<256x128xbf16>
    %cst_155 = arith.constant dense<0.000000e+00> : vector<2x128xf32>
    %173 = tpu.matmul %170, %172, %cst_155 {dimension_numbers = #tpu.dot_dimension_numbers<[1], [0], [0], [1], [0, 0, 1, 1], [], []>} : vector<2x256xbf16>, vector<256x128xbf16>, vector<2x128xf32> -> vector<2x128xf32>
    %174 = arith.addf %169, %173 : vector<2x128xf32>
    %175 = vector.extract_strided_slice %108 {offsets = [26, 0], sizes = [2, 256], strides = [1, 1]} : vector<64x256xbf16> to vector<2x256xbf16>
    %c13 = arith.constant 13 : index
    %c0_156 = arith.constant 0 : index
    %c0_157 = arith.constant 0 : index
    %176 = vector.load %arg11[%c13, %c0_156, %c0_157] : memref<32x256x128xbf16, #tpu.memory_space<vmem>>, vector<1x256x128xbf16>
    %177 = vector.shape_cast %176 : vector<1x256x128xbf16> to vector<256x128xbf16>
    %cst_158 = arith.constant dense<0.000000e+00> : vector<2x128xf32>
    %178 = tpu.matmul %175, %177, %cst_158 {dimension_numbers = #tpu.dot_dimension_numbers<[1], [0], [0], [1], [0, 0, 1, 1], [], []>} : vector<2x256xbf16>, vector<256x128xbf16>, vector<2x128xf32> -> vector<2x128xf32>
    %179 = arith.addf %174, %178 : vector<2x128xf32>
    %180 = vector.extract_strided_slice %108 {offsets = [28, 0], sizes = [2, 256], strides = [1, 1]} : vector<64x256xbf16> to vector<2x256xbf16>
    %c14 = arith.constant 14 : index
    %c0_159 = arith.constant 0 : index
    %c0_160 = arith.constant 0 : index
    %181 = vector.load %arg11[%c14, %c0_159, %c0_160] : memref<32x256x128xbf16, #tpu.memory_space<vmem>>, vector<1x256x128xbf16>
    %182 = vector.shape_cast %181 : vector<1x256x128xbf16> to vector<256x128xbf16>
    %cst_161 = arith.constant dense<0.000000e+00> : vector<2x128xf32>
    %183 = tpu.matmul %180, %182, %cst_161 {dimension_numbers = #tpu.dot_dimension_numbers<[1], [0], [0], [1], [0, 0, 1, 1], [], []>} : vector<2x256xbf16>, vector<256x128xbf16>, vector<2x128xf32> -> vector<2x128xf32>
    %184 = arith.addf %179, %183 : vector<2x128xf32>
    %185 = vector.extract_strided_slice %108 {offsets = [30, 0], sizes = [2, 256], strides = [1, 1]} : vector<64x256xbf16> to vector<2x256xbf16>
    %c15 = arith.constant 15 : index
    %c0_162 = arith.constant 0 : index
    %c0_163 = arith.constant 0 : index
    %186 = vector.load %arg11[%c15, %c0_162, %c0_163] : memref<32x256x128xbf16, #tpu.memory_space<vmem>>, vector<1x256x128xbf16>
    %187 = vector.shape_cast %186 : vector<1x256x128xbf16> to vector<256x128xbf16>
    %cst_164 = arith.constant dense<0.000000e+00> : vector<2x128xf32>
    %188 = tpu.matmul %185, %187, %cst_164 {dimension_numbers = #tpu.dot_dimension_numbers<[1], [0], [0], [1], [0, 0, 1, 1], [], []>} : vector<2x256xbf16>, vector<256x128xbf16>, vector<2x128xf32> -> vector<2x128xf32>
    %189 = arith.addf %184, %188 : vector<2x128xf32>
    %190 = vector.extract_strided_slice %108 {offsets = [32, 0], sizes = [2, 256], strides = [1, 1]} : vector<64x256xbf16> to vector<2x256xbf16>
    %c16_165 = arith.constant 16 : index
    %c0_166 = arith.constant 0 : index
    %c0_167 = arith.constant 0 : index
    %191 = vector.load %arg11[%c16_165, %c0_166, %c0_167] : memref<32x256x128xbf16, #tpu.memory_space<vmem>>, vector<1x256x128xbf16>
    %192 = vector.shape_cast %191 : vector<1x256x128xbf16> to vector<256x128xbf16>
    %cst_168 = arith.constant dense<0.000000e+00> : vector<2x128xf32>
    %193 = tpu.matmul %190, %192, %cst_168 {dimension_numbers = #tpu.dot_dimension_numbers<[1], [0], [0], [1], [0, 0, 1, 1], [], []>} : vector<2x256xbf16>, vector<256x128xbf16>, vector<2x128xf32> -> vector<2x128xf32>
    %194 = arith.addf %189, %193 : vector<2x128xf32>
    %195 = vector.extract_strided_slice %108 {offsets = [34, 0], sizes = [2, 256], strides = [1, 1]} : vector<64x256xbf16> to vector<2x256xbf16>
    %c17_169 = arith.constant 17 : index
    %c0_170 = arith.constant 0 : index
    %c0_171 = arith.constant 0 : index
    %196 = vector.load %arg11[%c17_169, %c0_170, %c0_171] : memref<32x256x128xbf16, #tpu.memory_space<vmem>>, vector<1x256x128xbf16>
    %197 = vector.shape_cast %196 : vector<1x256x128xbf16> to vector<256x128xbf16>
    %cst_172 = arith.constant dense<0.000000e+00> : vector<2x128xf32>
    %198 = tpu.matmul %195, %197, %cst_172 {dimension_numbers = #tpu.dot_dimension_numbers<[1], [0], [0], [1], [0, 0, 1, 1], [], []>} : vector<2x256xbf16>, vector<256x128xbf16>, vector<2x128xf32> -> vector<2x128xf32>
    %199 = arith.addf %194, %198 : vector<2x128xf32>
    %200 = vector.extract_strided_slice %108 {offsets = [36, 0], sizes = [2, 256], strides = [1, 1]} : vector<64x256xbf16> to vector<2x256xbf16>
    %c18_173 = arith.constant 18 : index
    %c0_174 = arith.constant 0 : index
    %c0_175 = arith.constant 0 : index
    %201 = vector.load %arg11[%c18_173, %c0_174, %c0_175] : memref<32x256x128xbf16, #tpu.memory_space<vmem>>, vector<1x256x128xbf16>
    %202 = vector.shape_cast %201 : vector<1x256x128xbf16> to vector<256x128xbf16>
    %cst_176 = arith.constant dense<0.000000e+00> : vector<2x128xf32>
    %203 = tpu.matmul %200, %202, %cst_176 {dimension_numbers = #tpu.dot_dimension_numbers<[1], [0], [0], [1], [0, 0, 1, 1], [], []>} : vector<2x256xbf16>, vector<256x128xbf16>, vector<2x128xf32> -> vector<2x128xf32>
    %204 = arith.addf %199, %203 : vector<2x128xf32>
    %205 = vector.extract_strided_slice %108 {offsets = [38, 0], sizes = [2, 256], strides = [1, 1]} : vector<64x256xbf16> to vector<2x256xbf16>
    %c19 = arith.constant 19 : index
    %c0_177 = arith.constant 0 : index
    %c0_178 = arith.constant 0 : index
    %206 = vector.load %arg11[%c19, %c0_177, %c0_178] : memref<32x256x128xbf16, #tpu.memory_space<vmem>>, vector<1x256x128xbf16>
    %207 = vector.shape_cast %206 : vector<1x256x128xbf16> to vector<256x128xbf16>
    %cst_179 = arith.constant dense<0.000000e+00> : vector<2x128xf32>
    %208 = tpu.matmul %205, %207, %cst_179 {dimension_numbers = #tpu.dot_dimension_numbers<[1], [0], [0], [1], [0, 0, 1, 1], [], []>} : vector<2x256xbf16>, vector<256x128xbf16>, vector<2x128xf32> -> vector<2x128xf32>
    %209 = arith.addf %204, %208 : vector<2x128xf32>
    %210 = vector.extract_strided_slice %108 {offsets = [40, 0], sizes = [2, 256], strides = [1, 1]} : vector<64x256xbf16> to vector<2x256xbf16>
    %c20 = arith.constant 20 : index
    %c0_180 = arith.constant 0 : index
    %c0_181 = arith.constant 0 : index
    %211 = vector.load %arg11[%c20, %c0_180, %c0_181] : memref<32x256x128xbf16, #tpu.memory_space<vmem>>, vector<1x256x128xbf16>
    %212 = vector.shape_cast %211 : vector<1x256x128xbf16> to vector<256x128xbf16>
    %cst_182 = arith.constant dense<0.000000e+00> : vector<2x128xf32>
    %213 = tpu.matmul %210, %212, %cst_182 {dimension_numbers = #tpu.dot_dimension_numbers<[1], [0], [0], [1], [0, 0, 1, 1], [], []>} : vector<2x256xbf16>, vector<256x128xbf16>, vector<2x128xf32> -> vector<2x128xf32>
    %214 = arith.addf %209, %213 : vector<2x128xf32>
    %215 = vector.extract_strided_slice %108 {offsets = [42, 0], sizes = [2, 256], strides = [1, 1]} : vector<64x256xbf16> to vector<2x256xbf16>
    %c21 = arith.constant 21 : index
    %c0_183 = arith.constant 0 : index
    %c0_184 = arith.constant 0 : index
    %216 = vector.load %arg11[%c21, %c0_183, %c0_184] : memref<32x256x128xbf16, #tpu.memory_space<vmem>>, vector<1x256x128xbf16>
    %217 = vector.shape_cast %216 : vector<1x256x128xbf16> to vector<256x128xbf16>
    %cst_185 = arith.constant dense<0.000000e+00> : vector<2x128xf32>
    %218 = tpu.matmul %215, %217, %cst_185 {dimension_numbers = #tpu.dot_dimension_numbers<[1], [0], [0], [1], [0, 0, 1, 1], [], []>} : vector<2x256xbf16>, vector<256x128xbf16>, vector<2x128xf32> -> vector<2x128xf32>
    %219 = arith.addf %214, %218 : vector<2x128xf32>
    %220 = vector.extract_strided_slice %108 {offsets = [44, 0], sizes = [2, 256], strides = [1, 1]} : vector<64x256xbf16> to vector<2x256xbf16>
    %c22 = arith.constant 22 : index
    %c0_186 = arith.constant 0 : index
    %c0_187 = arith.constant 0 : index
    %221 = vector.load %arg11[%c22, %c0_186, %c0_187] : memref<32x256x128xbf16, #tpu.memory_space<vmem>>, vector<1x256x128xbf16>
    %222 = vector.shape_cast %221 : vector<1x256x128xbf16> to vector<256x128xbf16>
    %cst_188 = arith.constant dense<0.000000e+00> : vector<2x128xf32>
    %223 = tpu.matmul %220, %222, %cst_188 {dimension_numbers = #tpu.dot_dimension_numbers<[1], [0], [0], [1], [0, 0, 1, 1], [], []>} : vector<2x256xbf16>, vector<256x128xbf16>, vector<2x128xf32> -> vector<2x128xf32>
    %224 = arith.addf %219, %223 : vector<2x128xf32>
    %225 = vector.extract_strided_slice %108 {offsets = [46, 0], sizes = [2, 256], strides = [1, 1]} : vector<64x256xbf16> to vector<2x256xbf16>
    %c23 = arith.constant 23 : index
    %c0_189 = arith.constant 0 : index
    %c0_190 = arith.constant 0 : index
    %226 = vector.load %arg11[%c23, %c0_189, %c0_190] : memref<32x256x128xbf16, #tpu.memory_space<vmem>>, vector<1x256x128xbf16>
    %227 = vector.shape_cast %226 : vector<1x256x128xbf16> to vector<256x128xbf16>
    %cst_191 = arith.constant dense<0.000000e+00> : vector<2x128xf32>
    %228 = tpu.matmul %225, %227, %cst_191 {dimension_numbers = #tpu.dot_dimension_numbers<[1], [0], [0], [1], [0, 0, 1, 1], [], []>} : vector<2x256xbf16>, vector<256x128xbf16>, vector<2x128xf32> -> vector<2x128xf32>
    %229 = arith.addf %224, %228 : vector<2x128xf32>
    %230 = vector.extract_strided_slice %108 {offsets = [48, 0], sizes = [2, 256], strides = [1, 1]} : vector<64x256xbf16> to vector<2x256xbf16>
    %c24 = arith.constant 24 : index
    %c0_192 = arith.constant 0 : index
    %c0_193 = arith.constant 0 : index
    %231 = vector.load %arg11[%c24, %c0_192, %c0_193] : memref<32x256x128xbf16, #tpu.memory_space<vmem>>, vector<1x256x128xbf16>
    %232 = vector.shape_cast %231 : vector<1x256x128xbf16> to vector<256x128xbf16>
    %cst_194 = arith.constant dense<0.000000e+00> : vector<2x128xf32>
    %233 = tpu.matmul %230, %232, %cst_194 {dimension_numbers = #tpu.dot_dimension_numbers<[1], [0], [0], [1], [0, 0, 1, 1], [], []>} : vector<2x256xbf16>, vector<256x128xbf16>, vector<2x128xf32> -> vector<2x128xf32>
    %234 = arith.addf %229, %233 : vector<2x128xf32>
    %235 = vector.extract_strided_slice %108 {offsets = [50, 0], sizes = [2, 256], strides = [1, 1]} : vector<64x256xbf16> to vector<2x256xbf16>
    %c25 = arith.constant 25 : index
    %c0_195 = arith.constant 0 : index
    %c0_196 = arith.constant 0 : index
    %236 = vector.load %arg11[%c25, %c0_195, %c0_196] : memref<32x256x128xbf16, #tpu.memory_space<vmem>>, vector<1x256x128xbf16>
    %237 = vector.shape_cast %236 : vector<1x256x128xbf16> to vector<256x128xbf16>
    %cst_197 = arith.constant dense<0.000000e+00> : vector<2x128xf32>
    %238 = tpu.matmul %235, %237, %cst_197 {dimension_numbers = #tpu.dot_dimension_numbers<[1], [0], [0], [1], [0, 0, 1, 1], [], []>} : vector<2x256xbf16>, vector<256x128xbf16>, vector<2x128xf32> -> vector<2x128xf32>
    %239 = arith.addf %234, %238 : vector<2x128xf32>
    %240 = vector.extract_strided_slice %108 {offsets = [52, 0], sizes = [2, 256], strides = [1, 1]} : vector<64x256xbf16> to vector<2x256xbf16>
    %c26 = arith.constant 26 : index
    %c0_198 = arith.constant 0 : index
    %c0_199 = arith.constant 0 : index
    %241 = vector.load %arg11[%c26, %c0_198, %c0_199] : memref<32x256x128xbf16, #tpu.memory_space<vmem>>, vector<1x256x128xbf16>
    %242 = vector.shape_cast %241 : vector<1x256x128xbf16> to vector<256x128xbf16>
    %cst_200 = arith.constant dense<0.000000e+00> : vector<2x128xf32>
    %243 = tpu.matmul %240, %242, %cst_200 {dimension_numbers = #tpu.dot_dimension_numbers<[1], [0], [0], [1], [0, 0, 1, 1], [], []>} : vector<2x256xbf16>, vector<256x128xbf16>, vector<2x128xf32> -> vector<2x128xf32>
    %244 = arith.addf %239, %243 : vector<2x128xf32>
    %245 = vector.extract_strided_slice %108 {offsets = [54, 0], sizes = [2, 256], strides = [1, 1]} : vector<64x256xbf16> to vector<2x256xbf16>
    %c27 = arith.constant 27 : index
    %c0_201 = arith.constant 0 : index
    %c0_202 = arith.constant 0 : index
    %246 = vector.load %arg11[%c27, %c0_201, %c0_202] : memref<32x256x128xbf16, #tpu.memory_space<vmem>>, vector<1x256x128xbf16>
    %247 = vector.shape_cast %246 : vector<1x256x128xbf16> to vector<256x128xbf16>
    %cst_203 = arith.constant dense<0.000000e+00> : vector<2x128xf32>
    %248 = tpu.matmul %245, %247, %cst_203 {dimension_numbers = #tpu.dot_dimension_numbers<[1], [0], [0], [1], [0, 0, 1, 1], [], []>} : vector<2x256xbf16>, vector<256x128xbf16>, vector<2x128xf32> -> vector<2x128xf32>
    %249 = arith.addf %244, %248 : vector<2x128xf32>
    %250 = vector.extract_strided_slice %108 {offsets = [56, 0], sizes = [2, 256], strides = [1, 1]} : vector<64x256xbf16> to vector<2x256xbf16>
    %c28 = arith.constant 28 : index
    %c0_204 = arith.constant 0 : index
    %c0_205 = arith.constant 0 : index
    %251 = vector.load %arg11[%c28, %c0_204, %c0_205] : memref<32x256x128xbf16, #tpu.memory_space<vmem>>, vector<1x256x128xbf16>
    %252 = vector.shape_cast %251 : vector<1x256x128xbf16> to vector<256x128xbf16>
    %cst_206 = arith.constant dense<0.000000e+00> : vector<2x128xf32>
    %253 = tpu.matmul %250, %252, %cst_206 {dimension_numbers = #tpu.dot_dimension_numbers<[1], [0], [0], [1], [0, 0, 1, 1], [], []>} : vector<2x256xbf16>, vector<256x128xbf16>, vector<2x128xf32> -> vector<2x128xf32>
    %254 = arith.addf %249, %253 : vector<2x128xf32>
    %255 = vector.extract_strided_slice %108 {offsets = [58, 0], sizes = [2, 256], strides = [1, 1]} : vector<64x256xbf16> to vector<2x256xbf16>
    %c29 = arith.constant 29 : index
    %c0_207 = arith.constant 0 : index
    %c0_208 = arith.constant 0 : index
    %256 = vector.load %arg11[%c29, %c0_207, %c0_208] : memref<32x256x128xbf16, #tpu.memory_space<vmem>>, vector<1x256x128xbf16>
    %257 = vector.shape_cast %256 : vector<1x256x128xbf16> to vector<256x128xbf16>
    %cst_209 = arith.constant dense<0.000000e+00> : vector<2x128xf32>
    %258 = tpu.matmul %255, %257, %cst_209 {dimension_numbers = #tpu.dot_dimension_numbers<[1], [0], [0], [1], [0, 0, 1, 1], [], []>} : vector<2x256xbf16>, vector<256x128xbf16>, vector<2x128xf32> -> vector<2x128xf32>
    %259 = arith.addf %254, %258 : vector<2x128xf32>
    %260 = vector.extract_strided_slice %108 {offsets = [60, 0], sizes = [2, 256], strides = [1, 1]} : vector<64x256xbf16> to vector<2x256xbf16>
    %c30 = arith.constant 30 : index
    %c0_210 = arith.constant 0 : index
    %c0_211 = arith.constant 0 : index
    %261 = vector.load %arg11[%c30, %c0_210, %c0_211] : memref<32x256x128xbf16, #tpu.memory_space<vmem>>, vector<1x256x128xbf16>
    %262 = vector.shape_cast %261 : vector<1x256x128xbf16> to vector<256x128xbf16>
    %cst_212 = arith.constant dense<0.000000e+00> : vector<2x128xf32>
    %263 = tpu.matmul %260, %262, %cst_212 {dimension_numbers = #tpu.dot_dimension_numbers<[1], [0], [0], [1], [0, 0, 1, 1], [], []>} : vector<2x256xbf16>, vector<256x128xbf16>, vector<2x128xf32> -> vector<2x128xf32>
    %264 = arith.addf %259, %263 : vector<2x128xf32>
    %265 = vector.extract_strided_slice %108 {offsets = [62, 0], sizes = [2, 256], strides = [1, 1]} : vector<64x256xbf16> to vector<2x256xbf16>
    %c31 = arith.constant 31 : index
    %c0_213 = arith.constant 0 : index
    %c0_214 = arith.constant 0 : index
    %266 = vector.load %arg11[%c31, %c0_213, %c0_214] : memref<32x256x128xbf16, #tpu.memory_space<vmem>>, vector<1x256x128xbf16>
    %267 = vector.shape_cast %266 : vector<1x256x128xbf16> to vector<256x128xbf16>
    %cst_215 = arith.constant dense<0.000000e+00> : vector<2x128xf32>
    %268 = tpu.matmul %265, %267, %cst_215 {dimension_numbers = #tpu.dot_dimension_numbers<[1], [0], [0], [1], [0, 0, 1, 1], [], []>} : vector<2x256xbf16>, vector<256x128xbf16>, vector<2x128xf32> -> vector<2x128xf32>
    %269 = arith.addf %264, %268 : vector<2x128xf32>
    %c0_216 = arith.constant 0 : index
    %c0_217 = arith.constant 0 : index
    %270 = vector.load %arg1[%c0_216, %c0_217] : memref<2x128xf32, #tpu.memory_space<vmem>>, vector<2x128xf32>
    %271 = arith.truncf %270 : vector<2x128xf32> to vector<2x128xbf16>
    %c0_218 = arith.constant 0 : index
    %c0_219 = arith.constant 0 : index
    %272 = vector.load %arg7[%c0_218, %c0_219] : memref<128x128xbf16, #tpu.memory_space<vmem>>, vector<128x128xbf16>
    %cst_220 = arith.constant dense<0.000000e+00> : vector<2x128xf32>
    %273 = tpu.matmul %271, %272, %cst_220 {dimension_numbers = #tpu.dot_dimension_numbers<[1], [0], [0], [1], [0, 0, 1, 1], [], []>} : vector<2x128xbf16>, vector<128x128xbf16>, vector<2x128xf32> -> vector<2x128xf32>
    %c0_221 = arith.constant 0 : index
    %c0_222 = arith.constant 0 : index
    %274 = vector.load %arg8[%c0_221, %c0_222] : memref<1x128xf32, #tpu.memory_space<vmem>>, vector<1x128xf32>
    %275 = vector.broadcast %274 : vector<1x128xf32> to vector<2x128xf32>
    %276 = arith.addf %273, %275 : vector<2x128xf32>
    %cst_223 = arith.constant 0.000000e+00 : f32
    %277 = vector.broadcast %cst_223 : f32 to vector<2x128xf32>
    %278 = arith.maximumf %276, %277 : vector<2x128xf32>
    %279 = arith.truncf %278 : vector<2x128xf32> to vector<2x128xbf16>
    %c0_224 = arith.constant 0 : index
    %c0_225 = arith.constant 0 : index
    %280 = vector.load %arg9[%c0_224, %c0_225] : memref<128x32xbf16, #tpu.memory_space<vmem>>, vector<128x32xbf16>
    %cst_226 = arith.constant dense<0.000000e+00> : vector<2x32xf32>
    %281 = tpu.matmul %279, %280, %cst_226 {dimension_numbers = #tpu.dot_dimension_numbers<[1], [0], [0], [1], [0, 0, 1, 1], [], []>} : vector<2x128xbf16>, vector<128x32xbf16>, vector<2x32xf32> -> vector<2x32xf32>
    %c0_227 = arith.constant 0 : index
    %c0_228 = arith.constant 0 : index
    %282 = vector.load %arg10[%c0_227, %c0_228] : memref<1x32xf32, #tpu.memory_space<vmem>>, vector<1x32xf32>
    %283 = vector.broadcast %282 : vector<1x32xf32> to vector<2x32xf32>
    %284 = arith.addf %281, %283 : vector<2x32xf32>
    %cst_229 = arith.constant 0.000000e+00 : f32
    %285 = vector.broadcast %cst_229 : f32 to vector<2x32xf32>
    %286 = arith.maximumf %284, %285 : vector<2x32xf32>
    %287 = arith.truncf %286 : vector<2x32xf32> to vector<2x32xbf16>
    %c0_230 = arith.constant 0 : index
    %c0_231 = arith.constant 0 : index
    %288 = vector.load %arg12[%c0_230, %c0_231] : memref<32x128xbf16, #tpu.memory_space<vmem>>, vector<32x128xbf16>
    %cst_232 = arith.constant dense<0.000000e+00> : vector<2x128xf32>
    %289 = tpu.matmul %287, %288, %cst_232 {dimension_numbers = #tpu.dot_dimension_numbers<[1], [0], [0], [1], [0, 0, 1, 1], [], []>} : vector<2x32xbf16>, vector<32x128xbf16>, vector<2x128xf32> -> vector<2x128xf32>
    %290 = arith.addf %269, %289 : vector<2x128xf32>
    %c0_233 = arith.constant 0 : index
    %c0_234 = arith.constant 0 : index
    %291 = vector.load %arg13[%c0_233, %c0_234] : memref<1x128xf32, #tpu.memory_space<vmem>>, vector<1x128xf32>
    %292 = vector.broadcast %291 : vector<1x128xf32> to vector<2x128xf32>
    %293 = arith.addf %290, %292 : vector<2x128xf32>
    %cst_235 = arith.constant 0.000000e+00 : f32
    %294 = vector.broadcast %cst_235 : f32 to vector<2x128xf32>
    %295 = arith.maximumf %293, %294 : vector<2x128xf32>
    %296 = arith.truncf %295 : vector<2x128xf32> to vector<2x128xbf16>
    %c0_236 = arith.constant 0 : index
    %c0_237 = arith.constant 0 : index
    %297 = vector.load %arg14[%c0_236, %c0_237] : memref<128x4xbf16, #tpu.memory_space<vmem>>, vector<128x4xbf16>
    %cst_238 = arith.constant dense<0.000000e+00> : vector<2x4xf32>
    %298 = tpu.matmul %296, %297, %cst_238 {dimension_numbers = #tpu.dot_dimension_numbers<[1], [0], [0], [1], [0, 0, 1, 1], [], []>} : vector<2x128xbf16>, vector<128x4xbf16>, vector<2x4xf32> -> vector<2x4xf32>
    %c0_239 = arith.constant 0 : index
    %c0_240 = arith.constant 0 : index
    %299 = vector.load %arg15[%c0_239, %c0_240] : memref<1x4xf32, #tpu.memory_space<vmem>>, vector<1x4xf32>
    %300 = vector.broadcast %299 : vector<1x4xf32> to vector<2x4xf32>
    %301 = arith.addf %298, %300 : vector<2x4xf32>
    %302 = vector.extract_strided_slice %301 {offsets = [0, 0], sizes = [2, 3], strides = [1, 1]} : vector<2x4xf32> to vector<2x3xf32>
    %cst_241 = arith.constant dense<0xFF800000> : vector<2xf32>
    %303 = vector.multi_reduction <maximumf>, %302, %cst_241 [1] : vector<2x3xf32> to vector<2xf32>
    %304 = vector.shape_cast %303 : vector<2xf32> to vector<2x1xf32>
    %305 = vector.broadcast %304 : vector<2x1xf32> to vector<2x3xf32>
    %306 = arith.subf %302, %305 : vector<2x3xf32>
    %307 = math.exp %306 : vector<2x3xf32>
    %cst_242 = arith.constant dense<0.000000e+00> : vector<2xf32>
    %308 = vector.multi_reduction <add>, %307, %cst_242 [1] : vector<2x3xf32> to vector<2xf32>
    %309 = vector.shape_cast %308 : vector<2xf32> to vector<2x1xf32>
    %310 = vector.broadcast %309 : vector<2x1xf32> to vector<2x3xf32>
    %311 = arith.divf %307, %310 : vector<2x3xf32>
    %c0_243 = arith.constant 0 : index
    %c0_244 = arith.constant 0 : index
    %312 = vector.load %arg16[%c0_243, %c0_244] : memref<2x3xf32, #tpu.memory_space<vmem>>, vector<2x3xf32>
    tpu.vector_store %arg16[%c0_243, %c0_244], %311 {strides = array<i32>} : memref<2x3xf32, #tpu.memory_space<vmem>>, vector<2x3xf32>,
    %313 = vector.extract_strided_slice %301 {offsets = [0, 3], sizes = [2, 1], strides = [1, 1]} : vector<2x4xf32> to vector<2x1xf32>
    %c0_245 = arith.constant 0 : index
    %c0_246 = arith.constant 0 : index
    %314 = vector.load %arg17[%c0_245, %c0_246] : memref<2x1xf32, #tpu.memory_space<vmem>>, vector<2x1xf32>
    tpu.vector_store %arg17[%c0_245, %c0_246], %313 {strides = array<i32>} : memref<2x1xf32, #tpu.memory_space<vmem>>, vector<2x1xf32>,
    return
  }
}

</mosaic_0001>

<bundles_post_ra>
// kernel: qnet_forward.1
= control target key start
LH: loop header
LB: loop body
LE: loop exit
PB: predicated region body
PF: predicated region fallthrough
CT: control target
= control target key end

     0   :  { %s13420_s0 = inlined_call_operand.vmem [shape: f32[4,290], index: 0, kind: input, shape index: {}]   ;;  %s13421_s1 = inlined_call_operand.hbm [shape: f32[2,128], index: 1, kind: input, shape index: {}]   ;;  %s13422_s2 = inlined_call_operand.hbm [shape: f32[1,256], index: 2, kind: input, shape index: {}]   ;;  %s13423_s3 = inlined_call_operand.vmem [shape: f32[9,32,4], index: 3, kind: input, shape index: {}]   ;;  %s13424_s4 = inlined_call_operand.vmem [shape: f32[32,1], index: 4, kind: input, shape index: {}]   ;;  %s13425_s5 = inlined_call_operand.vmem [shape: f32[9,64,32], index: 5, kind: input, shape index: {}]   ;;  %s13426_s6 = inlined_call_operand.vmem [shape: f32[64,1], index: 6, kind: input, shape index: {}]   ;;  %s13427_s7 = inlined_call_operand.hbm [shape: bf16[128,128], index: 7, kind: input, shape index: {}]   ;;  %s13428_s8 = inlined_call_operand.hbm [shape: f32[1,128], index: 8, kind: input, shape index: {}]   ;;  %s13429_s9 = inlined_call_operand.vmem [shape: bf16[128,32], index: 9, kind: input, shape index: {}]   ;;  %s13430_s10 = inlined_call_operand.hbm [shape: f32[1,32], index: 10, kind: input, shape index: {}]   ;;  %s13431_s11 = inlined_call_operand.hbm [shape: bf16[32,256,128], index: 11, kind: input, shape index: {}]   ;;  %s13432_s12 = inlined_call_operand.hbm [shape: bf16[32,128], index: 12, kind: input, shape index: {}]   ;;  %s13433_s13 = inlined_call_operand.hbm [shape: f32[1,128], index: 13, kind: input, shape index: {}]   ;;  %s13434_s14 = inlined_call_operand.vmem [shape: bf16[128,4], index: 14, kind: input, shape index: {}]   ;;  %s13435_s15 = inlined_call_operand.hbm [shape: f32[1,4], index: 15, kind: input, shape index: {}]   ;;  %s13436_s16 = inlined_call_operand.hbm [shape: f32[2,3], index: 16, kind: output, shape index: {0}]   ;;  %s13437_s17 = inlined_call_operand.vmem [shape: f32[2,1], index: 17, kind: output, shape index: {1}]  }
   0x1   :  { %13439 = sst [smem:[#allocation29_spill]] %s13420_s0 }
   0x2   :  { %13440 = sst [smem:[#allocation30_spill]] %s13421_s1 }
   0x3   :  { %23 = vsyncpa [#allocation4], 0 }
   0x4   :  { %24 = vsyncpa [#allocation7], 0 }
   0x5   :  { %25 = vsyncpa [#allocation10], 0 }
   0x6   :  { %26 = vsyncpa [#allocation13], 0 }
   0x7   :  { %27 = vsyncpa [#allocation16], 0 }
   0x8   :  { %28 = vsyncpa [#allocation5], 0  ;;  %s11672_s24 = smov [#allocation6]   ;;  %s11673_s26 = smov [#allocation9]  }
   0x9   :  { %s47_s25 = sshll.u32 %s11672_s24, 4  ;;  %s77_s27 = sshll.u32 %s11673_s26, 4  ;;  %s48_s25 = int_to_ptr.vmem [resolvable:$true] %s47_s25  ;;  %s78_s27 = int_to_ptr.vmem [resolvable:$true] %s77_s27 }
   0xa   :  { %s11468_s28 = scalar_lea.vmem %s48_s25, 32  ;;  %p11473_p1 = scmp.lt.s32.totalorder %s48_s25, %s48_s25 }
   0xb   :  { %p11469_p0 = scmp.ne.s32.totalorder %s48_s25, %s11468_s28  ;;  %p11474_p2 = scmp.lt.s32.totalorder %s11468_s28, %s11468_s28 }
   0xd   :  { %p11475_p3 = por %p11474_p2, %p11473_p1 }
   0xf   :  { %p11476_p4 = pnand %p11475_p3, %p11469_p0 }
  0x11   :  { %11479 = shalt.err (!%p11476_p4)
}
  0x12   :  { %50 = dma.hbm_to_vmem [thread:$0]  %s13422_s2, 32, %s48_s25, [#allocation7]  }
  0x13   :  { %s11488_s30 = scalar_lea.vmem %s78_s27, 16  ;;  %s11492_s18 = scalar_lea.vmem %s78_s27, 32 }
  0x14   :  { %p11489_p5 = scmp.ne.s32.totalorder %s78_s27, %s11488_s30  ;;  %p11493_p6 = scmp.lt.s32.totalorder %s78_s27, %s78_s27 }
  0x15   :  { %p11494_p7 = scmp.lt.s32.totalorder %s11492_s18, %s11488_s30 }
  0x17   :  { %p11495_p8 = por %p11494_p7, %p11493_p6 }
  0x19   :  { %p11496_p9 = pnand %p11495_p8, %p11489_p5 }
  0x1b   :  { %11499 = shalt.err (!%p11496_p9)
}
  0x1c   :  { %80 = dma.hbm_to_vmem [thread:$0]  %s13428_s8, 16, %s78_s27, [#allocation10]  }
  0x1d   :  { %s11674_s20 = smov [#allocation12]   ;;  %s11675_s22 = smov [#allocation15]  }
  0x1e   :  { %s98_s21 = sshll.u32 %s11674_s20, 4  ;;  %s123_s23 = sshll.u32 %s11675_s22, 4  ;;  %s99_s21 = int_to_ptr.vmem [resolvable:$true] %s98_s21  ;;  %s124_s23 = int_to_ptr.vmem [resolvable:$true] %s123_s23 }
  0x1f   :  { %s11508_s24 = scalar_lea.vmem %s99_s21, 65536  ;;  %p11513_p11 = scmp.lt.s32.totalorder %s99_s21, %s99_s21 }
  0x20   :  { %p11509_p10 = scmp.ne.s32.totalorder %s99_s21, %s11508_s24  ;;  %p11514_p12 = scmp.lt.s32.totalorder %s11508_s24, %s11508_s24 }
  0x22   :  { %p11515_p13 = por %p11514_p12, %p11513_p11 }
  0x24   :  { %p11516_p0 = pnand %p11515_p13, %p11509_p10 }
  0x26   :  { %11519 = shalt.err (!%p11516_p0)
}
  0x27   :  { %s11676_s2 = smov 64   ;;  %s11677_s25 = smov 4  }
  0x28   :  { %104 = dma.hbm_to_vmem [thread:$0]  %s13431_s11, 65536, %s99_s21, [#allocation13], %s11676_s2, %s11676_s2, %s11677_s25  }
  0x29   :  { %s11528_s27 = scalar_lea.vmem %s124_s23, 16  ;;  %s11532_s28 = scalar_lea.vmem %s124_s23, 32 }
  0x2a   :  { %p11529_p1 = scmp.ne.s32.totalorder %s124_s23, %s11528_s27  ;;  %p11533_p2 = scmp.lt.s32.totalorder %s124_s23, %s124_s23 }
  0x2b   :  { %p11534_p3 = scmp.lt.s32.totalorder %s11532_s28, %s11528_s27 }
  0x2d   :  { %p11535_p4 = por %p11534_p3, %p11533_p2 }
  0x2f   :  { %p11536_p5 = pnand %p11535_p4, %p11529_p1 }
  0x31   :  { %11539 = shalt.err (!%p11536_p5)
}
  0x32   :  { %126 = dma.hbm_to_vmem [thread:$0]  %s13433_s13, 16, %s124_s23, [#allocation16]  }
  0x33   :  { %s11678_s30 = smov [#allocation3]   ;;  %s11679_s19 = smov [#allocation8]  }
  0x34   :  { %s37_s18 = sshll.u32 %s11678_s30, 4  ;;  %s64_s1 = sshll.u32 %s11679_s19, 4  ;;  %s38_s18 = int_to_ptr.vmem [resolvable:$true] %s37_s18  ;;  %s65_s1 = int_to_ptr.vmem [resolvable:$true] %s64_s1 }
  0x35   :  { %s11548_s20 = scalar_lea.vmem %s38_s18, 32  ;;  %p11553_p7 = scmp.lt.s32.totalorder %s38_s18, %s38_s18 }
  0x36   :  { %p11549_p6 = scmp.ne.s32.totalorder %s38_s18, %s11548_s20  ;;  %p11554_p8 = scmp.lt.s32.totalorder %s11548_s20, %s11548_s20 }
  0x38   :  { %p11555_p9 = por %p11554_p8, %p11553_p7 }
  0x3a   :  { %p11556_p10 = pnand %p11555_p9, %p11549_p6 }
  0x3c   :  { %11559 = shalt.err (!%p11556_p10)
}
  0x3d   :  { %s13441_s22 = sld [smem:[#allocation30_spill]]  ;;  %s11568_s24 = scalar_lea.vmem %s65_s1, 1024 }
  0x3e   :  { %p11569_p11 = scmp.ne.s32.totalorder %s65_s1, %s11568_s24  ;;  %p11573_p12 = scmp.lt.s32.totalorder %s65_s1, %s65_s1 }
  0x3f   :  { %p11574_p13 = scmp.lt.s32.totalorder %s11568_s24, %s11568_s24 }
  0x41   :  { %p11575_p0 = por %p11574_p13, %p11573_p12 }
  0x43   :  { %40 = dma.hbm_to_vmem [thread:$0]  %s13441_s22, 32, %s38_s18, [#allocation4]  }
  0x44   :  { %p11576_p1 = pnand %p11575_p0, %p11569_p11 }
  0x46   :  { %11579 = shalt.err (!%p11576_p1)
}
  0x47   :  { %70 = dma.hbm_to_vmem [thread:$0]  %s13427_s7, 1024, %s65_s1, [#allocation7], %s11676_s2, %s11676_s2, %s11677_s25  }
  0x48   :  { %s11680_s26 = smov [#allocation11]   ;;  %s11681_s27 = smov [#allocation14]  }
  0x49   :  { %s89_s8 = sshll.u32 %s11680_s26, 4  ;;  %s110_s28 = sshll.u32 %s11681_s27, 4  ;;  %s90_s8 = int_to_ptr.vmem [resolvable:$true] %s89_s8  ;;  %s111_s28 = int_to_ptr.vmem [resolvable:$true] %s110_s28 }
  0x4a   :  { %s11588_s29 = scalar_lea.vmem %s90_s8, 16  ;;  %s11592_s0 = scalar_lea.vmem %s90_s8, 32 }
  0x4b   :  { %p11589_p2 = scmp.ne.s32.totalorder %s90_s8, %s11588_s29  ;;  %p11593_p3 = scmp.lt.s32.totalorder %s90_s8, %s90_s8 }
  0x4c   :  { %p11594_p4 = scmp.lt.s32.totalorder %s11592_s0, %s11588_s29 }
  0x4e   :  { %p11595_p5 = por %p11594_p4, %p11593_p3 }
  0x50   :  { %p11596_p6 = pnand %p11595_p5, %p11589_p2 }
  0x52   :  { %11599 = shalt.err (!%p11596_p6)
}
  0x53   :  { %92 = dma.hbm_to_vmem [thread:$0]  %s13430_s10, 16, %s90_s8, [#allocation10]  }
  0x54   :  { %s11608_s19 = scalar_lea.vmem %s111_s28, 256  ;;  %p11613_p8 = scmp.lt.s32.totalorder %s111_s28, %s111_s28 }
  0x55   :  { %p11609_p7 = scmp.ne.s32.totalorder %s111_s28, %s11608_s19  ;;  %p11614_p9 = scmp.lt.s32.totalorder %s11608_s19, %s11608_s19 }
  0x57   :  { %p11615_p10 = por %p11614_p9, %p11613_p8 }
  0x59   :  { %p11616_p11 = pnand %p11615_p10, %p11609_p7 }
  0x5b   :  { %11619 = shalt.err (!%p11616_p11)
}
  0x5c   :  { %116 = dma.hbm_to_vmem [thread:$0]  %s13432_s12, 256, %s111_s28, [#allocation13], %s11676_s2, %s11676_s2, %s11677_s25  }
  0x5d   :  { %s11682_s20 = smov [#allocation17]  }
  0x5e   :  { %s135_s11 = sshll.u32 %s11682_s20, 4  ;;  %s136_s11 = int_to_ptr.vmem [resolvable:$true] %s135_s11 }
  0x5f   :  { %s11628_s21 = scalar_lea.vmem %s136_s11, 16  ;;  %s11632_s10 = scalar_lea.vmem %s136_s11, 32 }
  0x60   :  { %p11629_p12 = scmp.ne.s32.totalorder %s136_s11, %s11628_s21  ;;  %p11633_p13 = scmp.lt.s32.totalorder %s136_s11, %s136_s11 }
  0x61   :  { %p11634_p0 = scmp.lt.s32.totalorder %s11632_s10, %s11628_s21 }
  0x63   :  { %p11635_p1 = por %p11634_p0, %p11633_p13 }
  0x65   :  { %p11636_p2 = pnand %p11635_p1, %p11629_p12 }
  0x67   :  { %11639 = shalt.err (!%p11636_p2)
}
  0x68   :  { %138 = dma.hbm_to_vmem [thread:$0]  %s13435_s15, 16, %s136_s11, [#allocation16]  }
  0x69   :  { %11660 = dma.done.wait [#allocation4], 32  }
  0x6a   :  { %11661 = vsyncadd [#allocation4], 4294967264 }
  0x6b   :  { %11662 = dma.done.wait [#allocation7], 1056  }
  0x6c   :  { %11663 = vsyncadd [#allocation7], 4294966240 }
  0x6d   :  { %11664 = dma.done.wait [#allocation10], 32  }
  0x6e   :  { %11665 = vsyncadd [#allocation10], 4294967264 }
  0x6f   :  { %11666 = dma.done.wait [#allocation13], 65792  }
  0x70   :  { %11667 = vsyncadd [#allocation13], 4294901504 }
  0x71   :  { %11668 = dma.done.wait [#allocation16], 32  }
  0x72   :  { %11669 = vsyncadd [#allocation16], 4294967264  ;;  %v11683_v0 = vmov 0.0   ;;  %s13442_s2 = sld [smem:[#allocation29_spill]]  ;;  %s11684_s25 = smov 127   ;;  %v1330_v11 = vld [vmem:[%s13424_s4 + $0x18] sm:$0xff] }
  0x73   :  { %279 = vmatprep.mubr.f32.mxu1 %v11683_v0  ;;  %1386 = vst [vmem:[#allocation2] sm:$0xff] %v11683_v0  ;;  %1390 = vst [vmem:[#allocation2 + $0x18] sm:$0xff] %v11683_v0  ;;  %273 = vmatprep.mubr.f32.mxu0 %v11683_v0  ;;  %s11685_s26 = smov 126   ;;  %s11686_s0 = smov 112   ;;  %v1329_v12 = vld [vmem:[%s13424_s4 + $0x10] sm:$0xff]  ;;  %v11692_v13 = vmov 0  }
  0x74   :  { %1393 = vst [vmem:[#allocation2 + $0x30] sm:$0xff] %v11683_v0  ;;  %1396 = vst [vmem:[#allocation2 + $0x48] sm:$0xff] %v11683_v0  ;;  %s11687_s30 = smov 111   ;;  %s11688_s20 = smov 110   ;;  %10913 = vset.pattern.permute.xlu0 %v11692_v13  ;;  %10914 = vset.pattern.permute.xlu1 %v11692_v13  ;;  %v1327_v14 = vld [vmem:[%s13424_s4] sm:$0xff]  ;;  %v1328_v15 = vld [vmem:[%s13424_s4 + $0x8] sm:$0xff] }
  0x75   :  { %s11689_s11 = smov 96   ;;  %s11690_s12 = smov 95   ;;  %vm188_vm0 = vcmask 1039360   ;;  %vm204_vm1 = vcmask 1043456   ;;  %vm191_vm2 = vcmask 31744   ;;  %vm419_vm3 = vcmask 1031168  }
  0x76   :  { %s11691_s15 = smov 94   ;;  %vm551_vm4 = vcmask 916480   ;;  %v9320_v19 = vld [vmem:[%s13423_s3 + $0x28] sm:$0xff]  ;;  %v9319_v20 = vld [vmem:[%s13423_s3 + $0x20] sm:$0xff]  ;;  %v9321_v25 = vld [vmem:[%s13423_s3 + $0x30] sm:$0xff]  ;;  %vm683_vm5 = vcmask 908288  }
  0x77   :  { %v9335_v26 = vld [vmem:[%s13423_s3 + $0x40] sm:$0xff]  ;;  %v9322_v31 = vld [vmem:[%s13423_s3 + $0x38] sm:$0xff]  ;;  %v9336_v32 = vld [vmem:[%s13423_s3 + $0x48] sm:$0xff]  ;;  %vm815_vm6 = vcmask 900096   ;;  %vm947_vm7 = vcmask 785408   ;;  %vm1079_vm8 = vcmask 777216  }
  0x78   :  { %v11832_v1 = vld [vmem:[%s13442_s2] sm:$0xff]  ;;  %v173_v3 = vld [vmem:[%s13442_s2 + $0x8] sm:$0xf]  ;;  %v9337_v37 = vld [vmem:[%s13423_s3 + $0x50] sm:$0xff]  ;;  %vm1211_vm9 = vcmask 769024   ;;  %vm1388_vm10 = vcmask 277504  }
  0x79   :  { %182 = vrot.lane.b32.xlu1 %v11832_v1, %s11684_s25  ;;  %v11838_v2 = vcombine.high %v11832_v1, %v11832_v1  ;;  %v404_v4 = vld [vmem:[%s13442_s2 + $0x8] sm:$0xf]  ;;  %v169_v36 = vld [vmem:[%s13423_s3] sm:$0xff]  ;;  %v9338_v42 = vld [vmem:[%s13423_s3 + $0x58] sm:$0xff]  ;;  %vm1440_vm11 = vcmask 1047688   ;;  %vm1423_vm12 = vcmask 138240  }
  0x7a   :  { %v536_v5 = vld [vmem:[%s13442_s2 + $0x8] sm:$0xf]  ;;  %v171_v47 = vld [vmem:[%s13423_s3 + $0x10] sm:$0xff]  ;;  %v9355_v48 = vld [vmem:[%s13423_s3 + $0x80] sm:$0xff]  ;;  %vm1534_vm13 = vcmask 261120   ;;  %vm11694_vm14 = vmmov 0  }
  0x7b   :  { %184 = vrot.lane.b32.xlu0 %v11838_v2, %s11684_s25  ;;  %v668_v6 = vld [vmem:[%s13442_s2 + $0x8] sm:$0xf]  ;;  %v172_v52 = vld [vmem:[%s13423_s3 + $0x18] sm:$0xff]  ;;  %v12002_v55 = vld [vmem:[#allocation2] sm:$0xff]  ;;  %vm9277_vm15 = vcmask 17408   ;;  %s11696_s21 = smov [#allocation18]  }
  0x7c   :  { %v800_v7 = vld [vmem:[%s13442_s2 + $0x8] sm:$0xf]  ;;  %v9345_v57 = vld [vmem:[%s13423_s3 + $0x60] sm:$0xff]  ;;  %v9357_v58 = vld [vmem:[%s13423_s3 + $0x90] sm:$0xff]  ;;  %s9302_s10 = sshll.u32 %s11696_s21, 4  ;;  %s9303_s10 = int_to_ptr.vmem [resolvable:$true] %s9302_s10 }
  0x7d   :  { %415 = vrot.lane.b32.xlu1 %v11838_v2, %s11685_s26  ;;  %v932_v8 = vld [vmem:[%s13442_s2 + $0x8] sm:$0xf]  ;;  %s11640_s22 = scalar_lea.vmem %s9303_s10, 32  ;;  %p11645_p4 = scmp.lt.s32.totalorder %s9303_s10, %s9303_s10 }
  0x7e   :  { %v1064_v9 = vld [vmem:[%s13442_s2 + $0x8] sm:$0xf]  ;;  %p11641_p3 = scmp.ne.s32.totalorder %s9303_s10, %s11640_s22  ;;  %p11646_p5 = scmp.lt.s32.totalorder %s11640_s22, %s11640_s22 }
  0x7f   :  { %186 = vrot.lane.b32.xlu0 %v173_v3, %s11684_s25  ;;  %v1196_v10 = vld [vmem:[%s13442_s2 + $0x8] sm:$0xf] }
  0x80   :  { %v170_v41 = vld [vmem:[%s13423_s3 + $0x8] sm:$0xff]  ;;  %p11647_p6 = por %p11646_p5, %p11645_p4 }
  0x81   :  { %413 = vrot.lane.b32.xlu1 %v11832_v1, %s11685_s26  ;;  %v9356_v53 = vld [vmem:[%s13423_s3 + $0x88] sm:$0xff] }
  0x82   :  { %p11648_p7 = pnand %p11647_p6, %p11641_p3 }
  0x83   :  { %417 = vrot.lane.b32.xlu0 %v404_v4, %s11685_s26 }
  0x85   :  { %549 = vrot.lane.b32.xlu1 %v536_v5, %s11686_s0  ;;  %v9347_v5 = vld [vmem:[%s13423_s3 + $0x70] sm:$0xff] }
  0x87   :  { %547 = vrot.lane.b32.xlu0 %v11838_v2, %s11686_s0 }
  0x89   :  { %679 = vrot.lane.b32.xlu1 %v11838_v2, %s11687_s30 }
  0x8b   :  { %545 = vrot.lane.b32.xlu0 %v11832_v1, %s11686_s0 }
  0x8d   :  { %677 = vrot.lane.b32.xlu1 %v11832_v1, %s11687_s30 }
  0x8f   :  { %681 = vrot.lane.b32.xlu0 %v668_v6, %s11687_s30  ;;  %v9375_v6 = vld [vmem:[%s13423_s3 + $0xc0] sm:$0xff] }
  0x91   :  { %813 = vrot.lane.b32.xlu1 %v800_v7, %s11688_s20 }
  0x93   :  { %811 = vrot.lane.b32.xlu0 %v11838_v2, %s11688_s20 }
  0x95   :  { %943 = vrot.lane.b32.xlu1 %v11838_v2, %s11689_s11 }
  0x97   :  { %809 = vrot.lane.b32.xlu0 %v11832_v1, %s11688_s20 }
  0x99   :  { %941 = vrot.lane.b32.xlu1 %v11832_v1, %s11689_s11 }
  0x9b   :  { %945 = vrot.lane.b32.xlu0 %v932_v8, %s11689_s11 }
  0x9d   :  { %1077 = vrot.lane.b32.xlu1 %v1064_v9, %s11690_s12  ;;  %v9348_v9 = vld [vmem:[%s13423_s3 + $0x78] sm:$0xff] }
  0x9f   :  { %1075 = vrot.lane.b32.xlu0 %v11838_v2, %s11690_s12 }
  0xa1   :  { %1207 = vrot.lane.b32.xlu1 %v11838_v2, %s11691_s15 }
  0xa3   :  { %1073 = vrot.lane.b32.xlu0 %v11832_v1, %s11690_s12 }
  0xa5   :  { %1205 = vrot.lane.b32.xlu1 %v11832_v1, %s11691_s15 }
  0xa7   :  { %1209 = vrot.lane.b32.xlu0 %v1196_v10, %s11691_s15  ;;  %v9376_v10 = vld [vmem:[%s13423_s3 + $0xc8] sm:$0xff] }
  0xa9   :  { %1343 = vperm.xlu1 %10914, %v1329_v12  }
  0xab   :  { %1348 = vperm.xlu0 %10913, %v1330_v11  }
  0xad   :  { %1338 = vperm.xlu1 %10914, %v1328_v15   ;;  %v9377_v15 = vld [vmem:[%s13423_s3 + $0xd0] sm:$0xff] }
  0xaf   :  { %1333 = vperm.xlu0 %10913, %v1327_v14   ;;  %v9365_v14 = vld [vmem:[%s13423_s3 + $0xa0] sm:$0xff] }
  0xeb   :  { %v183_v16 = vpop.permute.xlu1 %182 }
  0xed   :  { %v185_v17 = vpop.permute.xlu0 %184 }
  0xee   :  { %v189_v23 = vsel %vm188_vm0, %v183_v16, %v185_v17 }
  0xef   :  { %v416_v18 = vpop.permute.xlu1 %415 }
  0xf1   :  { %v187_v21 = vpop.permute.xlu0 %186 }
  0xf2   :  { %v190_v22 = vsel %vm188_vm0, %v185_v17, %v187_v21  ;;  %v9366_v17 = vld [vmem:[%s13423_s3 + $0xa8] sm:$0xff]  ;;  %v9368_v21 = vld [vmem:[%s13423_s3 + $0xb8] sm:$0xff] }
  0xf3   :  { %9323 = vmatprep.subr.msk.mxu0 %vm204_vm1, %v190_v22  ;;  %10886 = vmatprep.subr.msk.mxu1 %vm204_vm1, %v190_v22  ;;  %v414_v24 = vpop.permute.xlu1 %413  ;;  %v9396_v22 = vld [vmem:[%s13423_s3 + $0x108] sm:$0xff] }
  0xf4   :  { %9324 = vmatpush1.msk.msra.mxu0 %vm204_vm1, %v189_v23  ;;  %10887 = vmatpush1.msk.msra.mxu1 %vm204_vm1, %v189_v23  ;;  %v420_v28 = vsel %vm419_vm3, %v414_v24, %v416_v18  ;;  %v9385_v23 = vld [vmem:[%s13423_s3 + $0xe0] sm:$0xff]  ;;  %v9397_v24 = vld [vmem:[%s13423_s3 + $0x110] sm:$0xff] }
  0xf5   :  { %9326 = vmatmul.mubr.msk.f32.vlgmr.msra.gmra.mxu1 %vm191_vm2, %v9320_v19  ;;  %v418_v27 = vpop.permute.xlu0 %417  ;;  %9325 = vmatmul.mubr.msk.f32.vlgmr.msra.gmra.mxu0 %vm191_vm2, %v9319_v20  ;;  %v9367_v19 = vld [vmem:[%s13423_s3 + $0xb0] sm:$0xff]  ;;  %v9395_v20 = vld [vmem:[%s13423_s3 + $0x100] sm:$0xff] }
  0xf6   :  { %285 = vmatprep.mubr.f32.mxu1 %v11683_v0  ;;  %v421_v29 = vsel %vm419_vm3, %v416_v18, %v418_v27  ;;  %9329 = vmatprep.subr.msk.mxu1 %vm204_vm1, %v11838_v2  ;;  %v9378_v18 = vld [vmem:[%s13423_s3 + $0xd8] sm:$0xff]  ;;  %v9387_v27 = vld [vmem:[%s13423_s3 + $0xf0] sm:$0xff] }
  0xf7   :  { %9339 = vmatprep.subr.msk.mxu0 %vm204_vm1, %v421_v29  ;;  %9330 = vmatpush1.msk.msra.mxu1 %vm204_vm1, %v11832_v1  ;;  %v550_v30 = vpop.permute.xlu1 %549  ;;  %v9358_v1 = vld [vmem:[%s13423_s3 + $0x98] sm:$0xff] }
  0xf8   :  { %9340 = vmatpush1.msk.msra.mxu0 %vm204_vm1, %v420_v28  ;;  %502 = vmatprep.mubr.f32.mxu0 %v11683_v0  ;;  %v9388_v28 = vld [vmem:[%s13423_s3 + $0xf8] sm:$0xff] }
  0xf9   :  { %9327 = vmatmul.mubr.msk.f32.gmra.mxu1 %vm191_vm2, %v9321_v25  ;;  %9341 = vmatmul.mubr.msk.f32.vlgmr.msra.gmra.mxu0 %vm191_vm2, %v9335_v26  ;;  %v548_v33 = vpop.permute.xlu0 %547  ;;  %v9386_v25 = vld [vmem:[%s13423_s3 + $0xe8] sm:$0xff]  ;;  %v9398_v26 = vld [vmem:[%s13423_s3 + $0x118] sm:$0xff] }
  0xfa   :  { %291 = vmatprep.mubr.f32.mxu1 %v11683_v0  ;;  %v553_v34 = vsel %vm551_vm4, %v548_v33, %v550_v30  ;;  %508 = vmatprep.mubr.f32.mxu0 %v11683_v0 }
  0xfb   :  { %v680_v35 = vpop.permute.xlu1 %679  ;;  %9349 = vmatprep.subr.msk.mxu1 %vm204_vm1, %v553_v34 }
  0xfd   :  { %9328 = vmatmul.mubr.msk.f32.gmra.mxu1 %vm191_vm2, %v9322_v31  ;;  %9342 = vmatmul.mubr.msk.f32.gmra.mxu0 %vm191_vm2, %v9336_v32  ;;  %v546_v38 = vpop.permute.xlu0 %545 }
  0xfe   :  { %378 = vmatprep.mubr.f32.mxu1 %v11683_v0  ;;  %514 = vmatprep.mubr.f32.mxu0 %v11683_v0  ;;  %v552_v39 = vsel %vm551_vm4, %v546_v38, %v548_v33 }
  0xff   :  { %v678_v40 = vpop.permute.xlu1 %677 }
 0x100   :  { %v684_v44 = vsel %vm683_vm5, %v678_v40, %v680_v35 }
 0x101   :  { %9331 = vmatmul.mubr.msk.f32.vlgmr.msra.gmra.mxu1 %vm191_vm2, %v169_v36  ;;  %9343 = vmatmul.mubr.msk.f32.gmra.mxu0 %vm191_vm2, %v9337_v37  ;;  %v682_v43 = vpop.permute.xlu0 %681 }
 0x102   :  { %384 = vmatprep.mubr.f32.mxu1 %v11683_v0  ;;  %9350 = vmatpush1.msk.msra.mxu1 %vm204_vm1, %v552_v39  ;;  %v685_v45 = vsel %vm683_vm5, %v680_v35, %v682_v43 }
 0x103   :  { %520 = vmatprep.mubr.f32.mxu0 %v11683_v0  ;;  %9359 = vmatprep.subr.msk.mxu0 %vm204_vm1, %v685_v45  ;;  %v814_v46 = vpop.permute.xlu1 %813 }
 0x104   :  { %9360 = vmatpush1.msk.msra.mxu0 %vm204_vm1, %v684_v44 }
 0x105   :  { %9332 = vmatmul.mubr.msk.f32.gmra.mxu1 %vm191_vm2, %v170_v41  ;;  %9344 = vmatmul.mubr.msk.f32.gmra.mxu0 %vm191_vm2, %v9338_v42  ;;  %v812_v49 = vpop.permute.xlu0 %811 }
 0x106   :  { %390 = vmatprep.mubr.f32.mxu1 %v11683_v0  ;;  %766 = vmatprep.mubr.f32.mxu0 %v11683_v0  ;;  %v817_v50 = vsel %vm815_vm6, %v812_v49, %v814_v46  ;;  %v9346_v0 = vld [vmem:[%s13423_s3 + $0x68] sm:$0xff]  ;;  %s11693_s3 = smov 17  }
 0x107   :  { %v944_v51 = vpop.permute.xlu1 %943  ;;  %9369 = vmatprep.subr.msk.mxu1 %vm204_vm1, %v817_v50 }
 0x109   :  { %9333 = vmatmul.mubr.msk.f32.gmra.mxu1 %vm191_vm2, %v171_v47  ;;  %9361 = vmatmul.mubr.msk.f32.vlgmr.msra.gmra.mxu0 %vm191_vm2, %v9355_v48  ;;  %v810_v54 = vpop.permute.xlu0 %809 }
 0x10a   :  { %396 = vmatprep.mubr.f32.mxu1 %v12002_v55  ;;  %772 = vmatprep.mubr.f32.mxu0 %v12002_v55  ;;  %v816_v62 = vsel %vm815_vm6, %v810_v54, %v812_v49 }
 0x10b   :  { %v942_v56 = vpop.permute.xlu1 %941 }
 0x10c   :  { %v948_v60 = vsel %vm947_vm7, %v942_v56, %v944_v51 }
 0x10d   :  { %9334 = vmatmul.mubr.msk.f32.gmra.mxu1 %vm191_vm2, %v172_v52  ;;  %9362 = vmatmul.mubr.msk.f32.gmra.mxu0 %vm191_vm2, %v9356_v53  ;;  %v946_v59 = vpop.permute.xlu0 %945 }
 0x10e   :  { %634 = vmatprep.mubr.f32.mxu1 %v12002_v55  ;;  %778 = vmatprep.mubr.f32.mxu0 %v12002_v55  ;;  %v949_v61 = vsel %vm947_vm7, %v944_v51, %v946_v59 }
 0x10f   :  { %9379 = vmatprep.subr.msk.mxu0 %vm204_vm1, %v949_v61  ;;  %v1078_v63 = vpop.permute.xlu1 %1077 }
 0x110   :  { %9380 = vmatpush1.msk.msra.mxu0 %vm204_vm1, %v948_v60 }
 0x111   :  { %9351 = vmatmul.mubr.msk.f32.vlgmr.msra.gmra.mxu1 %vm191_vm2, %v9345_v57  ;;  %9363 = vmatmul.mubr.msk.f32.gmra.mxu0 %vm191_vm2, %v9357_v58  ;;  %v1076_v2 = vpop.permute.xlu0 %1075 }
 0x112   :  { %640 = vmatprep.mubr.f32.mxu1 %v12002_v55  ;;  %9370 = vmatpush1.msk.msra.mxu1 %vm204_vm1, %v816_v62  ;;  %v1081_v3 = vsel %vm1079_vm8, %v1076_v2, %v1078_v63 }
 0x113   :  { %784 = vmatprep.mubr.f32.mxu0 %v12002_v55  ;;  %v1208_v4 = vpop.permute.xlu1 %1207  ;;  %9389 = vmatprep.subr.msk.mxu1 %vm204_vm1, %v1081_v3 }
 0x115   :  { %9352 = vmatmul.mubr.msk.f32.gmra.mxu1 %vm191_vm2, %v9346_v0  ;;  %9364 = vmatmul.mubr.msk.f32.gmra.mxu0 %vm191_vm2, %v9358_v1  ;;  %v1074_v7 = vpop.permute.xlu0 %1073 }
 0x116   :  { %646 = vmatprep.mubr.f32.mxu1 %v12002_v55  ;;  %1030 = vmatprep.mubr.f32.mxu0 %v12002_v55  ;;  %v1080_v16 = vsel %vm1079_vm8, %v1074_v7, %v1076_v2 }
 0x117   :  { %v1206_v8 = vpop.permute.xlu1 %1205 }
 0x118   :  { %v1212_v12 = vsel %vm1211_vm9, %v1206_v8, %v1208_v4 }
 0x119   :  { %9353 = vmatmul.mubr.msk.f32.gmra.mxu1 %vm191_vm2, %v9347_v5  ;;  %9381 = vmatmul.mubr.msk.f32.vlgmr.msra.gmra.mxu0 %vm191_vm2, %v9375_v6  ;;  %v1210_v11 = vpop.permute.xlu0 %1209 }
 0x11a   :  { %652 = vmatprep.mubr.f32.mxu1 %v12002_v55  ;;  %1036 = vmatprep.mubr.f32.mxu0 %v12002_v55  ;;  %v1213_v13 = vsel %vm1211_vm9, %v1208_v4, %v1210_v11 }
 0x11b   :  { %9399 = vmatprep.subr.msk.mxu0 %vm204_vm1, %v1213_v13 }
 0x11c   :  { %9400 = vmatpush1.msk.msra.mxu0 %vm204_vm1, %v1212_v12 }
 0x11d   :  { %9354 = vmatmul.mubr.msk.f32.gmra.mxu1 %vm191_vm2, %v9348_v9  ;;  %9382 = vmatmul.mubr.msk.f32.gmra.mxu0 %vm191_vm2, %v9376_v10 }
 0x11e   :  { %898 = vmatprep.mubr.f32.mxu1 %v12002_v55  ;;  %1042 = vmatprep.mubr.f32.mxu0 %v12002_v55 }
 0x121   :  { %9371 = vmatmul.mubr.msk.f32.vlgmr.msra.gmra.mxu1 %vm191_vm2, %v9365_v14  ;;  %9383 = vmatmul.mubr.msk.f32.gmra.mxu0 %vm191_vm2, %v9377_v15 }
 0x122   :  { %904 = vmatprep.mubr.f32.mxu1 %v12002_v55  ;;  %9390 = vmatpush1.msk.msra.mxu1 %vm204_vm1, %v1080_v16 }
 0x123   :  { %1048 = vmatprep.mubr.f32.mxu0 %v12002_v55 }
 0x125   :  { %9372 = vmatmul.mubr.msk.f32.gmra.mxu1 %vm191_vm2, %v9366_v17  ;;  %9384 = vmatmul.mubr.msk.f32.gmra.mxu0 %vm191_vm2, %v9378_v18 }
 0x126   :  { %910 = vmatprep.mubr.f32.mxu1 %v12002_v55  ;;  %1294 = vmatprep.mubr.f32.mxu0 %v12002_v55 }
 0x129   :  { %9373 = vmatmul.mubr.msk.f32.gmra.mxu1 %vm191_vm2, %v9367_v19  ;;  %9401 = vmatmul.mubr.msk.f32.vlgmr.msra.gmra.mxu0 %vm191_vm2, %v9395_v20 }
 0x12a   :  { %916 = vmatprep.mubr.f32.mxu1 %v12002_v55  ;;  %1300 = vmatprep.mubr.f32.mxu0 %v12002_v55 }
 0x12d   :  { %9374 = vmatmul.mubr.msk.f32.gmra.mxu1 %vm191_vm2, %v9368_v21  ;;  %9402 = vmatmul.mubr.msk.f32.gmra.mxu0 %vm191_vm2, %v9396_v22 }
 0x12e   :  { %1162 = vmatprep.mubr.f32.mxu1 %v12002_v55  ;;  %1306 = vmatprep.mubr.f32.mxu0 %v12002_v55 }
 0x131   :  { %9391 = vmatmul.mubr.msk.f32.vlgmr.msra.gmra.mxu1 %vm191_vm2, %v9385_v23  ;;  %9403 = vmatmul.mubr.msk.f32.gmra.mxu0 %vm191_vm2, %v9397_v24 }
 0x132   :  { %1168 = vmatprep.mubr.f32.mxu1 %v12002_v55  ;;  %1312 = vmatprep.mubr.f32.mxu0 %v12002_v55 }
 0x135   :  { %9392 = vmatmul.mubr.msk.f32.gmra.mxu1 %vm191_vm2, %v9386_v25  ;;  %9404 = vmatmul.mubr.msk.f32.gmra.mxu0 %vm191_vm2, %v9398_v26 }
 0x136   :  { %1174 = vmatprep.mubr.f32.mxu1 %v12002_v55  ;;  %1760 = vmatprep.mubr.f32.mxu0 %v12002_v55 }
 0x139   :  { %9393 = vmatmul.mubr.msk.f32.gmra.mxu1 %vm191_vm2, %v9387_v27 }
 0x13a   :  { %1180 = vmatprep.mubr.f32.mxu1 %v12002_v55 }
 0x13d   :  { %9394 = vmatmul.mubr.msk.f32.gmra.mxu1 %vm191_vm2, %v9388_v28 }
 0x13e   :  { %1623 = vmatprep.mubr.f32.mxu1 %v12002_v55 }
 0x1b5   :  { %v281_v29 = vpop.f32.mrf.mxu1  ;;  %v275_v30 = vpop.f32.mrf.mxu0 }
 0x1b7   :  { %v283_v31 = vpop.f32.mrf.mxu1  ;;  %v277_v32 = vpop.f32.mrf.mxu0 }
 0x1b9   :  { %v287_v33 = vpop.f32.mrf.mxu1  ;;  %v12134_v34 = vpop.f32.mrf.mxu0 }
 0x1bb   :  { %v289_v35 = vpop.f32.mrf.mxu1  ;;  %v12136_v36 = vpop.f32.mrf.mxu0 }
 0x1bd   :  { %v293_v37 = vpop.f32.mrf.mxu1  ;;  %v510_v38 = vpop.f32.mrf.mxu0 }
 0x1bf   :  { %v295_v39 = vpop.f32.mrf.mxu1  ;;  %v512_v40 = vpop.f32.mrf.mxu0 }
 0x1c1   :  { %v380_v41 = vpop.f32.mrf.mxu1  ;;  %v516_v42 = vpop.f32.mrf.mxu0 }
 0x1c2   :  { %v381_v23 = vadd.f32 %v380_v41, %v275_v30 }
 0x1c3   :  { %v382_v43 = vpop.f32.mrf.mxu1  ;;  %v518_v44 = vpop.f32.mrf.mxu0 }
 0x1c5   :  { %v386_v45 = vpop.f32.mrf.mxu1  ;;  %v522_v46 = vpop.f32.mrf.mxu0 }
 0x1c6   :  { %v387_v15 = vadd.f32 %v386_v45, %v281_v29 }
 0x1c7   :  { %v388_v47 = vpop.f32.mrf.mxu1  ;;  %v12138_v48 = vpop.f32.mrf.mxu0 }
 0x1c8   :  { %v389_v19 = vadd.f32 %v388_v47, %v283_v31  ;;  %v529_v24 = vadd.f32 %v510_v38, %v387_v15  ;;  %v527_v47 = vadd.f32 %v12134_v34, %v381_v23  ;;  %v12175_v15 = vld [vmem:[#allocation2] sm:$0xff] }
 0x1c9   :  { %v392_v49 = vpop.f32.mrf.mxu1  ;;  %v12140_v50 = vpop.f32.mrf.mxu0  ;;  %1395 = vst.msk [vmem:[#allocation2 + $0x40] sm:$0xff] %vm1388_vm10, %v12175_v15  ;;  %1389 = vst.msk [vmem:[#allocation2 + $0x10] sm:$0xff] %vm1388_vm10, %v12175_v15 }
 0x1ca   :  { %v393_v18 = vadd.f32 %v392_v49, %v287_v33  ;;  %1392 = vst.msk [vmem:[#allocation2 + $0x28] sm:$0xff] %vm1388_vm10, %v12175_v15  ;;  %1398 = vst.msk [vmem:[#allocation2 + $0x58] sm:$0xff] %vm1388_vm10, %v12175_v15 }
 0x1cb   :  { %v394_v51 = vpop.f32.mrf.mxu1  ;;  %v12142_v52 = vpop.f32.mrf.mxu0 }
 0x1cc   :  { %v395_v22 = vadd.f32 %v394_v51, %v289_v35  ;;  %v531_v27 = vadd.f32 %v516_v42, %v393_v18 }
 0x1cd   :  { %v398_v53 = vpop.f32.mrf.mxu1  ;;  %v774_v54 = vpop.f32.mrf.mxu0 }
 0x1ce   :  { %v399_v28 = vadd.f32 %v398_v53, %v293_v37 }
 0x1cf   :  { %v400_v55 = vpop.f32.mrf.mxu1  ;;  %v776_v56 = vpop.f32.mrf.mxu0 }
 0x1d0   :  { %v401_v33 = vadd.f32 %v400_v55, %v295_v39  ;;  %v533_v30 = vadd.f32 %v522_v46, %v399_v28 }
 0x1d1   :  { %v636_v57 = vpop.f32.mrf.mxu1  ;;  %v780_v58 = vpop.f32.mrf.mxu0 }
 0x1d2   :  { %v659_v51 = vadd.f32 %v636_v57, %v527_v47 }
 0x1d3   :  { %v638_v59 = vpop.f32.mrf.mxu1  ;;  %v782_v60 = vpop.f32.mrf.mxu0 }
 0x1d4   :  { %v791_v46 = vadd.f32 %v12140_v50, %v659_v51 }
 0x1d5   :  { %v642_v61 = vpop.f32.mrf.mxu1  ;;  %v12144_v62 = vpop.f32.mrf.mxu0 }
 0x1d7   :  { %v644_v63 = vpop.f32.mrf.mxu1  ;;  %v12146_v0 = vpop.f32.mrf.mxu0 }
 0x1d9   :  { %v648_v1 = vpop.f32.mrf.mxu1  ;;  %v12148_v2 = vpop.f32.mrf.mxu0 }
 0x1da   :  { %13443 = vst [vmem:[#allocation25_spill] sm:$0xff] %v12148_v2  ;;  %v530_v2 = vadd.f32 %v512_v40, %v389_v19  ;;  %v663_v31 = vadd.f32 %v648_v1, %v531_v27  ;;  %v534_v40 = vadd.f32 %v12138_v48, %v401_v33 }
 0x1db   :  { %v650_v3 = vpop.f32.mrf.mxu1  ;;  %v12150_v4 = vpop.f32.mrf.mxu0 }
 0x1dc   :  { %13444 = vst [vmem:[#allocation26_spill] sm:$0xff] %v12150_v4  ;;  %v383_v4 = vadd.f32 %v382_v43, %v277_v32  ;;  %v662_v49 = vadd.f32 %v644_v63, %v530_v2  ;;  %v795_v43 = vadd.f32 %v780_v58, %v663_v31 }
 0x1dd   :  { %v654_v5 = vpop.f32.mrf.mxu1  ;;  %v1038_v6 = vpop.f32.mrf.mxu0 }
 0x1de   :  { %v528_v41 = vadd.f32 %v12136_v36, %v383_v4  ;;  %v665_v53 = vadd.f32 %v654_v5, %v533_v30  ;;  %v794_v39 = vadd.f32 %v776_v56, %v662_v49 }
 0x1df   :  { %v656_v7 = vpop.f32.mrf.mxu1  ;;  %v12152_v8 = vpop.f32.mrf.mxu0 }
 0x1e0   :  { %v666_v63 = vadd.f32 %v656_v7, %v534_v40 }
 0x1e1   :  { %v900_v9 = vpop.f32.mrf.mxu1  ;;  %v1044_v10 = vpop.f32.mrf.mxu0 }
 0x1e2   :  { %v923_v58 = vadd.f32 %v900_v9, %v791_v46  ;;  %v798_v56 = vadd.f32 %v12146_v0, %v666_v63 }
 0x1e3   :  { %v12154_v11 = vpop.f32.mrf.mxu1  ;;  %v12156_v12 = vpop.f32.mrf.mxu0 }
 0x1e5   :  { %v906_v13 = vpop.f32.mrf.mxu1  ;;  %v12158_v14 = vpop.f32.mrf.mxu0 }
 0x1e6   :  { %13445 = vst [vmem:[#allocation27_spill] sm:$0xff] %v12158_v14  ;;  %v661_v14 = vadd.f32 %v642_v61, %v529_v24  ;;  %v1368_v61 = vlaneseq }
 0x1e7   :  { %v908_v16 = vpop.f32.mrf.mxu1  ;;  %v12160_v17 = vpop.f32.mrf.mxu0 }
 0x1e8   :  { %13446 = vst [vmem:[#allocation28_spill] sm:$0xff] %v12160_v17  ;;  %v532_v17 = vadd.f32 %v518_v44, %v395_v22  ;;  %v793_v42 = vadd.f32 %v774_v54, %v661_v14  ;;  %v660_v44 = vadd.f32 %v638_v59, %v528_v41  ;;  %v797_v54 = vadd.f32 %v12144_v62, %v665_v53 }
 0x1e9   :  { %v912_v20 = vpop.f32.mrf.mxu1  ;;  %v12162_v21 = vpop.f32.mrf.mxu0  ;;  %v1369_v14 = vshrl.u32 %v1368_v61, 7 }
 0x1ea   :  { %v664_v38 = vadd.f32 %v650_v3, %v532_v17  ;;  %v925_v55 = vadd.f32 %v906_v13, %v793_v42  ;;  %v927_v2 = vadd.f32 %v912_v20, %v795_v43  ;;  %v926_v3 = vadd.f32 %v908_v16, %v794_v39  ;;  %v1344_v13 = vpop.permute.xlu1 %1343  ;;  %v13447_v17 = vld [vmem:[#allocation25_spill] sm:$0xff] }
 0x1eb   :  { %v914_v25 = vpop.f32.mrf.mxu1  ;;  %v12164_v26 = vpop.f32.mrf.mxu0  ;;  %v792_v48 = vadd.f32 %v12142_v52, %v660_v44  ;;  %v1055_v18 = vadd.f32 %v13447_v17, %v923_v58  ;;  %v1370_v22 = vsub.s32 0, %v1369_v14  ;;  %v1374_v49 = vsub.s32 1, %v1369_v14 }
 0x1ec   :  { %v796_v34 = vadd.f32 %v782_v60, %v664_v38  ;;  %v1057_v5 = vadd.f32 %v1038_v6, %v925_v55  ;;  %v1059_v60 = vadd.f32 %v1044_v10, %v927_v2  ;;  %v1058_v52 = vadd.f32 %v12152_v8, %v926_v3 }
 0x1ed   :  { %v918_v29 = vpop.f32.mrf.mxu1  ;;  %v12166_v45 = vpop.f32.mrf.mxu0  ;;  %v924_v50 = vadd.f32 %v12154_v11, %v792_v48  ;;  %v13448_v23 = vld [vmem:[#allocation27_spill] sm:$0xff]  ;;  %v167_v11 = vld [vmem:[#allocation6] sm:$0x3] }
 0x1ee   :  { %v928_v4 = vadd.f32 %v914_v25, %v796_v34  ;;  %v929_v7 = vadd.f32 %v918_v29, %v797_v54  ;;  %v1349_v25 = vpop.permute.xlu0 %1348  ;;  %v13449_v29 = vld [vmem:[#allocation26_spill] sm:$0xff]  ;;  %v1339_v38 = vpop.permute.xlu1 %1338  ;;  %v1371_v61 = vrot.slane %v167_v11, %v1370_v22  ;;  %v1375_v2 = vrot.slane %v167_v11, %v1374_v49 }
 0x1ef   :  { %v920_v35 = vpop.f32.mrf.mxu1  ;;  %v1304_v32 = vpop.f32.mrf.mxu0  ;;  %v1056_v8 = vadd.f32 %v13449_v29, %v924_v50  ;;  %v1462_v49 = vld [vmem:[%s13425_s5 + $0x8] sm:$0xff] }
 0x1f0   :  { %v1060_v9 = vadd.f32 %v12156_v12, %v928_v4  ;;  %v930_v10 = vadd.f32 %v920_v35, %v798_v56  ;;  %v1061_v24 = vadd.f32 %v13448_v23, %v929_v7  ;;  %v13450_v35 = vld [vmem:[#allocation28_spill] sm:$0xff] }
 0x1f1   :  { %v1164_v37 = vpop.f32.mrf.mxu1  ;;  %v1308_v57 = vpop.f32.mrf.mxu0 }
 0x1f2   :  { %v1187_v33 = vadd.f32 %v1164_v37, %v1055_v18  ;;  %v1062_v30 = vadd.f32 %v13450_v35, %v930_v10  ;;  %v1334_v4 = vpop.permute.xlu0 %1333  ;;  %v1463_v35 = vld [vmem:[%s13425_s5 + $0x10] sm:$0xff] }
 0x1f3   :  { %v1166_v1 = vpop.f32.mrf.mxu1  ;;  %v1310_v0 = vpop.f32.mrf.mxu0 }
 0x1f4   :  { %v1188_v40 = vadd.f32 %v1166_v1, %v1056_v8  ;;  %v1319_v37 = vadd.f32 %v12162_v21, %v1187_v33 }
 0x1f5   :  { %v1170_v36 = vpop.f32.mrf.mxu1  ;;  %v1314_v12 = vpop.f32.mrf.mxu0 }
 0x1f6   :  { %v1189_v62 = vadd.f32 %v1170_v36, %v1057_v5  ;;  %v1320_v54 = vadd.f32 %v12164_v26, %v1188_v40  ;;  %v1351_v58 = vadd.f32 %v1334_v4, %v1319_v37 }
 0x1f7   :  { %v1172_v59 = vpop.f32.mrf.mxu1  ;;  %v1316_v63 = vpop.f32.mrf.mxu0 }
 0x1f8   :  { %v1190_v19 = vadd.f32 %v1172_v59, %v1058_v52  ;;  %v1321_v31 = vadd.f32 %v12166_v45, %v1189_v62  ;;  %v1352_v56 = vadd.f32 %v1334_v4, %v1320_v54 }
 0x1f9   :  { %v1176_v6 = vpop.f32.mrf.mxu1 }
 0x1fa   :  { %v1191_v16 = vadd.f32 %v1176_v6, %v1059_v60  ;;  %v1322_v43 = vadd.f32 %v1304_v32, %v1190_v19  ;;  %v1353_v45 = vadd.f32 %v1339_v38, %v1321_v31  ;;  %v1360_v26 = vmax.f32 %v1352_v56, 0.0 }
 0x1fb   :  { %v1178_v20 = vpop.f32.mrf.mxu1 }
 0x1fc   :  { %v1323_v27 = vadd.f32 %v1308_v57, %v1191_v16  ;;  %v1192_v28 = vadd.f32 %v1178_v20, %v1060_v9  ;;  %v1354_v1 = vadd.f32 %v1339_v38, %v1322_v43  ;;  %v1361_v5 = vmax.f32 %v1353_v45, 0.0  ;;  %v1465_v38 = vld [vmem:[%s13425_s5 + $0x20] sm:$0xff] }
 0x1fd   :  { %v1182_v47 = vpop.f32.mrf.mxu1  ;;  %v1379_v6 = vmul.f32 %v1375_v2, %v1360_v26 }
 0x1fe   :  { %v1355_v41 = vadd.f32 %v1344_v13, %v1323_v27  ;;  %v1324_v51 = vadd.f32 %v1310_v0, %v1192_v28  ;;  %v1193_v42 = vadd.f32 %v1182_v47, %v1061_v24  ;;  %v1362_v60 = vmax.f32 %v1354_v1, 0.0 }
 0x1ff   :  { %v1184_v53 = vpop.f32.mrf.mxu1  ;;  %v1380_v50 = vmul.f32 %v1371_v61, %v1361_v5 }
 0x200   :  { %v1363_v44 = vmax.f32 %v1355_v41, 0.0  ;;  %v1356_v39 = vadd.f32 %v1344_v13, %v1324_v51  ;;  %v1325_v55 = vadd.f32 %v1314_v12, %v1193_v42  ;;  %v1194_v34 = vadd.f32 %v1184_v53, %v1062_v30  ;;  %v1461_v12 = vld [vmem:[%s13425_s5] sm:$0xff]  ;;  %v1464_v30 = vld [vmem:[%s13425_s5 + $0x18] sm:$0xff]  ;;  %v1466_v41 = vld [vmem:[%s13425_s5 + $0x28] sm:$0xff] }
 0x201   :  { %v1359_v13 = vmax.f32 %v1351_v58, 0.0  ;;  %v1381_v52 = vmul.f32 %v1375_v2, %v1362_v60  ;;  %v1467_v51 = vld [vmem:[%s13425_s5 + $0x30] sm:$0xff]  ;;  %v1468_v42 = vld [vmem:[%s13425_s5 + $0x38] sm:$0xff] }
 0x202   :  { %v1364_v46 = vmax.f32 %v1356_v39, 0.0  ;;  %v1357_v3 = vadd.f32 %v1349_v25, %v1325_v55  ;;  %v1326_v36 = vadd.f32 %v1316_v63, %v1194_v34  ;;  %v1382_v57 = vmul.f32 %v1371_v61, %v1363_v44 }
 0x203   :  { %v1378_v62 = vmul.f32 %v1371_v61, %v1359_v13 }
 0x204   :  { %v1365_v32 = vmax.f32 %v1357_v3, 0.0  ;;  %v1358_v14 = vadd.f32 %v1349_v25, %v1326_v36  ;;  %1415 = vrot.lane.b32.xlu1 %v1382_v57, %s11693_s3  ;;  %v1383_v48 = vmul.f32 %v1375_v2, %v1364_v46 }
 0x206   :  { %v1366_v59 = vmax.f32 %v1358_v14, 0.0  ;;  %1417 = vrot.lane.b32.xlu0 %v1383_v48, %s11693_s3  ;;  %v1384_v21 = vmul.f32 %v1371_v61, %v1365_v32 }
 0x208   :  { %1419 = vrot.lane.b32.xlu1 %v1384_v21, %s11693_s3  ;;  %v1385_v7 = vmul.f32 %v1375_v2, %v1366_v59 }
 0x20a   :  { %1421 = vrot.lane.b32.xlu0 %v1385_v7, %s11693_s3 }
 0x20c   :  { %1411 = vrot.lane.b32.xlu1 %v1380_v50, %s11693_s3 }
 0x20e   :  { %1413 = vrot.lane.b32.xlu0 %v1381_v52, %s11693_s3 }
 0x210   :  { %1407 = vrot.lane.b32.xlu1 %v1378_v62, %s11693_s3 }
 0x212   :  { %1409 = vrot.lane.b32.xlu0 %v1379_v6, %s11693_s3 }
 0x276   :  { %v1416_v0 = vpop.permute.xlu1 %1415 }
 0x277   :  { %1447 = vst.msk [vmem:[#allocation2 + $0x30] sm:$0xff] %vm1440_vm11, %v1416_v0 }
 0x278   :  { %v1418_v9 = vpop.permute.xlu0 %1417 }
 0x279   :  { %v12193_v10 = vsel %vm1423_vm12, %v1416_v0, %v1418_v9  ;;  %1449 = vst.msk [vmem:[#allocation2 + $0x40] sm:$0xff] %vm1423_vm12, %v1418_v9 }
 0x27a   :  { %v1420_v16 = vpop.permute.xlu1 %1419 }
 0x27b   :  { %1450 = vst.msk [vmem:[#allocation2 + $0x48] sm:$0xff] %vm1440_vm11, %v1420_v16 }
 0x27c   :  { %v1422_v17 = vpop.permute.xlu0 %1421 }
 0x27d   :  { %v12198_v18 = vsel %vm1423_vm12, %v1420_v16, %v1422_v17  ;;  %1452 = vst.msk [vmem:[#allocation2 + $0x58] sm:$0xff] %vm1423_vm12, %v1422_v17 }
 0x27e   :  { %v1412_v19 = vpop.permute.xlu1 %1411  ;;  %1720 = vmatprep.subr.mxu0 %v12198_v18  ;;  %v12212_v27 = vld [vmem:[#allocation2 + $0x30] sm:$0xff] }
 0x27f   :  { %1444 = vst.msk [vmem:[#allocation2 + $0x18] sm:$0xff] %vm1440_vm11, %v1412_v19 }
 0x280   :  { %v1414_v20 = vpop.permute.xlu0 %1413  ;;  %v12257_v31 = vld [vmem:[#allocation2 + $0x40] sm:$0xff] }
 0x281   :  { %v12204_v22 = vsel %vm1423_vm12, %v1412_v19, %v1414_v20  ;;  %1446 = vst.msk [vmem:[#allocation2 + $0x28] sm:$0xff] %vm1423_vm12, %v1414_v20  ;;  %v9405_v20 = vld [vmem:[%s13425_s5 + $0x40] sm:$0xff] }
 0x282   :  { %v1408_v23 = vpop.permute.xlu1 %1407  ;;  %v12207_v24 = vld [vmem:[#allocation2 + $0x48] sm:$0xff] }
 0x283   :  { %1441 = vst.msk [vmem:[#allocation2] sm:$0xff] %vm1440_vm11, %v1408_v23  ;;  %1721 = vmatpush1.msra.mxu0 %v12207_v24 }
 0x284   :  { %v1410_v25 = vpop.permute.xlu0 %1409  ;;  %1722 = vmatprep.subr.mxu0 %v12193_v10  ;;  %v12281_v47 = vld [vmem:[#allocation2 + $0x58] sm:$0xff] }
 0x285   :  { %v12215_v28 = vsel %vm1423_vm12, %v1408_v23, %v1410_v25  ;;  %1443 = vst.msk [vmem:[#allocation2 + $0x10] sm:$0xff] %vm1423_vm12, %v1410_v25  ;;  %1723 = vmatpush1.msra.mxu0 %v12212_v27  ;;  %v9406_v25 = vld [vmem:[%s13425_s5 + $0x48] sm:$0xff] }
 0x286   :  { %1724 = vmatprep.subr.mxu0 %v12204_v22  ;;  %v12220_v11 = vld [vmem:[#allocation2 + $0x18] sm:$0xff] }
 0x287   :  { %1725 = vmatpush1.msra.mxu0 %v12220_v11 }
 0x288   :  { %1726 = vmatprep.subr.mxu0 %v12215_v28  ;;  %v12245_v33 = vld [vmem:[#allocation2 + $0x28] sm:$0xff] }
 0x28a   :  { %v12224_v29 = vld [vmem:[#allocation2] sm:$0xff] }
 0x28b   :  { %1494 = vrot.lane.b32.xlu0 %v12224_v29, %s11684_s25  ;;  %1727 = vmatpush1.msra.mxu0 %v12224_v29 }
 0x28c   :  { %v12229_v8 = vld [vmem:[#allocation2 + $0x10] sm:$0xff]  ;;  %9421 = vmatmul.mubr.msk.f32.vlgmr.msra.gmra.mxu0 %vm1534_vm13, %v1461_v12 }
 0x28d   :  { %1498 = vrot.lane.b32.xlu1 %v12229_v8, %s11684_s25  ;;  %1766 = vmatprep.mubr.f32.mxu0 %v12175_v15 }
 0x28f   :  { %1818 = vrot.lane.b32.xlu0 %v12224_v29, %s11685_s26 }
 0x290   :  { %9422 = vmatmul.mubr.msk.f32.gmra.mxu0 %vm1534_vm13, %v1462_v49 }
 0x291   :  { %1822 = vrot.lane.b32.xlu1 %v12229_v8, %s11685_s26  ;;  %1772 = vmatprep.mubr.f32.mxu0 %v12175_v15 }
 0x293   :  { %1496 = vrot.lane.b32.xlu0 %v12215_v28, %s11684_s25 }
 0x294   :  { %9423 = vmatmul.mubr.msk.f32.gmra.mxu0 %vm1534_vm13, %v1463_v35  ;;  %v3223_v35 = vld [vmem:[%s13426_s6] sm:$0xff] }
 0x295   :  { %1500 = vrot.lane.b32.xlu1 %v12220_v11, %s11684_s25  ;;  %1778 = vmatprep.mubr.f32.mxu0 %v12175_v15 }
 0x297   :  { %1820 = vrot.lane.b32.xlu0 %v12215_v28, %s11685_s26 }
 0x298   :  { %9424 = vmatmul.mubr.msk.f32.gmra.mxu0 %vm1534_vm13, %v1464_v30 }
 0x299   :  { %1824 = vrot.lane.b32.xlu1 %v12220_v11, %s11685_s26  ;;  %1784 = vmatprep.mubr.f32.mxu0 %v12175_v15 }
 0x29b   :  { %1504 = vrot.lane.b32.xlu0 %v12245_v33, %s11684_s25 }
 0x29c   :  { %9425 = vmatmul.mubr.msk.f32.gmra.mxu0 %vm1534_vm13, %v1465_v38 }
 0x29d   :  { %1502 = vrot.lane.b32.xlu1 %v12204_v22, %s11684_s25  ;;  %1790 = vmatprep.mubr.f32.mxu0 %v12175_v15 }
 0x29f   :  { %1828 = vrot.lane.b32.xlu0 %v12245_v33, %s11685_s26 }
 0x2a0   :  { %9426 = vmatmul.mubr.msk.f32.gmra.mxu0 %vm1534_vm13, %v1466_v41  ;;  %v3225_v41 = vld [vmem:[%s13426_s6 + $0x10] sm:$0xff] }
 0x2a1   :  { %1826 = vrot.lane.b32.xlu1 %v12204_v22, %s11685_s26  ;;  %1796 = vmatprep.mubr.f32.mxu0 %v12175_v15 }
 0x2a3   :  { %1506 = vrot.lane.b32.xlu0 %v12212_v27, %s11684_s25 }
 0x2a4   :  { %9427 = vmatmul.mubr.msk.f32.gmra.mxu0 %vm1534_vm13, %v1467_v51  ;;  %v9410_v51 = vld [vmem:[%s13425_s5 + $0x68] sm:$0xff] }
 0x2a5   :  { %1510 = vrot.lane.b32.xlu1 %v12257_v31, %s11684_s25  ;;  %1802 = vmatprep.mubr.f32.mxu0 %v12175_v15 }
 0x2a7   :  { %1830 = vrot.lane.b32.xlu0 %v12212_v27, %s11685_s26 }
 0x2a8   :  { %9428 = vmatmul.mubr.msk.f32.gmra.mxu0 %vm1534_vm13, %v1468_v42 }
 0x2a9   :  { %1834 = vrot.lane.b32.xlu1 %v12257_v31, %s11685_s26  ;;  %2148 = vmatprep.mubr.f32.mxu0 %v12175_v15 }
 0x2ab   :  { %2032 = vrot.lane.b32.xlu0 %v12212_v27, %s11686_s0 }
 0x2ad   :  { %2036 = vrot.lane.b32.xlu1 %v12257_v31, %s11686_s0 }
 0x2af   :  { %1508 = vrot.lane.b32.xlu0 %v12193_v10, %s11684_s25 }
 0x2b1   :  { %1512 = vrot.lane.b32.xlu1 %v12207_v24, %s11684_s25 }
 0x2b3   :  { %1832 = vrot.lane.b32.xlu0 %v12193_v10, %s11685_s26 }
 0x2b5   :  { %1836 = vrot.lane.b32.xlu1 %v12207_v24, %s11685_s26 }
 0x2b7   :  { %2034 = vrot.lane.b32.xlu0 %v12193_v10, %s11686_s0 }
 0x2b9   :  { %2038 = vrot.lane.b32.xlu1 %v12207_v24, %s11686_s0 }
 0x2bb   :  { %1516 = vrot.lane.b32.xlu0 %v12281_v47, %s11684_s25 }
 0x2bd   :  { %2244 = vrot.lane.b32.xlu1 %v12281_v47, %s11687_s30 }
 0x2bf   :  { %1840 = vrot.lane.b32.xlu0 %v12281_v47, %s11685_s26 }
 0x2c1   :  { %1514 = vrot.lane.b32.xlu1 %v12198_v18, %s11684_s25 }
 0x2c3   :  { %2042 = vrot.lane.b32.xlu0 %v12281_v47, %s11686_s0 }
 0x2c5   :  { %2240 = vrot.lane.b32.xlu1 %v12207_v24, %s11687_s30 }
 0x2c7   :  { %2028 = vrot.lane.b32.xlu0 %v12204_v22, %s11686_s0 }
 0x2c9   :  { %2030 = vrot.lane.b32.xlu1 %v12245_v33, %s11686_s0 }
 0x2cb   :  { %2236 = vrot.lane.b32.xlu0 %v12193_v10, %s11687_s30 }
 0x2cd   :  { %2238 = vrot.lane.b32.xlu1 %v12257_v31, %s11687_s30 }
 0x2cf   :  { %2026 = vrot.lane.b32.xlu0 %v12220_v11, %s11686_s0 }
 0x2d1   :  { %2234 = vrot.lane.b32.xlu1 %v12212_v27, %s11687_s30 }
 0x2d3   :  { %2022 = vrot.lane.b32.xlu0 %v12215_v28, %s11686_s0 }
 0x2d5   :  { %2024 = vrot.lane.b32.xlu1 %v12229_v8, %s11686_s0 }
 0x2d7   :  { %2230 = vrot.lane.b32.xlu0 %v12204_v22, %s11687_s30 }
 0x2d9   :  { %2232 = vrot.lane.b32.xlu1 %v12245_v33, %s11687_s30 }
 0x2db   :  { %2020 = vrot.lane.b32.xlu0 %v12224_v29, %s11686_s0 }
 0x2dd   :  { %2228 = vrot.lane.b32.xlu1 %v12220_v11, %s11687_s30 }
 0x2df   :  { %2224 = vrot.lane.b32.xlu0 %v12215_v28, %s11687_s30 }
 0x2e1   :  { %1838 = vrot.lane.b32.xlu1 %v12198_v18, %s11685_s26 }
 0x2e3   :  { %2222 = vrot.lane.b32.xlu0 %v12224_v29, %s11687_s30 }
 0x2e5   :  { %2226 = vrot.lane.b32.xlu1 %v12229_v8, %s11687_s30 }
 0x2e7   :  { %2446 = vrot.lane.b32.xlu0 %v12281_v47, %s11688_s20 }
 0x2e9   :  { %2442 = vrot.lane.b32.xlu1 %v12207_v24, %s11688_s20 }
 0x2eb   :  { %2438 = vrot.lane.b32.xlu0 %v12193_v10, %s11688_s20 }
 0x2ed   :  { %2440 = vrot.lane.b32.xlu1 %v12257_v31, %s11688_s20 }
 0x2ef   :  { %2436 = vrot.lane.b32.xlu0 %v12212_v27, %s11688_s20 }
 0x2f1   :  { %2648 = vrot.lane.b32.xlu1 %v12281_v47, %s11689_s11 }
 0x2f3   :  { %2432 = vrot.lane.b32.xlu0 %v12204_v22, %s11688_s20 }
 0x2f5   :  { %2644 = vrot.lane.b32.xlu1 %v12207_v24, %s11689_s11 }
 0x2f7   :  { %2640 = vrot.lane.b32.xlu0 %v12193_v10, %s11689_s11 }
 0x2f9   :  { %2434 = vrot.lane.b32.xlu1 %v12245_v33, %s11688_s20 }
 0x2fb   :  { %2430 = vrot.lane.b32.xlu0 %v12220_v11, %s11688_s20 }
 0x2fd   :  { %2642 = vrot.lane.b32.xlu1 %v12257_v31, %s11689_s11  ;;  %v12391_v40 = vpop.permute.xlu0 %1494 }
 0x2ff   :  { %2242 = vrot.lane.b32.xlu0 %v12198_v18, %s11687_s30  ;;  %v12395_v43 = vpop.permute.xlu1 %1498 }
 0x301   :  { %2040 = vrot.lane.b32.xlu1 %v12198_v18, %s11686_s0  ;;  %v12399_v53 = vpop.permute.xlu0 %1818 }
 0x303   :  { %2426 = vrot.lane.b32.xlu0 %v12215_v28, %s11688_s20  ;;  %v12403_v61 = vpop.permute.xlu1 %1822 }
 0x305   :  { %2638 = vrot.lane.b32.xlu1 %v12212_v27, %s11689_s11  ;;  %v12407_v44 = vpop.permute.xlu0 %1496 }
 0x306   :  { %v1519_v19 = vsel %vm188_vm0, %v12407_v44, %v12395_v43  ;;  %v1518_v23 = vsel %vm188_vm0, %v12391_v40, %v12407_v44  ;;  %v3228_v40 = vld [vmem:[%s13426_s6 + $0x28] sm:$0xff]  ;;  %v3227_v44 = vld [vmem:[%s13426_s6 + $0x20] sm:$0xff] }
 0x307   :  { %2634 = vrot.lane.b32.xlu0 %v12204_v22, %s11689_s11  ;;  %v1501_v39 = vpop.permute.xlu1 %1500 }
 0x309   :  { %2428 = vrot.lane.b32.xlu1 %v12229_v8, %s11688_s20  ;;  %v12413_v55 = vpop.permute.xlu0 %1820 }
 0x30b   :  { %2424 = vrot.lane.b32.xlu0 %v12224_v29, %s11688_s20  ;;  %v12417_v34 = vpop.permute.xlu1 %1824 }
 0x30d   :  { %2636 = vrot.lane.b32.xlu1 %v12245_v33, %s11689_s11  ;;  %v1505_v37 = vpop.permute.xlu0 %1504 }
 0x30f   :  { %2628 = vrot.lane.b32.xlu0 %v12215_v28, %s11689_s11  ;;  %v1503_v45 = vpop.permute.xlu1 %1502 }
 0x310   :  { %v1520_v16 = vsel %vm188_vm0, %v1501_v39, %v1503_v45  ;;  %v9411_v39 = vld [vmem:[%s13425_s5 + $0x70] sm:$0xff] }
 0x311   :  { %2632 = vrot.lane.b32.xlu1 %v12220_v11, %s11689_s11  ;;  %v1829_v63 = vpop.permute.xlu0 %1828 }
 0x313   :  { %2626 = vrot.lane.b32.xlu0 %v12224_v29, %s11689_s11  ;;  %v12427_v2 = vpop.permute.xlu1 %1826 }
 0x314   :  { %v12431_v46 = vsel %vm419_vm3, %v12427_v2, %v1829_v63 }
 0x315   :  { %2630 = vrot.lane.b32.xlu1 %v12229_v8, %s11689_s11  ;;  %v1507_v3 = vpop.permute.xlu0 %1506 }
 0x317   :  { %2850 = vrot.lane.b32.xlu0 %v12281_v47, %s11690_s12  ;;  %v1511_v36 = vpop.permute.xlu1 %1510 }
 0x319   :  { %2846 = vrot.lane.b32.xlu1 %v12207_v24, %s11690_s12  ;;  %v12439_v57 = vpop.permute.xlu0 %1830 }
 0x31b   :  { %2842 = vrot.lane.b32.xlu0 %v12193_v10, %s11690_s12  ;;  %v12443_v54 = vpop.permute.xlu1 %1834 }
 0x31d   :  { %2844 = vrot.lane.b32.xlu1 %v12257_v31, %s11690_s12  ;;  %v2033_v4 = vpop.permute.xlu0 %2032 }
 0x31f   :  { %2646 = vrot.lane.b32.xlu0 %v12198_v18, %s11689_s11  ;;  %v2037_v1 = vpop.permute.xlu1 %2036 }
 0x321   :  { %2444 = vrot.lane.b32.xlu1 %v12198_v18, %s11688_s20  ;;  %v1509_v32 = vpop.permute.xlu0 %1508 }
 0x322   :  { %v1523_v6 = vsel %vm188_vm0, %v1509_v32, %v1511_v36  ;;  %v1522_v0 = vsel %vm188_vm0, %v1507_v3, %v1509_v32  ;;  %v3230_v3 = vld [vmem:[%s13426_s6 + $0x38] sm:$0xff] }
 0x323   :  { %2840 = vrot.lane.b32.xlu0 %v12212_v27, %s11690_s12  ;;  %v1513_v14 = vpop.permute.xlu1 %1512 }
 0x325   :  { %3052 = vrot.lane.b32.xlu1 %v12281_v47, %s11691_s15  ;;  %v12455_v48 = vpop.permute.xlu0 %1832 }
 0x327   :  { %2836 = vrot.lane.b32.xlu0 %v12204_v22, %s11690_s12  ;;  %v12459_v58 = vpop.permute.xlu1 %1836 }
 0x329   :  { %3048 = vrot.lane.b32.xlu1 %v12207_v24, %s11691_s15  ;;  %v2035_v5 = vpop.permute.xlu0 %2034 }
 0x32a   :  { %v12464_v59 = vsel %vm551_vm4, %v2033_v4, %v2035_v5  ;;  %v12467_v21 = vsel %vm551_vm4, %v2035_v5, %v2037_v1  ;;  %v3229_v4 = vld [vmem:[%s13426_s6 + $0x30] sm:$0xff]  ;;  %v1847_v1 = vsel %vm419_vm3, %v12455_v48, %v12443_v54  ;;  %v1843_v54 = vsel %vm419_vm3, %v12413_v55, %v12403_v61  ;;  %v9430_v61 = vld [vmem:[%s13425_s5 + $0x88] sm:$0xff] }
 0x32b   :  { %3044 = vrot.lane.b32.xlu0 %v12193_v10, %s11691_s15  ;;  %v12471_v56 = vpop.permute.xlu1 %2038  ;;  %v1521_v10 = vsel %vm188_vm0, %v1503_v45, %v1505_v37 }
 0x32d   :  { %2838 = vrot.lane.b32.xlu1 %v12245_v33, %s11690_s12  ;;  %v1517_v60 = vpop.permute.xlu0 %1516 }
 0x32f   :  { %2834 = vrot.lane.b32.xlu0 %v12220_v11, %s11690_s12  ;;  %v12477_v7 = vpop.permute.xlu1 %2244 }
 0x331   :  { %3046 = vrot.lane.b32.xlu1 %v12257_v31, %s11691_s15  ;;  %v12481_v13 = vpop.permute.xlu0 %1840 }
 0x333   :  { %2830 = vrot.lane.b32.xlu0 %v12215_v28, %s11690_s12  ;;  %v1515_v50 = vpop.permute.xlu1 %1514 }
 0x334   :  { %v1524_v26 = vsel %vm188_vm0, %v1513_v14, %v1515_v50  ;;  %v1525_v52 = vsel %vm188_vm0, %v1515_v50, %v1517_v60  ;;  %v9412_v14 = vld [vmem:[%s13425_s5 + $0x78] sm:$0xff]  ;;  %v1844_v60 = vsel %vm419_vm3, %v12417_v34, %v12427_v2  ;;  %v1842_v34 = vsel %vm419_vm3, %v12399_v53, %v12413_v55  ;;  %v9431_v53 = vld [vmem:[%s13425_s5 + $0x90] sm:$0xff] }
 0x335   :  { %3042 = vrot.lane.b32.xlu1 %v12212_v27, %s11691_s15  ;;  %v12489_v62 = vpop.permute.xlu0 %2042  ;;  %1583 = vmatprep.subr.mxu1 %v1525_v52  ;;  %v9432_v52 = vld [vmem:[%s13425_s5 + $0x98] sm:$0xff]  ;;  %vm9294_vm0 = vcmask 1024  }
 0x336   :  { %1584 = vmatpush1.msra.mxu1 %v1524_v26 }
 0x337   :  { %3038 = vrot.lane.b32.xlu0 %v12204_v22, %s11691_s15  ;;  %1585 = vmatprep.subr.mxu1 %v1523_v6  ;;  %v12495_v9 = vpop.permute.xlu1 %2240 }
 0x338   :  { %1586 = vmatpush1.msra.mxu1 %v1522_v0 }
 0x339   :  { %2832 = vrot.lane.b32.xlu1 %v12229_v8, %s11690_s12  ;;  %v12501_v17 = vpop.permute.xlu0 %2028  ;;  %1587 = vmatprep.subr.mxu1 %v1521_v10  ;;  %v9433_v10 = vld [vmem:[%s13425_s5 + $0xa0] sm:$0xff] }
 0x33a   :  { %1588 = vmatpush1.msra.mxu1 %v1520_v16 }
 0x33b   :  { %2828 = vrot.lane.b32.xlu0 %v12224_v29, %s11690_s12  ;;  %1589 = vmatprep.subr.mxu1 %v1519_v19  ;;  %v12511_v22 = vpop.permute.xlu1 %2030 }
 0x33c   :  { %1590 = vmatpush1.msra.mxu1 %v1518_v23 }
 0x33d   :  { %3040 = vrot.lane.b32.xlu1 %v12245_v33, %s11691_s15  ;;  %v12518_v24 = vpop.permute.xlu0 %2236  ;;  %9413 = vmatmul.mubr.msk.f32.vlgmr.msra.gmra.mxu1 %vm1534_vm13, %v9405_v20  ;;  %v9407_v33 = vld [vmem:[%s13425_s5 + $0x50] sm:$0xff]  ;;  %v9434_v20 = vld [vmem:[%s13425_s5 + $0xa8] sm:$0xff] }
 0x33e   :  { %1629 = vmatprep.mubr.f32.mxu1 %v12175_v15 }
 0x33f   :  { %3050 = vrot.lane.b32.xlu0 %v12198_v18, %s11691_s15  ;;  %v12527_v27 = vpop.permute.xlu1 %2238 }
 0x341   :  { %2848 = vrot.lane.b32.xlu1 %v12198_v18, %s11690_s12  ;;  %v12531_v31 = vpop.permute.xlu0 %2026  ;;  %9414 = vmatmul.mubr.msk.f32.gmra.mxu1 %vm1534_vm13, %v9406_v25  ;;  %v9408_v18 = vld [vmem:[%s13425_s5 + $0x58] sm:$0xff] }
 0x342   :  { %1635 = vmatprep.mubr.f32.mxu1 %v12175_v15 }
 0x343   :  { %3032 = vrot.lane.b32.xlu0 %v12215_v28, %s11691_s15  ;;  %v12540_v47 = vpop.permute.xlu1 %2234  ;;  %v3224_v28 = vld [vmem:[%s13426_s6 + $0x8] sm:$0xff] }
 0x345   :  { %3036 = vrot.lane.b32.xlu1 %v12220_v11, %s11691_s15  ;;  %v12544_v12 = vpop.permute.xlu0 %2022  ;;  %9415 = vmatmul.mubr.msk.f32.gmra.mxu1 %vm1534_vm13, %v9407_v33 }
 0x346   :  { %1641 = vmatprep.mubr.f32.mxu1 %v12175_v15 }
 0x347   :  { %3030 = vrot.lane.b32.xlu0 %v12224_v29, %s11691_s15  ;;  %v12553_v49 = vpop.permute.xlu1 %2024  ;;  %v9409_v29 = vld [vmem:[%s13425_s5 + $0x60] sm:$0xff] }
 0x349   :  { %3034 = vrot.lane.b32.xlu1 %v12229_v8, %s11691_s15  ;;  %v12560_v11 = vpop.permute.xlu0 %2230  ;;  %9416 = vmatmul.mubr.msk.f32.gmra.mxu1 %vm1534_vm13, %v9408_v18  ;;  %v3226_v8 = vld [vmem:[%s13426_s6 + $0x18] sm:$0xff] }
 0x34a   :  { %1647 = vmatprep.mubr.f32.mxu1 %v12175_v15 }
 0x34b   :  { %3238 = vperm.xlu0 %10913, %v3224_v28   ;;  %v12570_v30 = vpop.permute.xlu1 %2232  ;;  %v9435_v28 = vld [vmem:[%s13425_s5 + $0xb0] sm:$0xff] }
 0x34d   :  { %v12575_v38 = vpop.permute.xlu0 %2020  ;;  %3233 = vperm.xlu1 %10914, %v3223_v35   ;;  %9417 = vmatmul.mubr.msk.f32.gmra.mxu1 %vm1534_vm13, %v9409_v29  ;;  %v2251_v29 = vsel %vm683_vm5, %v12518_v24, %v12527_v27  ;;  %v9436_v27 = vld [vmem:[%s13425_s5 + $0xb8] sm:$0xff] }
 0x34e   :  { %1653 = vmatprep.mubr.f32.mxu1 %v12175_v15 }
 0x34f   :  { %3248 = vperm.xlu0 %10913, %v3226_v8   ;;  %v12585_v42 = vpop.permute.xlu1 %2228  ;;  %v2250_v8 = vsel %vm683_vm5, %v12540_v47, %v12518_v24  ;;  %v2047_v47 = vsel %vm551_vm4, %v12501_v17, %v12511_v22  ;;  %v2045_v22 = vsel %vm551_vm4, %v12544_v12, %v12553_v49 }
 0x350   :  { %v2248_v24 = vsel %vm683_vm5, %v12585_v42, %v12560_v11 }
 0x351   :  { %v12590_v43 = vpop.permute.xlu0 %2224  ;;  %3243 = vperm.xlu1 %10914, %v3225_v41   ;;  %9418 = vmatmul.mubr.msk.f32.gmra.mxu1 %vm1534_vm13, %v9410_v51  ;;  %v2044_v51 = vsel %vm551_vm4, %v12575_v38, %v12544_v12  ;;  %v9462_v12 = vld [vmem:[%s13425_s5 + $0x108] sm:$0xff] }
 0x352   :  { %1659 = vmatprep.mubr.f32.mxu1 %v12175_v15 }
 0x353   :  { %3258 = vperm.xlu0 %10913, %v3228_v40   ;;  %v1839_v37 = vpop.permute.xlu1 %1838  ;;  %v9446_v40 = vld [vmem:[%s13425_s5 + $0xc8] sm:$0xff] }
 0x354   :  { %v1848_v45 = vsel %vm419_vm3, %v12459_v58, %v1839_v37  ;;  %v1849_v63 = vsel %vm419_vm3, %v1839_v37, %v12481_v13  ;;  %v1846_v58 = vsel %vm419_vm3, %v12439_v57, %v12455_v48  ;;  %v9429_v57 = vld [vmem:[%s13425_s5 + $0x80] sm:$0xff] }
 0x355   :  { %v12607_v36 = vpop.permute.xlu0 %2222  ;;  %3253 = vperm.xlu1 %10914, %v3227_v44   ;;  %9419 = vmatmul.mubr.msk.f32.gmra.mxu1 %vm1534_vm13, %v9411_v39  ;;  %v9447_v44 = vld [vmem:[%s13425_s5 + $0xd0] sm:$0xff] }
 0x356   :  { %1906 = vmatprep.subr.mxu1 %v1849_v63  ;;  %1665 = vmatprep.mubr.f32.mxu1 %v12175_v15  ;;  %v9463_v39 = vld [vmem:[%s13425_s5 + $0x110] sm:$0xff]  ;;  %v9448_v63 = vld [vmem:[%s13425_s5 + $0xd8] sm:$0xff] }
 0x357   :  { %1907 = vmatpush1.msra.mxu1 %v1848_v45  ;;  %3268 = vperm.xlu0 %10913, %v3230_v3   ;;  %v12617_v32 = vpop.permute.xlu1 %2226  ;;  %v9464_v3 = vld [vmem:[%s13425_s5 + $0x118] sm:$0xff] }
 0x358   :  { %1908 = vmatprep.subr.mxu1 %v1847_v1  ;;  %v9449_v1 = vld [vmem:[%s13425_s5 + $0xe0] sm:$0xff] }
 0x359   :  { %1909 = vmatpush1.msra.mxu1 %v1846_v58  ;;  %v12625_v5 = vpop.permute.xlu0 %2446  ;;  %3263 = vperm.xlu1 %10914, %v3229_v4  }
 0x35a   :  { %9420 = vmatmul.mubr.msk.f32.gmra.mxu1 %vm1534_vm13, %v9412_v14  ;;  %1910 = vmatprep.subr.mxu1 %v12431_v46 }
 0x35b   :  { %1911 = vmatpush1.msra.mxu1 %v1844_v60  ;;  %v12635_v13 = vpop.permute.xlu1 %2442  ;;  %1946 = vmatprep.mubr.f32.mxu1 %v12175_v15  ;;  %v9450_v60 = vld [vmem:[%s13425_s5 + $0xe8] sm:$0xff] }
 0x35c   :  { %1912 = vmatprep.subr.mxu1 %v1843_v54  ;;  %v9466_v54 = vld [vmem:[%s13425_s5 + $0x128] sm:$0xff] }
 0x35d   :  { %1913 = vmatpush1.msra.mxu1 %v1842_v34  ;;  %v12644_v2 = vpop.permute.xlu0 %2438 }
 0x35e   :  { %9437 = vmatmul.mubr.msk.f32.vlgmr.msra.gmra.mxu1 %vm1534_vm13, %v9429_v57 }
 0x35f   :  { %v12647_v46 = vpop.permute.xlu1 %2440  ;;  %1952 = vmatprep.mubr.f32.mxu1 %v12175_v15 }
 0x361   :  { %v12653_v48 = vpop.permute.xlu0 %2436 }
 0x362   :  { %9438 = vmatmul.mubr.msk.f32.gmra.mxu1 %vm1534_vm13, %v9430_v61 }
 0x363   :  { %v12656_v50 = vpop.permute.xlu1 %2648  ;;  %1958 = vmatprep.mubr.f32.mxu1 %v12175_v15 }
 0x365   :  { %v12662_v55 = vpop.permute.xlu0 %2432 }
 0x366   :  { %9439 = vmatmul.mubr.msk.f32.gmra.mxu1 %vm1534_vm13, %v9431_v53 }
 0x367   :  { %v12665_v26 = vpop.permute.xlu1 %2644  ;;  %1964 = vmatprep.mubr.f32.mxu1 %v12175_v15 }
 0x369   :  { %v12671_v6 = vpop.permute.xlu0 %2640 }
 0x36a   :  { %9440 = vmatmul.mubr.msk.f32.gmra.mxu1 %vm1534_vm13, %v9432_v52  ;;  %v9451_v52 = vld [vmem:[%s13425_s5 + $0xf0] sm:$0xff] }
 0x36b   :  { %v12674_v0 = vpop.permute.xlu1 %2434  ;;  %1970 = vmatprep.mubr.f32.mxu1 %v12175_v15 }
 0x36d   :  { %v12680_v16 = vpop.permute.xlu0 %2430 }
 0x36e   :  { %9441 = vmatmul.mubr.msk.f32.gmra.mxu1 %vm1534_vm13, %v9433_v10 }
 0x36f   :  { %v12683_v19 = vpop.permute.xlu1 %2642  ;;  %1976 = vmatprep.mubr.f32.mxu1 %v12175_v15 }
 0x371   :  { %v2243_v23 = vpop.permute.xlu0 %2242 }
 0x372   :  { %v2252_v25 = vsel %vm683_vm5, %v12495_v9, %v2243_v23  ;;  %9442 = vmatmul.mubr.msk.f32.gmra.mxu1 %vm1534_vm13, %v9434_v20  ;;  %v2253_v33 = vsel %vm683_vm5, %v2243_v23, %v12477_v7  ;;  %v2655_v20 = vsel %vm947_vm7, %v12671_v6, %v12683_v19 }
 0x373   :  { %2310 = vmatprep.subr.mxu1 %v2253_v33  ;;  %v2041_v18 = vpop.permute.xlu1 %2040  ;;  %1982 = vmatprep.mubr.f32.mxu1 %v12175_v15  ;;  %v2452_v33 = vsel %vm815_vm6, %v12653_v48, %v12644_v2  ;;  %v2450_v48 = vsel %vm815_vm6, %v12680_v16, %v12662_v55 }
 0x374   :  { %v2050_v35 = vsel %vm551_vm4, %v12471_v56, %v2041_v18  ;;  %2311 = vmatpush1.msra.mxu1 %v2252_v25  ;;  %v2051_v9 = vsel %vm551_vm4, %v2041_v18, %v12489_v62  ;;  %v2249_v56 = vsel %vm683_vm5, %v12560_v11, %v12570_v30  ;;  %v2046_v30 = vsel %vm551_vm4, %v12531_v31, %v12501_v17  ;;  %v9445_v17 = vld [vmem:[%s13425_s5 + $0xc0] sm:$0xff] }
 0x375   :  { %v12705_v7 = vpop.permute.xlu0 %2426  ;;  %2108 = vmatprep.subr.mxu0 %v2051_v9  ;;  %2312 = vmatprep.subr.mxu1 %v2251_v29  ;;  %v2247_v11 = vsel %vm683_vm5, %v12590_v43, %v12617_v32  ;;  %v9461_v31 = vld [vmem:[%s13425_s5 + $0x100] sm:$0xff] }
 0x376   :  { %9443 = vmatmul.mubr.msk.f32.gmra.mxu1 %vm1534_vm13, %v9435_v28  ;;  %2109 = vmatpush1.msra.mxu0 %v2050_v35  ;;  %v9465_v32 = vld [vmem:[%s13425_s5 + $0x120] sm:$0xff]  ;;  %v2451_v28 = vsel %vm815_vm6, %v12662_v55, %v12674_v0  ;;  %v9468_v35 = vld [vmem:[%s13425_s5 + $0x138] sm:$0xff] }
 0x377   :  { %2313 = vmatpush1.msra.mxu1 %v2250_v8  ;;  %2110 = vmatprep.subr.mxu0 %v12467_v21  ;;  %v12715_v62 = vpop.permute.xlu1 %2638  ;;  %v9477_v8 = vld [vmem:[%s13425_s5 + $0x140] sm:$0xff] }
 0x378   :  { %2314 = vmatprep.subr.mxu1 %v2249_v56  ;;  %1988 = vmatprep.mubr.f32.mxu1 %v12175_v15  ;;  %v2654_v23 = vsel %vm947_vm7, %v12715_v62, %v12671_v6  ;;  %v9452_v6 = vld [vmem:[%s13425_s5 + $0xf8] sm:$0xff]  ;;  %v9493_v56 = vld [vmem:[%s13425_s5 + $0x180] sm:$0xff] }
 0x379   :  { %2111 = vmatpush1.msra.mxu0 %v12464_v59  ;;  %2315 = vmatpush1.msra.mxu1 %v2248_v24  ;;  %v12725_v21 = vpop.permute.xlu0 %2634  ;;  %v2246_v59 = vsel %vm683_vm5, %v12607_v36, %v12590_v43  ;;  %v9494_v24 = vld [vmem:[%s13425_s5 + $0x188] sm:$0xff] }
 0x37a   :  { %9444 = vmatmul.mubr.msk.f32.gmra.mxu1 %vm1534_vm13, %v9436_v27  ;;  %2112 = vmatprep.subr.mxu0 %v2047_v47  ;;  %v9478_v27 = vld [vmem:[%s13425_s5 + $0x148] sm:$0xff] }
 0x37b   :  { %2316 = vmatprep.subr.mxu1 %v2247_v11  ;;  %2113 = vmatpush1.msra.mxu0 %v2046_v30  ;;  %v12743_v41 = vpop.permute.xlu1 %2428  ;;  %v9479_v30 = vld [vmem:[%s13425_s5 + $0x150] sm:$0xff] }
 0x37c   :  { %2317 = vmatpush1.msra.mxu1 %v2246_v59  ;;  %2114 = vmatprep.subr.mxu0 %v2045_v22  ;;  %v2449_v0 = vsel %vm815_vm6, %v12705_v7, %v12743_v41  ;;  %v9495_v11 = vld [vmem:[%s13425_s5 + $0x190] sm:$0xff]  ;;  %v9480_v41 = vld [vmem:[%s13425_s5 + $0x158] sm:$0xff] }
 0x37d   :  { %2115 = vmatpush1.msra.mxu0 %v2044_v51  ;;  %v12754_v42 = vpop.permute.xlu0 %2424  ;;  %2350 = vmatprep.mubr.f32.mxu1 %v12175_v15 }
 0x37e   :  { %9453 = vmatmul.mubr.msk.f32.vlgmr.msra.gmra.mxu0 %vm1534_vm13, %v9445_v17  ;;  %9469 = vmatmul.mubr.msk.f32.vlgmr.msra.gmra.mxu1 %vm1534_vm13, %v9461_v31  ;;  %v2448_v55 = vsel %vm815_vm6, %v12754_v42, %v12705_v7  ;;  %v9496_v17 = vld [vmem:[%s13425_s5 + $0x198] sm:$0xff]  ;;  %v9481_v42 = vld [vmem:[%s13425_s5 + $0x160] sm:$0xff] }
 0x37f   :  { %v2637_v49 = vpop.permute.xlu1 %2636  ;;  %2154 = vmatprep.mubr.f32.mxu0 %v12175_v15  ;;  %2356 = vmatprep.mubr.f32.mxu1 %v12175_v15 }
 0x381   :  { %v12767_v38 = vpop.permute.xlu0 %2628 }
 0x382   :  { %9454 = vmatmul.mubr.msk.f32.gmra.mxu0 %vm1534_vm13, %v9446_v40  ;;  %9470 = vmatmul.mubr.msk.f32.gmra.mxu1 %vm1534_vm13, %v9462_v12 }
 0x383   :  { %v2633_v43 = vpop.permute.xlu1 %2632  ;;  %2160 = vmatprep.mubr.f32.mxu0 %v12175_v15  ;;  %2362 = vmatprep.mubr.f32.mxu1 %v12175_v15 }
 0x384   :  { %v2652_v18 = vsel %vm947_vm7, %v2633_v43, %v12725_v21 }
 0x385   :  { %v12779_v37 = vpop.permute.xlu0 %2626 }
 0x386   :  { %9455 = vmatmul.mubr.msk.f32.gmra.mxu0 %vm1534_vm13, %v9447_v44  ;;  %9471 = vmatmul.mubr.msk.f32.gmra.mxu1 %vm1534_vm13, %v9463_v39  ;;  %v2650_v29 = vsel %vm947_vm7, %v12779_v37, %v12767_v38  ;;  %v9498_v39 = vld [vmem:[%s13425_s5 + $0x1a8] sm:$0xff] }
 0x387   :  { %v2631_v45 = vpop.permute.xlu1 %2630  ;;  %2166 = vmatprep.mubr.f32.mxu0 %v12175_v15  ;;  %2368 = vmatprep.mubr.f32.mxu1 %v12175_v15 }
 0x389   :  { %v12791_v36 = vpop.permute.xlu0 %2850 }
 0x38a   :  { %9456 = vmatmul.mubr.msk.f32.gmra.mxu0 %vm1534_vm13, %v9448_v63  ;;  %9472 = vmatmul.mubr.msk.f32.gmra.mxu1 %vm1534_vm13, %v9464_v3  ;;  %v9483_v3 = vld [vmem:[%s13425_s5 + $0x170] sm:$0xff] }
 0x38b   :  { %v12795_v4 = vpop.permute.xlu1 %2846  ;;  %2172 = vmatprep.mubr.f32.mxu0 %v12175_v15  ;;  %2374 = vmatprep.mubr.f32.mxu1 %v12175_v15 }
 0x38d   :  { %v12805_v14 = vpop.permute.xlu0 %2842 }
 0x38e   :  { %9457 = vmatmul.mubr.msk.f32.gmra.mxu0 %vm1534_vm13, %v9449_v1  ;;  %9473 = vmatmul.mubr.msk.f32.gmra.mxu1 %vm1534_vm13, %v9465_v32 }
 0x38f   :  { %v12809_v58 = vpop.permute.xlu1 %2844  ;;  %2178 = vmatprep.mubr.f32.mxu0 %v12175_v15  ;;  %2380 = vmatprep.mubr.f32.mxu1 %v12175_v15 }
 0x391   :  { %v2647_v57 = vpop.permute.xlu0 %2646 }
 0x392   :  { %v2656_v34 = vsel %vm947_vm7, %v12665_v26, %v2647_v57  ;;  %9458 = vmatmul.mubr.msk.f32.gmra.mxu0 %vm1534_vm13, %v9450_v60  ;;  %9474 = vmatmul.mubr.msk.f32.gmra.mxu1 %vm1534_vm13, %v9466_v54  ;;  %v2657_v61 = vsel %vm947_vm7, %v2647_v57, %v12656_v50  ;;  %v9467_v50 = vld [vmem:[%s13425_s5 + $0x130] sm:$0xff]  ;;  %v2857_v54 = vsel %vm1079_vm8, %v12805_v14, %v12809_v58 }
 0x393   :  { %2714 = vmatprep.subr.mxu1 %v2657_v61  ;;  %v2445_v53 = vpop.permute.xlu1 %2444  ;;  %2184 = vmatprep.mubr.f32.mxu0 %v12175_v15  ;;  %v9484_v61 = vld [vmem:[%s13425_s5 + $0x178] sm:$0xff] }
 0x394   :  { %v2454_v10 = vsel %vm815_vm6, %v12635_v13, %v2445_v53  ;;  %2715 = vmatpush1.msra.mxu1 %v2656_v34  ;;  %v2455_v26 = vsel %vm815_vm6, %v2445_v53, %v12625_v5  ;;  %2386 = vmatprep.mubr.f32.mxu1 %v12175_v15  ;;  %v2453_v5 = vsel %vm815_vm6, %v12644_v2, %v12647_v46 }
 0x395   :  { %v12843_v25 = vpop.permute.xlu0 %2840  ;;  %2512 = vmatprep.subr.mxu0 %v2455_v26  ;;  %2716 = vmatprep.subr.mxu1 %v2655_v20  ;;  %v2653_v13 = vsel %vm947_vm7, %v12725_v21, %v2637_v49  ;;  %v2651_v2 = vsel %vm947_vm7, %v12767_v38, %v2631_v45  ;;  %v9497_v49 = vld [vmem:[%s13425_s5 + $0x1a0] sm:$0xff]  ;;  %v9482_v38 = vld [vmem:[%s13425_s5 + $0x168] sm:$0xff] }
 0x396   :  { %9459 = vmatmul.mubr.msk.f32.gmra.mxu0 %vm1534_vm13, %v9451_v52  ;;  %2717 = vmatpush1.msra.mxu1 %v2654_v23  ;;  %v2856_v53 = vsel %vm1079_vm8, %v12843_v25, %v12805_v14  ;;  %v9500_v52 = vld [vmem:[%s13425_s5 + $0x1b8] sm:$0xff] }
 0x397   :  { %2513 = vmatpush1.msra.mxu0 %v2454_v10  ;;  %9475 = vmatmul.mubr.msk.f32.gmra.mxu1 %vm1534_vm13, %v9467_v50  ;;  %v12852_v19 = vpop.permute.xlu1 %3052  ;;  %v9509_v50 = vld [vmem:[%s13425_s5 + $0x1c0] sm:$0xff] }
 0x398   :  { %2514 = vmatprep.subr.mxu0 %v2453_v5  ;;  %2718 = vmatprep.subr.mxu1 %v2653_v13  ;;  %v9525_v5 = vld [vmem:[%s13425_s5 + $0x200] sm:$0xff] }
 0x399   :  { %2190 = vmatprep.mubr.f32.mxu0 %v12175_v15  ;;  %2515 = vmatpush1.msra.mxu0 %v2452_v33  ;;  %v12863_v46 = vpop.permute.xlu0 %2836  ;;  %v9511_v33 = vld [vmem:[%s13425_s5 + $0x1d0] sm:$0xff] }
 0x39a   :  { %2719 = vmatpush1.msra.mxu1 %v2652_v18  ;;  %9460 = vmatmul.mubr.msk.f32.gmra.mxu0 %vm1534_vm13, %v9452_v6  ;;  %v9526_v6 = vld [vmem:[%s13425_s5 + $0x208] sm:$0xff]  ;;  %v9527_v18 = vld [vmem:[%s13425_s5 + $0x210] sm:$0xff] }
 0x39b   :  { %2516 = vmatprep.subr.mxu0 %v2451_v28  ;;  %2720 = vmatprep.subr.mxu1 %v2651_v2  ;;  %v3049_v9 = vpop.permute.xlu1 %3048  ;;  %v9528_v28 = vld [vmem:[%s13425_s5 + $0x218] sm:$0xff]  ;;  %v9513_v2 = vld [vmem:[%s13425_s5 + $0x1e0] sm:$0xff] }
 0x39c   :  { %2392 = vmatprep.mubr.f32.mxu1 %v12175_v15  ;;  %2517 = vmatpush1.msra.mxu0 %v2450_v48  ;;  %v9529_v48 = vld [vmem:[%s13425_s5 + $0x220] sm:$0xff] }
 0x39d   :  { %2721 = vmatpush1.msra.mxu1 %v2650_v29  ;;  %2518 = vmatprep.subr.mxu0 %v2449_v0  ;;  %v3045_v16 = vpop.permute.xlu0 %3044  ;;  %v9515_v29 = vld [vmem:[%s13425_s5 + $0x1f0] sm:$0xff] }
 0x39e   :  { %9476 = vmatmul.mubr.msk.f32.gmra.mxu1 %vm1534_vm13, %v9468_v35  ;;  %2519 = vmatpush1.msra.mxu0 %v2448_v55  ;;  %v9514_v35 = vld [vmem:[%s13425_s5 + $0x1e8] sm:$0xff]  ;;  %v9531_v0 = vld [vmem:[%s13425_s5 + $0x230] sm:$0xff]  ;;  %v9516_v55 = vld [vmem:[%s13425_s5 + $0x1f8] sm:$0xff] }
 0x39f   :  { %2552 = vmatprep.mubr.f32.mxu0 %v12175_v15  ;;  %2754 = vmatprep.mubr.f32.mxu1 %v12175_v15  ;;  %v12896_v62 = vpop.permute.xlu1 %2838 }
 0x3a0   :  { %9485 = vmatmul.mubr.msk.f32.vlgmr.msra.gmra.mxu0 %vm1534_vm13, %v9477_v8  ;;  %v2855_v58 = vsel %vm1079_vm8, %v12863_v46, %v12896_v62  ;;  %v10916_v8 = vld [vmem:[#allocation12 + $0x78] sm:$0xff]  }
 0x3a1   :  { %2558 = vmatprep.mubr.f32.mxu0 %v12175_v15  ;;  %v12900_v7 = vpop.permute.xlu0 %2834  ;;  %v10918_v62 = vld [vmem:[#allocation12 + $0xf8] sm:$0xff]  }
 0x3a2   :  { %9501 = vmatmul.mubr.msk.f32.vlgmr.msra.gmra.mxu1 %vm1534_vm13, %v9493_v56  ;;  %v2854_v26 = vsel %vm1079_vm8, %v12900_v7, %v12863_v46  ;;  %v9512_v46 = vld [vmem:[%s13425_s5 + $0x1d8] sm:$0xff]  ;;  %v10917_v56 = vld [vmem:[#allocation12 + $0x38] sm:$0xff]  }
 0x3a3   :  { %2760 = vmatprep.mubr.f32.mxu1 %v12175_v15  ;;  %v3047_v21 = vpop.permute.xlu1 %3046  ;;  %v10919_v7 = vld [vmem:[#allocation12 + $0xb8] sm:$0xff]  }
 0x3a4   :  { %9486 = vmatmul.mubr.msk.f32.gmra.mxu0 %vm1534_vm13, %v9478_v27  ;;  %v3059_v1 = vsel %vm1211_vm9, %v3045_v16, %v3047_v21  ;;  %v10920_v27 = vld [vmem:[#allocation12 + $0x70] sm:$0xff]  }
 0x3a5   :  { %2564 = vmatprep.mubr.f32.mxu0 %v12175_v15  ;;  %v12912_v47 = vpop.permute.xlu0 %2830  ;;  %v10922_v21 = vld [vmem:[#allocation12 + $0xf0] sm:$0xff]  }
 0x3a6   :  { %9502 = vmatmul.mubr.msk.f32.gmra.mxu1 %vm1534_vm13, %v9494_v24  ;;  %v10921_v24 = vld [vmem:[#allocation12 + $0x30] sm:$0xff]  }
 0x3a7   :  { %2766 = vmatprep.mubr.f32.mxu1 %v12175_v15  ;;  %v3043_v59 = vpop.permute.xlu1 %3042 }
 0x3a8   :  { %9487 = vmatmul.mubr.msk.f32.gmra.mxu0 %vm1534_vm13, %v9479_v30  ;;  %v3058_v32 = vsel %vm1211_vm9, %v3043_v59, %v3045_v16  ;;  %v9532_v16 = vld [vmem:[%s13425_s5 + $0x238] sm:$0xff]  ;;  %v10924_v30 = vld [vmem:[#allocation12 + $0x68] sm:$0xff]  }
 0x3a9   :  { %2570 = vmatprep.mubr.f32.mxu0 %v12175_v15  ;;  %v3039_v22 = vpop.permute.xlu0 %3038  ;;  %v10926_v59 = vld [vmem:[#allocation12 + $0xe8] sm:$0xff]  }
 0x3aa   :  { %9503 = vmatmul.mubr.msk.f32.gmra.mxu1 %vm1534_vm13, %v9495_v11  ;;  %v10925_v11 = vld [vmem:[#allocation12 + $0x28] sm:$0xff]  }
 0x3ab   :  { %2772 = vmatprep.mubr.f32.mxu1 %v12175_v15  ;;  %v2833_v31 = vpop.permute.xlu1 %2832 }
 0x3ac   :  { %9488 = vmatmul.mubr.msk.f32.gmra.mxu0 %vm1534_vm13, %v9480_v41  ;;  %v2853_v20 = vsel %vm1079_vm8, %v12912_v47, %v2833_v31  ;;  %v10929_v31 = vld [vmem:[#allocation12 + $0x20] sm:$0xff]  }
 0x3ad   :  { %2576 = vmatprep.mubr.f32.mxu0 %v12175_v15  ;;  %v2829_v51 = vpop.permute.xlu0 %2828 }
 0x3ae   :  { %9504 = vmatmul.mubr.msk.f32.gmra.mxu1 %vm1534_vm13, %v9496_v17  ;;  %v2852_v25 = vsel %vm1079_vm8, %v2829_v51, %v12912_v47  ;;  %v10923_v47 = vld [vmem:[#allocation12 + $0xb0] sm:$0xff]   ;;  %v10928_v17 = vld [vmem:[#allocation12 + $0x60] sm:$0xff]  }
 0x3af   :  { %2778 = vmatprep.mubr.f32.mxu1 %v12175_v15  ;;  %v3041_v40 = vpop.permute.xlu1 %3040 }
 0x3b0   :  { %9489 = vmatmul.mubr.msk.f32.gmra.mxu0 %vm1534_vm13, %v9481_v42  ;;  %v3057_v57 = vsel %vm1211_vm9, %v3039_v22, %v3041_v40  ;;  %v10930_v42 = vld [vmem:[#allocation12 + $0xe0] sm:$0xff]  }
 0x3b1   :  { %2582 = vmatprep.mubr.f32.mxu0 %v12175_v15  ;;  %v3051_v12 = vpop.permute.xlu0 %3050  ;;  %v10931_v40 = vld [vmem:[#allocation12 + $0xa0] sm:$0xff]  }
 0x3b2   :  { %9505 = vmatmul.mubr.msk.f32.gmra.mxu1 %vm1534_vm13, %v9497_v49  ;;  %v3060_v43 = vsel %vm1211_vm9, %v3049_v9, %v3051_v12  ;;  %v3061_v44 = vsel %vm1211_vm9, %v3051_v12, %v12852_v19  ;;  %v9510_v19 = vld [vmem:[%s13425_s5 + $0x1c8] sm:$0xff]  ;;  %v1762_v49 = vpop.f32.mrf.mxu0 }
 0x3b3   :  { %2784 = vmatprep.mubr.f32.mxu1 %v12175_v15  ;;  %3118 = vmatprep.subr.mxu1 %v3061_v44  ;;  %v2849_v37 = vpop.permute.xlu1 %2848  ;;  %v9530_v9 = vld [vmem:[%s13425_s5 + $0x228] sm:$0xff] }
 0x3b4   :  { %9490 = vmatmul.mubr.msk.f32.gmra.mxu0 %vm1534_vm13, %v9482_v38  ;;  %v2858_v45 = vsel %vm1079_vm8, %v12795_v4, %v2849_v37  ;;  %3119 = vmatpush1.msra.mxu1 %v3060_v43  ;;  %v2859_v63 = vsel %vm1079_vm8, %v2849_v37, %v12791_v36  ;;  %v9499_v36 = vld [vmem:[%s13425_s5 + $0x1b0] sm:$0xff]  ;;  %v10932_v38 = vld [vmem:[#allocation12 + $0x58] sm:$0xff]   ;;  %v1764_v37 = vpop.f32.mrf.mxu0 }
 0x3b5   :  { %2588 = vmatprep.mubr.f32.mxu0 %v12175_v15  ;;  %2916 = vmatprep.subr.mxu0 %v2859_v63  ;;  %v3033_v60 = vpop.permute.xlu0 %3032  ;;  %v10933_v43 = vld [vmem:[#allocation12 + $0x18] sm:$0xff]  }
 0x3b6   :  { %9506 = vmatmul.mubr.msk.f32.gmra.mxu1 %vm1534_vm13, %v9498_v39  ;;  %3120 = vmatprep.subr.mxu1 %v3059_v1  ;;  %v10934_v39 = vld [vmem:[#allocation12 + $0xd8] sm:$0xff]   ;;  %v10937_v1 = vld [vmem:[#allocation12 + $0x10] sm:$0xff]  }
 0x3b7   :  { %2790 = vmatprep.mubr.f32.mxu1 %v12175_v15  ;;  %2917 = vmatpush1.msra.mxu0 %v2858_v45  ;;  %v3037_v4 = vpop.permute.xlu1 %3036  ;;  %v10935_v45 = vld [vmem:[#allocation12 + $0x98] sm:$0xff]  }
 0x3b8   :  { %9491 = vmatmul.mubr.msk.f32.gmra.mxu0 %vm1534_vm13, %v9483_v3  ;;  %3121 = vmatpush1.msra.mxu1 %v3058_v32  ;;  %v3056_v34 = vsel %vm1211_vm9, %v3037_v4, %v3039_v22  ;;  %v10927_v22 = vld [vmem:[#allocation12 + $0xa8] sm:$0xff]   ;;  %v10936_v3 = vld [vmem:[#allocation12 + $0x50] sm:$0xff]  }
 0x3b9   :  { %2918 = vmatprep.subr.mxu0 %v2857_v54  ;;  %3122 = vmatprep.subr.mxu1 %v3057_v57  ;;  %v3031_v14 = vpop.permute.xlu0 %3030  ;;  %v10939_v4 = vld [vmem:[#allocation12 + $0x90] sm:$0xff]   ;;  %v10940_v57 = vld [vmem:[#allocation12 + $0x48] sm:$0xff]  }
 0x3ba   :  { %9507 = vmatmul.mubr.msk.f32.gmra.mxu1 %vm1534_vm13, %v9499_v36  ;;  %2594 = vmatprep.mubr.f32.mxu0 %v12175_v15  ;;  %v3054_v13 = vsel %vm1211_vm9, %v3031_v14, %v3033_v60  ;;  %v1768_v36 = vpop.f32.mrf.mxu0  ;;  %v10945_v14 = vld [vmem:[#allocation12] sm:$0xff]  }
 0x3bb   :  { %2919 = vmatpush1.msra.mxu0 %v2856_v53  ;;  %3123 = vmatpush1.msra.mxu1 %v3056_v34  ;;  %v3035_v10 = vpop.permute.xlu1 %3034  ;;  %v10941_v34 = vld [vmem:[#allocation12 + $0x8] sm:$0xff]  }
 0x3bc   :  { %9492 = vmatmul.mubr.msk.f32.gmra.mxu0 %vm1534_vm13, %v9484_v61  ;;  %2920 = vmatprep.subr.mxu0 %v2855_v58  ;;  %v3055_v23 = vsel %vm1211_vm9, %v3033_v60, %v3035_v10  ;;  %v10938_v60 = vld [vmem:[#allocation12 + $0xd0] sm:$0xff]   ;;  %v10942_v53 = vld [vmem:[#allocation12 + $0xc8] sm:$0xff]   ;;  %v13093_v58 = vpop.f32.mrf.mxu0 }
 0x3bd   :  { %2796 = vmatprep.mubr.f32.mxu1 %v12175_v15  ;;  %2921 = vmatpush1.msra.mxu0 %v2854_v26  ;;  %v10944_v26 = vld [vmem:[#allocation12 + $0x40] sm:$0xff]  }
 0x3be   :  { %9508 = vmatmul.mubr.msk.f32.gmra.mxu1 %vm1534_vm13, %v9500_v52  ;;  %2922 = vmatprep.subr.mxu0 %v2853_v20  ;;  %v10943_v52 = vld [vmem:[#allocation12 + $0x88] sm:$0xff]  }
 0x3bf   :  { %2923 = vmatpush1.msra.mxu0 %v2852_v25  ;;  %2956 = vmatprep.mubr.f32.mxu0 %v12175_v15  ;;  %v10947_v25 = vld [vmem:[#allocation12 + $0x80] sm:$0xff]  }
 0x3c0   :  { %9517 = vmatmul.mubr.msk.f32.vlgmr.msra.gmra.mxu0 %vm1534_vm13, %v9509_v50  ;;  %3124 = vmatprep.subr.mxu1 %v3055_v23  ;;  %v10946_v50 = vld [vmem:[#allocation12 + $0xc0] sm:$0xff]   ;;  %v1774_v23 = vpop.f32.mrf.mxu0 }
 0x3c1   :  { %3125 = vmatpush1.msra.mxu1 %v3054_v13  ;;  %3158 = vmatprep.mubr.f32.mxu1 %v12175_v15  ;;  %v10948_v13 = vld [vmem:[#allocation12 + $0x1f8] sm:$0xff]  }
 0x3c2   :  { %9533 = vmatmul.mubr.msk.f32.vlgmr.msra.gmra.mxu1 %vm1534_vm13, %v9525_v5  ;;  %2962 = vmatprep.mubr.f32.mxu0 %v12175_v15 }
 0x3c3   :  { %3164 = vmatprep.mubr.f32.mxu1 %v12175_v15  ;;  %10106 = vmatprep.subr.bf16.mxu1 %v10916_v8 }
 0x3c4   :  { %9518 = vmatmul.mubr.msk.f32.gmra.mxu0 %vm1534_vm13, %v9510_v19  ;;  %10107 = vmatpush3.bf16.msra.mxu1 %v10917_v56 }
 0x3c5   :  { %2968 = vmatprep.mubr.f32.mxu0 %v12175_v15  ;;  %10084 = vmatprep.subr.bf16.mxu0 %v10918_v62 }
 0x3c6   :  { %9534 = vmatmul.mubr.msk.f32.gmra.mxu1 %vm1534_vm13, %v9526_v6  ;;  %10085 = vmatpush3.bf16.msra.mxu0 %v10919_v7  ;;  %v10950_v6 = vld [vmem:[#allocation12 + $0x178] sm:$0xff]  }
 0x3c7   :  { %3170 = vmatprep.mubr.f32.mxu1 %v12175_v15  ;;  %10108 = vmatprep.subr.bf16.mxu1 %v10920_v27 }
 0x3c8   :  { %9519 = vmatmul.mubr.msk.f32.gmra.mxu0 %vm1534_vm13, %v9511_v33  ;;  %10109 = vmatpush3.bf16.msra.mxu1 %v10921_v24  ;;  %v1776_v33 = vpop.f32.mrf.mxu0 }
 0x3c9   :  { %2974 = vmatprep.mubr.f32.mxu0 %v12175_v15  ;;  %10086 = vmatprep.subr.bf16.mxu0 %v10922_v21 }
 0x3ca   :  { %9535 = vmatmul.mubr.msk.f32.gmra.mxu1 %vm1534_vm13, %v9527_v18  ;;  %10087 = vmatpush3.bf16.msra.mxu0 %v10923_v47 }
 0x3cb   :  { %3176 = vmatprep.mubr.f32.mxu1 %v12175_v15  ;;  %10110 = vmatprep.subr.bf16.mxu1 %v10924_v30 }
 0x3cc   :  { %9520 = vmatmul.mubr.msk.f32.gmra.mxu0 %vm1534_vm13, %v9512_v46  ;;  %10111 = vmatpush3.bf16.msra.mxu1 %v10925_v11 }
 0x3cd   :  { %2980 = vmatprep.mubr.f32.mxu0 %v12175_v15  ;;  %10088 = vmatprep.subr.bf16.mxu0 %v10926_v59 }
 0x3ce   :  { %9536 = vmatmul.mubr.msk.f32.gmra.mxu1 %vm1534_vm13, %v9528_v28  ;;  %10089 = vmatpush3.bf16.msra.mxu0 %v10927_v22  ;;  %v1780_v28 = vpop.f32.mrf.mxu0 }
 0x3cf   :  { %3182 = vmatprep.mubr.f32.mxu1 %v12175_v15  ;;  %10112 = vmatprep.subr.bf16.mxu1 %v10928_v17 }
 0x3d0   :  { %9521 = vmatmul.mubr.msk.f32.gmra.mxu0 %vm1534_vm13, %v9513_v2  ;;  %10113 = vmatpush3.bf16.msra.mxu1 %v10929_v31 }
 0x3d1   :  { %2986 = vmatprep.mubr.f32.mxu0 %v12175_v15  ;;  %10090 = vmatprep.subr.bf16.mxu0 %v10930_v42 }
 0x3d2   :  { %9537 = vmatmul.mubr.msk.f32.gmra.mxu1 %vm1534_vm13, %v9529_v48  ;;  %10091 = vmatpush3.bf16.msra.mxu0 %v10931_v40 }
 0x3d3   :  { %3188 = vmatprep.mubr.f32.mxu1 %v12175_v15  ;;  %10114 = vmatprep.subr.bf16.mxu1 %v10932_v38 }
 0x3d4   :  { %9522 = vmatmul.mubr.msk.f32.gmra.mxu0 %vm1534_vm13, %v9514_v35  ;;  %10115 = vmatpush3.bf16.msra.mxu1 %v10933_v43  ;;  %v13099_v35 = vpop.f32.mrf.mxu0 }
 0x3d5   :  { %2992 = vmatprep.mubr.f32.mxu0 %v12175_v15  ;;  %10092 = vmatprep.subr.bf16.mxu0 %v10934_v39 }
 0x3d6   :  { %9538 = vmatmul.mubr.msk.f32.gmra.mxu1 %vm1534_vm13, %v9530_v9  ;;  %10093 = vmatpush3.bf16.msra.mxu0 %v10935_v45  ;;  %v1786_v8 = vpop.f32.mrf.mxu0 }
 0x3d7   :  { %3194 = vmatprep.mubr.f32.mxu1 %v12175_v15  ;;  %10116 = vmatprep.subr.bf16.mxu1 %v10936_v3 }
 0x3d8   :  { %9523 = vmatmul.mubr.msk.f32.gmra.mxu0 %vm1534_vm13, %v9515_v29  ;;  %10117 = vmatpush3.bf16.msra.mxu1 %v10937_v1  ;;  %v1788_v21 = vpop.f32.mrf.mxu0 }
 0x3d9   :  { %2998 = vmatprep.mubr.f32.mxu0 %v12175_v15  ;;  %10094 = vmatprep.subr.bf16.mxu0 %v10938_v60 }
 0x3da   :  { %9539 = vmatmul.mubr.msk.f32.gmra.mxu1 %vm1534_vm13, %v9531_v0  ;;  %10095 = vmatpush3.bf16.msra.mxu0 %v10939_v4 }
 0x3db   :  { %3200 = vmatprep.mubr.f32.mxu1 %v12175_v15  ;;  %10118 = vmatprep.subr.bf16.mxu1 %v10940_v57 }
 0x3dc   :  { %9524 = vmatmul.mubr.msk.f32.gmra.mxu0 %vm1534_vm13, %v9516_v55  ;;  %10119 = vmatpush3.bf16.msra.mxu1 %v10941_v34 }
 0x3dd   :  { %10096 = vmatprep.subr.bf16.mxu0 %v10942_v53  ;;  %10120 = vmatprep.subr.bf16.mxu1 %v10944_v26 }
 0x3de   :  { %9540 = vmatmul.mubr.msk.f32.gmra.mxu1 %vm1534_vm13, %v9532_v16  ;;  %10097 = vmatpush3.bf16.msra.mxu0 %v10943_v52 }
 0x3df   :  { %10098 = vmatprep.subr.bf16.mxu0 %v10946_v50 }
 0x3e0   :  { %10121 = vmatpush3.bf16.msra.mxu1 %v10945_v14 }
 0x3e1   :  { %10150 = vmatprep.subr.bf16.mxu1 %v10948_v13 }
 0x3e2   :  { %10099 = vmatpush3.bf16.msra.mxu0 %v10947_v25 }
 0x3e3   :  { %10128 = vmatprep.subr.bf16.mxu0 %v10950_v6 }
 0x3fd   :  { %v13083_v41 = vpop.f32.mrf.mxu1 }
 0x3fe   :  { %v1763_v9 = vadd.f32 %v1762_v49, %v13083_v41  ;;  %v1792_v41 = vpop.f32.mrf.mxu0 }
 0x3ff   :  { %v13085_v51 = vpop.f32.mrf.mxu1 }
 0x400   :  { %v1765_v0 = vadd.f32 %v1764_v37, %v13085_v51  ;;  %v13114_v40 = vpop.f32.mrf.mxu0 }
 0x401   :  { %v13087_v12 = vpop.f32.mrf.mxu1 }
 0x402   :  { %v1769_v56 = vadd.f32 %v1768_v36, %v13087_v12  ;;  %v1798_v37 = vpop.f32.mrf.mxu0 }
 0x403   :  { %v13089_v44 = vpop.f32.mrf.mxu1 }
 0x404   :  { %v1800_v60 = vpop.f32.mrf.mxu0 }
 0x405   :  { %v1637_v63 = vpop.f32.mrf.mxu1 }
 0x406   :  { %v1775_v47 = vadd.f32 %v1774_v23, %v1637_v63  ;;  %v1804_v53 = vpop.f32.mrf.mxu0 }
 0x407   :  { %v1639_v32 = vpop.f32.mrf.mxu1 }
 0x408   :  { %v1777_v11 = vadd.f32 %v1776_v33, %v1639_v32  ;;  %v1806_v50 = vpop.f32.mrf.mxu0 }
 0x409   :  { %v1643_v54 = vpop.f32.mrf.mxu1 }
 0x40a   :  { %v1781_v17 = vadd.f32 %v1780_v28, %v1643_v54 }
 0x40b   :  { %v13091_v61 = vpop.f32.mrf.mxu1 }
 0x40d   :  { %v1649_v10 = vpop.f32.mrf.mxu1 }
 0x40e   :  { %v1787_v12 = vadd.f32 %v1786_v8, %v1649_v10 }
 0x40f   :  { %v1651_v20 = vpop.f32.mrf.mxu1 }
 0x410   :  { %v1789_v43 = vadd.f32 %v1788_v21, %v1651_v20 }
 0x411   :  { %v1655_v5 = vpop.f32.mrf.mxu1 }
 0x412   :  { %v1793_v63 = vadd.f32 %v1792_v41, %v1655_v5 }
 0x413   :  { %v13095_v19 = vpop.f32.mrf.mxu1 }
 0x415   :  { %v1661_v18 = vpop.f32.mrf.mxu1 }
 0x416   :  { %v1799_v4 = vadd.f32 %v1798_v37, %v1661_v18 }
 0x417   :  { %v1663_v46 = vpop.f32.mrf.mxu1 }
 0x418   :  { %v1801_v57 = vadd.f32 %v1800_v60, %v1663_v46 }
 0x41a   :  { %v1667_v2 = vpop.f32.mrf.mxu1 }
 0x41b   :  { %v1805_v26 = vadd.f32 %v1804_v53, %v1667_v2 }
 0x41c   :  { %v13097_v48 = vpop.f32.mrf.mxu1 }
 0x41e   :  { %v1948_v29 = vpop.f32.mrf.mxu1 }
 0x41f   :  { %v13103_v55 = vadd.f32 %v1948_v29, %v1763_v9 }
 0x420   :  { %v1950_v16 = vpop.f32.mrf.mxu1 }
 0x421   :  { %v13106_v62 = vadd.f32 %v1950_v16, %v1765_v0 }
 0x422   :  { %v1954_v7 = vpop.f32.mrf.mxu1 }
 0x423   :  { %v13108_v27 = vadd.f32 %v1954_v7, %v1769_v56 }
 0x424   :  { %v13110_v24 = vpop.f32.mrf.mxu1 }
 0x426   :  { %v1960_v30 = vpop.f32.mrf.mxu1 }
 0x427   :  { %v1999_v59 = vadd.f32 %v1960_v30, %v1775_v47 }
 0x428   :  { %v1962_v22 = vpop.f32.mrf.mxu1 }
 0x429   :  { %v2000_v31 = vadd.f32 %v1962_v22, %v1777_v11 }
 0x42a   :  { %v1966_v51 = vpop.f32.mrf.mxu1 }
 0x42b   :  { %v2001_v42 = vadd.f32 %v1966_v51, %v1781_v17 }
 0x42c   :  { %v13112_v49 = vpop.f32.mrf.mxu1 }
 0x42e   :  { %v1972_v38 = vpop.f32.mrf.mxu1 }
 0x42f   :  { %v2003_v39 = vadd.f32 %v1972_v38, %v1787_v12 }
 0x430   :  { %v1974_v45 = vpop.f32.mrf.mxu1 }
 0x431   :  { %v2004_v3 = vadd.f32 %v1974_v45, %v1789_v43 }
 0x432   :  { %v1978_v1 = vpop.f32.mrf.mxu1 }
 0x433   :  { %v2005_v32 = vadd.f32 %v1978_v1, %v1793_v63 }
 0x434   :  { %v13116_v36 = vpop.f32.mrf.mxu1 }
 0x436   :  { %v1984_v54 = vpop.f32.mrf.mxu1 }
 0x437   :  { %v2007_v34 = vadd.f32 %v1984_v54, %v1799_v4 }
 0x438   :  { %v1986_v52 = vpop.f32.mrf.mxu1 }
 0x439   :  { %v2008_v10 = vadd.f32 %v1986_v52, %v1801_v57 }
 0x43a   :  { %v1990_v14 = vpop.f32.mrf.mxu1 }
 0x43b   :  { %v2009_v20 = vadd.f32 %v1990_v14, %v1805_v26  ;;  %v1807_v26 = vadd.f32 %v1806_v50, %v13097_v48 }
 0x43c   :  { %v1992_v23 = vpop.f32.mrf.mxu1 }
 0x43e   :  { %v13118_v25 = vpop.f32.mrf.mxu0  ;;  %v13120_v5 = vpop.f32.mrf.mxu1 }
 0x440   :  { %v13122_v13 = vpop.f32.mrf.mxu0  ;;  %v13124_v6 = vpop.f32.mrf.mxu1 }
 0x442   :  { %v13126_v33 = vpop.f32.mrf.mxu0  ;;  %v13128_v18 = vpop.f32.mrf.mxu1 }
 0x444   :  { %v13130_v46 = vpop.f32.mrf.mxu0  ;;  %v13132_v28 = vpop.f32.mrf.mxu1 }
 0x446   :  { %v2162_v2 = vpop.f32.mrf.mxu0  ;;  %v2364_v9 = vpop.f32.mrf.mxu1 }
 0x447   :  { %v2201_v29 = vadd.f32 %v2162_v2, %v1999_v59 }
 0x448   :  { %v2164_v0 = vpop.f32.mrf.mxu0  ;;  %v2366_v16 = vpop.f32.mrf.mxu1 }
 0x449   :  { %v2202_v8 = vadd.f32 %v2164_v0, %v2000_v31  ;;  %v2403_v56 = vadd.f32 %v2364_v9, %v2201_v29 }
 0x44a   :  { %v2168_v7 = vpop.f32.mrf.mxu0  ;;  %v2370_v21 = vpop.f32.mrf.mxu1 }
 0x44b   :  { %v2203_v47 = vadd.f32 %v2168_v7, %v2001_v42  ;;  %v2404_v30 = vadd.f32 %v2366_v16, %v2202_v8 }
 0x44c   :  { %v2170_v11 = vpop.f32.mrf.mxu0  ;;  %v2372_v22 = vpop.f32.mrf.mxu1 }
 0x44d   :  { %v2405_v41 = vadd.f32 %v2370_v21, %v2203_v47 }
 0x44e   :  { %v2174_v17 = vpop.f32.mrf.mxu0  ;;  %v2376_v51 = vpop.f32.mrf.mxu1 }
 0x44f   :  { %v2205_v12 = vadd.f32 %v2174_v17, %v2003_v39 }
 0x450   :  { %v2176_v38 = vpop.f32.mrf.mxu0  ;;  %v2378_v43 = vpop.f32.mrf.mxu1 }
 0x451   :  { %v2206_v37 = vadd.f32 %v2176_v38, %v2004_v3  ;;  %v2407_v45 = vadd.f32 %v2376_v51, %v2205_v12  ;;  %v2010_v3 = vadd.f32 %v1992_v23, %v1807_v26 }
 0x452   :  { %v2180_v63 = vpop.f32.mrf.mxu0  ;;  %v2382_v59 = vpop.f32.mrf.mxu1 }
 0x453   :  { %v2207_v1 = vadd.f32 %v2180_v63, %v2005_v32  ;;  %v2408_v60 = vadd.f32 %v2378_v43, %v2206_v37 }
 0x454   :  { %v2182_v31 = vpop.f32.mrf.mxu0  ;;  %v2384_v4 = vpop.f32.mrf.mxu1 }
 0x455   :  { %v2409_v54 = vadd.f32 %v2382_v59, %v2207_v1 }
 0x456   :  { %v2186_v57 = vpop.f32.mrf.mxu0 }
 0x457   :  { %v2209_v42 = vadd.f32 %v2186_v57, %v2007_v34  ;;  %v2388_v53 = vpop.f32.mrf.mxu1 }
 0x458   :  { %v2188_v52 = vpop.f32.mrf.mxu0 }
 0x459   :  { %v2210_v14 = vadd.f32 %v2188_v52, %v2008_v10  ;;  %v13135_v2 = vadd.f32 %v2388_v53, %v2209_v42  ;;  %v2390_v9 = vpop.f32.mrf.mxu1 }
 0x45a   :  { %v2192_v39 = vpop.f32.mrf.mxu0 }
 0x45b   :  { %v2211_v29 = vadd.f32 %v2192_v39, %v2009_v20  ;;  %v13137_v0 = vadd.f32 %v2390_v9, %v2210_v14  ;;  %v1783_v20 = vadd.f32 %v13099_v35, %v13091_v61  ;;  %v1795_v61 = vadd.f32 %v13114_v40, %v13095_v19 }
 0x45c   :  { %v2194_v32 = vpop.f32.mrf.mxu0 }
 0x45d   :  { %v2212_v16 = vadd.f32 %v2194_v32, %v2010_v3  ;;  %v2002_v12 = vadd.f32 %v13112_v49, %v1783_v20  ;;  %v2006_v9 = vadd.f32 %v13116_v36, %v1795_v61  ;;  %v2197_v20 = vadd.f32 %v13118_v25, %v13103_v55 }
 0x45e   :  { %v2394_v8 = vpop.f32.mrf.mxu1  ;;  %v2199_v25 = vadd.f32 %v13126_v33, %v13108_v27 }
 0x45f   :  { %v13139_v7 = vadd.f32 %v2394_v8, %v2211_v29  ;;  %v2204_v37 = vadd.f32 %v2170_v11, %v2002_v12  ;;  %v2208_v29 = vadd.f32 %v2182_v31, %v2006_v9  ;;  %v1771_v31 = vadd.f32 %v13093_v58, %v13089_v44 }
 0x460   :  { %v2396_v21 = vpop.f32.mrf.mxu1  ;;  %v2554_v34 = vpop.f32.mrf.mxu0  ;;  %v2399_v55 = vadd.f32 %v13120_v5, %v2197_v20 }
 0x461   :  { %v13141_v47 = vadd.f32 %v2396_v21, %v2212_v16  ;;  %v2406_v35 = vadd.f32 %v2372_v22, %v2204_v37  ;;  %v2410_v36 = vadd.f32 %v2384_v4, %v2208_v29 }
 0x462   :  { %v13143_v17 = vpop.f32.mrf.mxu0  ;;  %v13145_v48 = vpop.f32.mrf.mxu1 }
 0x464   :  { %v13147_v10 = vpop.f32.mrf.mxu0  ;;  %v13149_v50 = vpop.f32.mrf.mxu1 }
 0x466   :  { %v13153_v23 = vpop.f32.mrf.mxu0  ;;  %v13155_v51 = vpop.f32.mrf.mxu1 }
 0x468   :  { %v2566_v38 = vpop.f32.mrf.mxu0  ;;  %v13158_v43 = vpop.f32.mrf.mxu1 }
 0x469   :  { %v2605_v63 = vadd.f32 %v2566_v38, %v2403_v56 }
 0x46a   :  { %v2568_v59 = vpop.f32.mrf.mxu0  ;;  %v2768_v1 = vpop.f32.mrf.mxu1 }
 0x46b   :  { %v2606_v57 = vadd.f32 %v2568_v59, %v2404_v30  ;;  %v13160_v42 = vadd.f32 %v2768_v1, %v2605_v63  ;;  %v2198_v63 = vadd.f32 %v13122_v13, %v13106_v62  ;;  %v1998_v1 = vadd.f32 %v13110_v24, %v1771_v31 }
 0x46c   :  { %v2572_v53 = vpop.f32.mrf.mxu0  ;;  %v2770_v52 = vpop.f32.mrf.mxu1 }
 0x46d   :  { %v2607_v26 = vadd.f32 %v2572_v53, %v2405_v41  ;;  %v13164_v14 = vadd.f32 %v2770_v52, %v2606_v57  ;;  %v2200_v58 = vadd.f32 %v13130_v46, %v1998_v1  ;;  %v2400_v13 = vadd.f32 %v13124_v6, %v2198_v63 }
 0x46e   :  { %v2574_v49 = vpop.f32.mrf.mxu0  ;;  %v2774_v39 = vpop.f32.mrf.mxu1  ;;  %v2601_v52 = vadd.f32 %v2554_v34, %v2399_v55 }
 0x46f   :  { %v2608_v11 = vadd.f32 %v2574_v49, %v2406_v35  ;;  %v13167_v56 = vadd.f32 %v2774_v39, %v2607_v26  ;;  %v2401_v26 = vadd.f32 %v13128_v18, %v2199_v25  ;;  %v2602_v27 = vadd.f32 %v13143_v17, %v2400_v13 }
 0x470   :  { %v2578_v3 = vpop.f32.mrf.mxu0  ;;  %v2776_v30 = vpop.f32.mrf.mxu1  ;;  %v2402_v46 = vadd.f32 %v13132_v28, %v2200_v58  ;;  %v2803_v6 = vadd.f32 %v13145_v48, %v2601_v52 }
 0x471   :  { %v2609_v32 = vadd.f32 %v2578_v3, %v2407_v45  ;;  %v13169_v16 = vadd.f32 %v2776_v30, %v2608_v11  ;;  %v2804_v17 = vadd.f32 %v13149_v50, %v2602_v27 }
 0x472   :  { %v2580_v8 = vpop.f32.mrf.mxu0  ;;  %v2780_v21 = vpop.f32.mrf.mxu1 }
 0x473   :  { %v2610_v19 = vadd.f32 %v2580_v8, %v2408_v60  ;;  %v13171_v40 = vadd.f32 %v2780_v21, %v2609_v32 }
 0x474   :  { %v2584_v22 = vpop.f32.mrf.mxu0  ;;  %v2782_v41 = vpop.f32.mrf.mxu1 }
 0x475   :  { %v2611_v12 = vadd.f32 %v2584_v22, %v2409_v54  ;;  %v13175_v38 = vadd.f32 %v2782_v41, %v2610_v19 }
 0x476   :  { %v2586_v45 = vpop.f32.mrf.mxu0  ;;  %v2786_v37 = vpop.f32.mrf.mxu1 }
 0x477   :  { %v2612_v60 = vadd.f32 %v2586_v45, %v2410_v36  ;;  %v13181_v59 = vadd.f32 %v2786_v37, %v2611_v12 }
 0x478   :  { %v2590_v57 = vpop.f32.mrf.mxu0  ;;  %v2788_v53 = vpop.f32.mrf.mxu1 }
 0x479   :  { %v2613_v4 = vadd.f32 %v2590_v57, %v13135_v2  ;;  %v13188_v44 = vadd.f32 %v2788_v53, %v2612_v60 }
 0x47a   :  { %v2592_v54 = vpop.f32.mrf.mxu0  ;;  %v2792_v62 = vpop.f32.mrf.mxu1 }
 0x47b   :  { %v2614_v24 = vadd.f32 %v2592_v54, %v13137_v0  ;;  %v13193_v61 = vadd.f32 %v2792_v62, %v2613_v4  ;;  %v2603_v0 = vadd.f32 %v13147_v10, %v2401_v26 }
 0x47c   :  { %v2596_v35 = vpop.f32.mrf.mxu0  ;;  %v2794_v5 = vpop.f32.mrf.mxu1 }
 0x47d   :  { %v2615_v33 = vadd.f32 %v2596_v35, %v13139_v7  ;;  %v13198_v2 = vadd.f32 %v2794_v5, %v2614_v24  ;;  %v2604_v7 = vadd.f32 %v13153_v23, %v2402_v46  ;;  %v2805_v32 = vadd.f32 %v13155_v51, %v2603_v0  ;;  %v3239_v23 = vpop.permute.xlu0 %3238 }
 0x47e   :  { %v2598_v49 = vpop.f32.mrf.mxu0  ;;  %v2798_v39 = vpop.f32.mrf.mxu1 }
 0x47f   :  { %v2616_v34 = vadd.f32 %v2598_v49, %v13141_v47  ;;  %v13204_v9 = vadd.f32 %v2798_v39, %v2615_v33  ;;  %v3234_v47 = vpop.permute.xlu1 %3233  ;;  %v2806_v19 = vadd.f32 %v13158_v43, %v2604_v7 }
 0x480   :  { %v2800_v11 = vpop.f32.mrf.mxu1  ;;  %v2958_v18 = vpop.f32.mrf.mxu0 }
 0x481   :  { %v13208_v3 = vadd.f32 %v2800_v11, %v2616_v34  ;;  %v3005_v30 = vadd.f32 %v2958_v18, %v2803_v6  ;;  %v3249_v46 = vpop.permute.xlu0 %3248  ;;  %v10949_v6 = vld [vmem:[#allocation12 + $0x1b8] sm:$0xff]  }
 0x482   :  { %v2960_v28 = vpop.f32.mrf.mxu0  ;;  %v3160_v29 = vpop.f32.mrf.mxu1 }
 0x483   :  { %v3006_v48 = vadd.f32 %v2960_v28, %v2804_v17  ;;  %v3207_v8 = vadd.f32 %v3160_v29, %v3005_v30  ;;  %v3244_v13 = vpop.permute.xlu1 %3243  ;;  %v10951_v30 = vld [vmem:[#allocation12 + $0x138] sm:$0xff]  }
 0x484   :  { %v2964_v10 = vpop.f32.mrf.mxu0  ;;  %v3162_v21 = vpop.f32.mrf.mxu1 }
 0x485   :  { %v3007_v22 = vadd.f32 %v2964_v10, %v2805_v32  ;;  %v3208_v41 = vadd.f32 %v3162_v21, %v3006_v48  ;;  %v3271_v20 = vadd.f32 %v3234_v47, %v3207_v8  ;;  %v10952_v10 = vld [vmem:[#allocation12 + $0x1f0] sm:$0xff]  }
 0x486   :  { %v2966_v50 = vpop.f32.mrf.mxu0  ;;  %v3166_v36 = vpop.f32.mrf.mxu1  ;;  %v10954_v21 = vld [vmem:[#allocation12 + $0x170] sm:$0xff]  }
 0x487   :  { %v3008_v12 = vadd.f32 %v2966_v50, %v2806_v19  ;;  %v3209_v31 = vadd.f32 %v3166_v36, %v3007_v22  ;;  %v3272_v63 = vadd.f32 %v3234_v47, %v3208_v41  ;;  %v3287_v57 = vmax.f32 %v3271_v20, 0.0  ;;  %v10953_v41 = vld [vmem:[#allocation12 + $0x1b0] sm:$0xff]   ;;  %v10956_v36 = vld [vmem:[#allocation12 + $0x1e8] sm:$0xff]  }
 0x488   :  { %v2970_v45 = vpop.f32.mrf.mxu0  ;;  %v3168_v37 = vpop.f32.mrf.mxu1 }
 0x489   :  { %v3273_v60 = vadd.f32 %v3239_v23, %v3209_v31  ;;  %v3009_v51 = vadd.f32 %v2970_v45, %v13160_v42  ;;  %v3210_v1 = vadd.f32 %v3168_v37, %v3008_v12  ;;  %v3288_v52 = vmax.f32 %v3272_v63, 0.0  ;;  %v10955_v63 = vld [vmem:[#allocation12 + $0x130] sm:$0xff]  }
 0x48a   :  { %v2972_v53 = vpop.f32.mrf.mxu0  ;;  %v3172_v55 = vpop.f32.mrf.mxu1 }
 0x48b   :  { %v3289_v25 = vmax.f32 %v3273_v60, 0.0  ;;  %v3274_v43 = vadd.f32 %v3239_v23, %v3210_v1  ;;  %v3010_v4 = vadd.f32 %v2972_v53, %v13164_v14  ;;  %v3211_v58 = vadd.f32 %v3172_v55, %v3009_v51  ;;  %v3254_v23 = vpop.permute.xlu1 %3253  ;;  %v3259_v53 = vpop.permute.xlu0 %3258 }
 0x48c   :  { %v2976_v54 = vpop.f32.mrf.mxu0  ;;  %v3174_v62 = vpop.f32.mrf.mxu1 }
 0x48d   :  { %v13214_v24 = vpack.c.bf16 %v3289_v25, %v3287_v57  ;;  %v3290_v35 = vmax.f32 %v3274_v43, 0.0  ;;  %v3011_v5 = vadd.f32 %v2976_v54, %v13167_v56  ;;  %v3275_v26 = vadd.f32 %v3244_v13, %v3211_v58  ;;  %v10958_v57 = vld [vmem:[#allocation12 + $0x168] sm:$0xff]   ;;  %v10960_v54 = vld [vmem:[#allocation12 + $0x1e0] sm:$0xff]  }
 0x48e   :  { %v3212_v42 = vadd.f32 %v3174_v62, %v3010_v4  ;;  %v2978_v27 = vpop.f32.mrf.mxu0  ;;  %v3178_v33 = vpop.f32.mrf.mxu1  ;;  %v10957_v4 = vld [vmem:[#allocation12 + $0x1a8] sm:$0xff]  }
 0x48f   :  { %v13217_v49 = vpack.c.bf16 %v3290_v35, %v3288_v52  ;;  %v3012_v39 = vadd.f32 %v2978_v27, %v13169_v16  ;;  %v3213_v14 = vadd.f32 %v3178_v33, %v3011_v5  ;;  %v3291_v28 = vmax.f32 %v3275_v26, 0.0  ;;  %v10959_v5 = vld [vmem:[#allocation12 + $0x128] sm:$0xff]   ;;  %v10962_v33 = vld [vmem:[#allocation12 + $0x160] sm:$0xff]  }
 0x490   :  { %v3276_v0 = vadd.f32 %v3244_v13, %v3212_v42  ;;  %v2982_v34 = vpop.f32.mrf.mxu0  ;;  %v3180_v11 = vpop.f32.mrf.mxu1  ;;  %v3378_v48 = vrot.slane %v13214_v24, 1 }
 0x491   :  { %v3277_v18 = vadd.f32 %v3249_v46, %v3213_v14  ;;  %v3013_v17 = vadd.f32 %v2982_v34, %v13171_v40  ;;  %v3214_v7 = vadd.f32 %v3180_v11, %v3012_v39  ;;  %3646 = vmatprep.mubr.bf16.mxu1 %v13217_v49  ;;  %v3379_v56 = vrot.slane %v13217_v49, 1  ;;  %v10964_v11 = vld [vmem:[#allocation12 + $0x1d8] sm:$0xff]  }
 0x492   :  { %v2984_v29 = vpop.f32.mrf.mxu0  ;;  %v3184_v32 = vpop.f32.mrf.mxu1  ;;  %3647 = vmatmul.mubr.bf16.vlgmr.msra.gmra.mxu1 %v13214_v24  ;;  %v3862_v16 = vrot.slane %v13217_v49, 3  ;;  %v3688_v8 = vrot.slane %v13217_v49, 2  ;;  %v3292_v12 = vmax.f32 %v3276_v0, 0.0 }
 0x493   :  { %v3293_v40 = vmax.f32 %v3277_v18, 0.0  ;;  %v3278_v47 = vadd.f32 %v3249_v46, %v3214_v7  ;;  %v3014_v19 = vadd.f32 %v2984_v29, %v13175_v38  ;;  %v3215_v22 = vadd.f32 %v3184_v32, %v3013_v17  ;;  %10151 = vmatpush3.bf16.msra.mxu1 %v10949_v6  ;;  %3510 = vmatprep.mubr.bf16.mxu0 %v3379_v56  ;;  %v10961_v6 = vld [vmem:[#allocation12 + $0x1a0] sm:$0xff]  }
 0x494   :  { %3993 = vmatprep.mubr.bf16.mxu1 %v3862_v16  ;;  %v2988_v20 = vpop.f32.mrf.mxu0  ;;  %v3186_v50 = vpop.f32.mrf.mxu1  ;;  %3511 = vmatmul.mubr.bf16.vlgmr.msra.gmra.mxu0 %v3378_v48 }
 0x495   :  { %v13228_v31 = vpack.c.bf16 %v3293_v40, %v3291_v28  ;;  %v3294_v45 = vmax.f32 %v3278_v47, 0.0  ;;  %v3015_v37 = vadd.f32 %v2988_v20, %v13181_v59  ;;  %10129 = vmatpush3.bf16.msra.mxu0 %v10951_v30  ;;  %3819 = vmatprep.mubr.bf16.mxu0 %v3688_v8  ;;  %v3279_v38 = vadd.f32 %v3254_v23, %v3215_v22  ;;  %v10963_v30 = vld [vmem:[#allocation12 + $0x120] sm:$0xff]   ;;  %v3269_v40 = vpop.permute.xlu0 %3268  ;;  %v10967_v20 = vld [vmem:[#allocation12 + $0x118] sm:$0xff]  }
 0x496   :  { %v3216_v60 = vadd.f32 %v3186_v50, %v3014_v19  ;;  %10152 = vmatprep.subr.bf16.mxu1 %v10952_v10  ;;  %v2990_v51 = vpop.f32.mrf.mxu0  ;;  %v3190_v1 = vpop.f32.mrf.mxu1  ;;  %10130 = vmatprep.subr.bf16.mxu0 %v10954_v21  ;;  %v10965_v21 = vld [vmem:[#allocation12 + $0x198] sm:$0xff]   ;;  %v10968_v19 = vld [vmem:[#allocation12 + $0x1d0] sm:$0xff]  }
 0x497   :  { %v13231_v55 = vpack.c.bf16 %v3294_v45, %v3292_v12  ;;  %v3016_v25 = vadd.f32 %v2990_v51, %v13188_v44  ;;  %v3217_v43 = vadd.f32 %v3190_v1, %v3015_v37  ;;  %10153 = vmatpush3.bf16.msra.mxu1 %v10953_v41  ;;  %v3295_v26 = vmax.f32 %v3279_v38, 0.0  ;;  %v10970_v50 = vld [vmem:[#allocation12 + $0x150] sm:$0xff]   ;;  %v10974_v51 = vld [vmem:[#allocation12 + $0x148] sm:$0xff]  }
 0x498   :  { %v2994_v58 = vpop.f32.mrf.mxu0  ;;  %v3192_v59 = vpop.f32.mrf.mxu1  ;;  %10154 = vmatprep.subr.bf16.mxu1 %v10956_v36  ;;  %v3280_v62 = vadd.f32 %v3254_v23, %v3216_v60  ;;  %v10969_v45 = vld [vmem:[#allocation12 + $0x190] sm:$0xff]  }
 0x499   :  { %v3281_v13 = vadd.f32 %v3259_v53, %v3217_v43  ;;  %v3017_v52 = vadd.f32 %v2994_v58, %v13193_v61  ;;  %v3218_v35 = vadd.f32 %v3192_v59, %v3016_v25  ;;  %10131 = vmatpush3.bf16.msra.mxu0 %v10955_v63  ;;  %v3264_v61 = vpop.permute.xlu1 %3263  ;;  %v10971_v60 = vld [vmem:[#allocation12 + $0x110] sm:$0xff]   ;;  %v10975_v25 = vld [vmem:[#allocation12 + $0x108] sm:$0xff]   ;;  %v10978_v43 = vld [vmem:[#allocation12 + $0x140] sm:$0xff]  }
 0x49a   :  { %v2996_v42 = vpop.f32.mrf.mxu0  ;;  %v3196_v27 = vpop.f32.mrf.mxu1  ;;  %10132 = vmatprep.subr.bf16.mxu0 %v10958_v57  ;;  %v3296_v18 = vmax.f32 %v3280_v62, 0.0  ;;  %v10973_v57 = vld [vmem:[#allocation12 + $0x188] sm:$0xff]   ;;  %v10980_v58 = vld [vmem:[#allocation12 + $0x2f8] sm:$0xff]   ;;  %v10979_v59 = vld [vmem:[#allocation12 + $0x100] sm:$0xff]  }
 0x49b   :  { %v3297_v44 = vmax.f32 %v3281_v13, 0.0  ;;  %v3282_v46 = vadd.f32 %v3259_v53, %v3218_v35  ;;  %v3018_v39 = vadd.f32 %v2996_v42, %v13198_v2  ;;  %v3219_v14 = vadd.f32 %v3196_v27, %v3017_v52  ;;  %10155 = vmatpush3.bf16.msra.mxu1 %v10957_v4  ;;  %v10966_v2 = vld [vmem:[#allocation12 + $0x158] sm:$0xff]   ;;  %v10976_v53 = vld [vmem:[#allocation12 + $0x1c0] sm:$0xff]   ;;  %v10984_v52 = vld [vmem:[#allocation12 + $0x2f0] sm:$0xff]  }
 0x49c   :  { %v3000_v0 = vpop.f32.mrf.mxu0  ;;  %v3198_v34 = vpop.f32.mrf.mxu1  ;;  %10156 = vmatprep.subr.bf16.mxu1 %v10960_v54  ;;  %v10977_v4 = vld [vmem:[#allocation12 + $0x180] sm:$0xff]   ;;  %v10982_v54 = vld [vmem:[#allocation12 + $0x278] sm:$0xff]   ;;  %v3861_v13 = vrot.slane %v13214_v24, 3  ;;  %v4210_v35 = vrot.slane %v13217_v49, 5  ;;  %v10986_v42 = vld [vmem:[#allocation12 + $0x270] sm:$0xff]   ;;  %v4036_v27 = vrot.slane %v13217_v49, 4 }
 0x49d   :  { %v13236_v17 = vpack.c.bf16 %v3297_v44, %v3295_v26  ;;  %v3298_v7 = vmax.f32 %v3282_v46, 0.0  ;;  %v3019_v56 = vadd.f32 %v3000_v0, %v13204_v9  ;;  %10133 = vmatpush3.bf16.msra.mxu0 %v10959_v5  ;;  %v3220_v28 = vadd.f32 %v3198_v34, %v3018_v39  ;;  %v10981_v62 = vld [vmem:[#allocation12 + $0x2b8] sm:$0xff]   ;;  %v10988_v44 = vld [vmem:[#allocation12 + $0x2e8] sm:$0xff]   ;;  %v10987_v46 = vld [vmem:[#allocation12 + $0x230] sm:$0xff]  }
 0x49e   :  { %v3002_v29 = vpop.f32.mrf.mxu0  ;;  %v3202_v32 = vpop.f32.mrf.mxu1  ;;  %10134 = vmatprep.subr.bf16.mxu0 %v10962_v33  ;;  %v3283_v48 = vadd.f32 %v3264_v61, %v3219_v14  ;;  %v10983_v5 = vld [vmem:[#allocation12 + $0x238] sm:$0xff]   ;;  %v3687_v26 = vrot.slane %v13214_v24, 2  ;;  %v10985_v33 = vld [vmem:[#allocation12 + $0x2b0] sm:$0xff]   ;;  %v10990_v39 = vld [vmem:[#allocation12 + $0x268] sm:$0xff]  }
 0x49f   :  { %v13239_v16 = vpack.c.bf16 %v3298_v7, %v3296_v18  ;;  %v3020_v8 = vadd.f32 %v3002_v29, %v13208_v3  ;;  %v3221_v10 = vadd.f32 %v3202_v32, %v3019_v56  ;;  %10157 = vmatpush3.bf16.msra.mxu1 %v10961_v6  ;;  %v3284_v9 = vadd.f32 %v3264_v61, %v3220_v28  ;;  %v10972_v3 = vld [vmem:[#allocation12 + $0x1c8] sm:$0xff]   ;;  %v10992_v6 = vld [vmem:[#allocation12 + $0x2e0] sm:$0xff]   ;;  %v10996_v61 = vld [vmem:[#allocation12 + $0x2d8] sm:$0xff]  }
 0x4a0   :  { %v3204_v47 = vpop.f32.mrf.mxu1  ;;  %10158 = vmatprep.subr.bf16.mxu1 %v10964_v11  ;;  %v3299_v36 = vmax.f32 %v3283_v48, 0.0  ;;  %v10989_v14 = vld [vmem:[#allocation12 + $0x2a8] sm:$0xff]   ;;  %v10994_v34 = vld [vmem:[#allocation12 + $0x260] sm:$0xff]   ;;  %v10998_v7 = vld [vmem:[#allocation12 + $0x258] sm:$0xff]  }
 0x4a1   :  { %v3285_v22 = vadd.f32 %v3269_v40, %v3221_v10  ;;  %v3222_v41 = vadd.f32 %v3204_v47, %v3020_v8  ;;  %10135 = vmatpush3.bf16.msra.mxu0 %v10963_v30  ;;  %v3300_v37 = vmax.f32 %v3284_v9, 0.0  ;;  %v10991_v0 = vld [vmem:[#allocation12 + $0x228] sm:$0xff]   ;;  %v10993_v11 = vld [vmem:[#allocation12 + $0x2a0] sm:$0xff]   ;;  %v10997_v56 = vld [vmem:[#allocation12 + $0x298] sm:$0xff]  }
 0x4a2   :  { %10136 = vmatprep.subr.bf16.mxu0 %v10966_v2  ;;  %v10995_v18 = vld [vmem:[#allocation12 + $0x220] sm:$0xff]   ;;  %v11000_v30 = vld [vmem:[#allocation12 + $0x2d0] sm:$0xff]   ;;  %v10999_v28 = vld [vmem:[#allocation12 + $0x218] sm:$0xff]  }
 0x4a3   :  { %v3301_v23 = vmax.f32 %v3285_v22, 0.0  ;;  %v3286_v12 = vadd.f32 %v3269_v40, %v3222_v41  ;;  %10159 = vmatpush3.bf16.msra.mxu1 %v10965_v21  ;;  %v11002_v29 = vld [vmem:[#allocation12 + $0x250] sm:$0xff]   ;;  %v11004_v2 = vld [vmem:[#allocation12 + $0x2c8] sm:$0xff]   ;;  %v11008_v21 = vld [vmem:[#allocation12 + $0x2c0] sm:$0xff]  }
 0x4a4   :  { %10160 = vmatprep.subr.bf16.mxu1 %v10968_v19  ;;  %v11001_v32 = vld [vmem:[#allocation12 + $0x290] sm:$0xff]   ;;  %v11006_v8 = vld [vmem:[#allocation12 + $0x248] sm:$0xff]   ;;  %v11010_v47 = vld [vmem:[#allocation12 + $0x240] sm:$0xff]  }
 0x4a5   :  { %v13242_v63 = vpack.c.bf16 %v3301_v23, %v3299_v36  ;;  %v3302_v38 = vmax.f32 %v3286_v12, 0.0  ;;  %10137 = vmatpush3.bf16.msra.mxu0 %v10967_v20  ;;  %v11003_v48 = vld [vmem:[#allocation12 + $0x210] sm:$0xff]   ;;  %v11005_v10 = vld [vmem:[#allocation12 + $0x288] sm:$0xff]   ;;  %v11009_v19 = vld [vmem:[#allocation12 + $0x280] sm:$0xff]   ;;  %v4558_v23 = vrot.slane %v13217_v49, 7 }
 0x4a6   :  { %10138 = vmatprep.subr.bf16.mxu0 %v10970_v50  ;;  %v11007_v40 = vld [vmem:[#allocation12 + $0x208] sm:$0xff]   ;;  %v11012_v9 = vld [vmem:[#allocation12 + $0x3f8] sm:$0xff]   ;;  %v11011_v22 = vld [vmem:[#allocation12 + $0x200] sm:$0xff]   ;;  %v4209_v50 = vrot.slane %v13214_v24, 5 }
 0x4a7   :  { %v13244_v1 = vpack.c.bf16 %v3302_v38, %v3300_v37  ;;  %10161 = vmatpush3.bf16.msra.mxu1 %v10969_v45  ;;  %v11014_v41 = vld [vmem:[#allocation12 + $0x378] sm:$0xff]   ;;  %v11016_v36 = vld [vmem:[#allocation12 + $0x3f0] sm:$0xff]   ;;  %v4035_v45 = vrot.slane %v13214_v24, 4  ;;  %v4384_v37 = vrot.slane %v13217_v49, 6 }
 0x4a8   :  { %10162 = vmatprep.subr.bf16.mxu1 %v10972_v3  ;;  %v11013_v20 = vld [vmem:[#allocation12 + $0x3b8] sm:$0xff]   ;;  %v11018_v3 = vld [vmem:[#allocation12 + $0x370] sm:$0xff]  }
 0x4a9   :  { %10139 = vmatpush3.bf16.msra.mxu0 %v10971_v60  ;;  %v11015_v12 = vld [vmem:[#allocation12 + $0x338] sm:$0xff]   ;;  %v11017_v38 = vld [vmem:[#allocation12 + $0x3b0] sm:$0xff]   ;;  %v11020_v60 = vld [vmem:[#allocation12 + $0x3e8] sm:$0xff]  }
 0x4aa   :  { %10140 = vmatprep.subr.bf16.mxu0 %v10974_v51  ;;  %v11019_v51 = vld [vmem:[#allocation12 + $0x330] sm:$0xff]   ;;  %v11028_v49 = vld [vmem:[#allocation12 + $0x3d8] sm:$0xff]  }
 0x4ab   :  { %10163 = vmatpush3.bf16.msra.mxu1 %v10973_v57  ;;  %v11022_v57 = vld [vmem:[#allocation12 + $0x368] sm:$0xff]  }
 0x4ac   :  { %10164 = vmatprep.subr.bf16.mxu1 %v10976_v53  ;;  %v11021_v53 = vld [vmem:[#allocation12 + $0x3a8] sm:$0xff]  }
 0x4ad   :  { %10141 = vmatpush3.bf16.msra.mxu0 %v10975_v25  ;;  %v11024_v25 = vld [vmem:[#allocation12 + $0x3e0] sm:$0xff]  }
 0x4ae   :  { %10142 = vmatprep.subr.bf16.mxu0 %v10978_v43  ;;  %v11023_v43 = vld [vmem:[#allocation12 + $0x328] sm:$0xff]  }
 0x4af   :  { %10165 = vmatpush3.bf16.msra.mxu1 %v10977_v4  ;;  %v11026_v4 = vld [vmem:[#allocation12 + $0x360] sm:$0xff]  }
 0x4b0   :  { %10194 = vmatprep.subr.bf16.mxu1 %v10980_v58  ;;  %v11025_v58 = vld [vmem:[#allocation12 + $0x3a0] sm:$0xff]  }
 0x4b1   :  { %10143 = vmatpush3.bf16.msra.mxu0 %v10979_v59  ;;  %v11027_v59 = vld [vmem:[#allocation12 + $0x320] sm:$0xff]  }
 0x4b2   :  { %3994 = vmatmul.mubr.bf16.vlgmr.msra.gmra.mxu1 %v3861_v13  ;;  %10172 = vmatprep.subr.bf16.mxu0 %v10982_v54  ;;  %v11030_v54 = vld [vmem:[#allocation12 + $0x358] sm:$0xff]   ;;  %v11032_v13 = vld [vmem:[#allocation12 + $0x3d0] sm:$0xff]  }
 0x4b3   :  { %10195 = vmatpush3.bf16.msra.mxu1 %v10981_v62  ;;  %4341 = vmatprep.mubr.bf16.mxu1 %v4210_v35  ;;  %v11029_v62 = vld [vmem:[#allocation12 + $0x398] sm:$0xff]   ;;  %v11034_v35 = vld [vmem:[#allocation12 + $0x350] sm:$0xff]  }
 0x4b4   :  { %3820 = vmatmul.mubr.bf16.vlgmr.msra.gmra.mxu0 %v3687_v26  ;;  %10196 = vmatprep.subr.bf16.mxu1 %v10984_v52  ;;  %v11031_v52 = vld [vmem:[#allocation12 + $0x318] sm:$0xff]   ;;  %v11036_v26 = vld [vmem:[#allocation12 + $0x3c8] sm:$0xff]  }
 0x4b5   :  { %10173 = vmatpush3.bf16.msra.mxu0 %v10983_v5  ;;  %4167 = vmatprep.mubr.bf16.mxu0 %v4036_v27  ;;  %v11033_v5 = vld [vmem:[#allocation12 + $0x390] sm:$0xff]   ;;  %v11038_v27 = vld [vmem:[#allocation12 + $0x348] sm:$0xff]  }
 0x4b6   :  { %10174 = vmatprep.subr.bf16.mxu0 %v10986_v42  ;;  %v11035_v42 = vld [vmem:[#allocation12 + $0x310] sm:$0xff]  }
 0x4b7   :  { %10197 = vmatpush3.bf16.msra.mxu1 %v10985_v33  ;;  %v11037_v33 = vld [vmem:[#allocation12 + $0x388] sm:$0xff]  }
 0x4b8   :  { %10198 = vmatprep.subr.bf16.mxu1 %v10988_v44  ;;  %v11040_v44 = vld [vmem:[#allocation12 + $0x3c0] sm:$0xff]  }
 0x4b9   :  { %10175 = vmatpush3.bf16.msra.mxu0 %v10987_v46  ;;  %v11039_v46 = vld [vmem:[#allocation12 + $0x308] sm:$0xff]  }
 0x4ba   :  { %10176 = vmatprep.subr.bf16.mxu0 %v10990_v39  ;;  %v11042_v39 = vld [vmem:[#allocation12 + $0x340] sm:$0xff]  }
 0x4bb   :  { %10199 = vmatpush3.bf16.msra.mxu1 %v10989_v14  ;;  %v11041_v14 = vld [vmem:[#allocation12 + $0x380] sm:$0xff]  }
 0x4bc   :  { %10200 = vmatprep.subr.bf16.mxu1 %v10992_v6  ;;  %v11044_v6 = vld [vmem:[#allocation12 + $0x4f8] sm:$0xff]  }
 0x4bd   :  { %10177 = vmatpush3.bf16.msra.mxu0 %v10991_v0  ;;  %v11043_v0 = vld [vmem:[#allocation12 + $0x300] sm:$0xff]  }
 0x4be   :  { %10178 = vmatprep.subr.bf16.mxu0 %v10994_v34  ;;  %v11046_v34 = vld [vmem:[#allocation12 + $0x478] sm:$0xff]  }
 0x4bf   :  { %10201 = vmatpush3.bf16.msra.mxu1 %v10993_v11  ;;  %v11045_v11 = vld [vmem:[#allocation12 + $0x4b8] sm:$0xff]  }
 0x4c0   :  { %10202 = vmatprep.subr.bf16.mxu1 %v10996_v61  ;;  %v4557_v61 = vrot.slane %v13214_v24, 7 }
 0x4c1   :  { %10179 = vmatpush3.bf16.msra.mxu0 %v10995_v18  ;;  %v11048_v18 = vld [vmem:[#allocation12 + $0x4f0] sm:$0xff]  }
 0x4c2   :  { %10180 = vmatprep.subr.bf16.mxu0 %v10998_v7  ;;  %v4904_v7 = vrot.slane %v13231_v55, 1 }
 0x4c3   :  { %10203 = vmatpush3.bf16.msra.mxu1 %v10997_v56  ;;  %v11047_v56 = vld [vmem:[#allocation12 + $0x438] sm:$0xff]  }
 0x4c4   :  { %10204 = vmatprep.subr.bf16.mxu1 %v11000_v30  ;;  %v4383_v30 = vrot.slane %v13214_v24, 6  ;;  %v11055_v24 = vld [vmem:[#allocation12 + $0x428] sm:$0xff]  }
 0x4c5   :  { %10181 = vmatpush3.bf16.msra.mxu0 %v10999_v28  ;;  %v11050_v28 = vld [vmem:[#allocation12 + $0x470] sm:$0xff]  }
 0x4c6   :  { %10182 = vmatprep.subr.bf16.mxu0 %v11002_v29  ;;  %v11049_v29 = vld [vmem:[#allocation12 + $0x4b0] sm:$0xff]  }
 0x4c7   :  { %10205 = vmatpush3.bf16.msra.mxu1 %v11001_v32  ;;  %v11052_v32 = vld [vmem:[#allocation12 + $0x4e8] sm:$0xff]  }
 0x4c8   :  { %10206 = vmatprep.subr.bf16.mxu1 %v11004_v2  ;;  %v11051_v2 = vld [vmem:[#allocation12 + $0x430] sm:$0xff]  }
 0x4c9   :  { %10183 = vmatpush3.bf16.msra.mxu0 %v11003_v48  ;;  %v11054_v48 = vld [vmem:[#allocation12 + $0x468] sm:$0xff]  }
 0x4ca   :  { %10184 = vmatprep.subr.bf16.mxu0 %v11006_v8  ;;  %v11053_v8 = vld [vmem:[#allocation12 + $0x4a8] sm:$0xff]  }
 0x4cb   :  { %10207 = vmatpush3.bf16.msra.mxu1 %v11005_v10  ;;  %v11056_v10 = vld [vmem:[#allocation12 + $0x4e0] sm:$0xff]  }
 0x4cc   :  { %10208 = vmatprep.subr.bf16.mxu1 %v11008_v21  ;;  %v11058_v21 = vld [vmem:[#allocation12 + $0x460] sm:$0xff]  }
 0x4cd   :  { %10185 = vmatpush3.bf16.msra.mxu0 %v11007_v40  ;;  %v11057_v40 = vld [vmem:[#allocation12 + $0x4a0] sm:$0xff]  }
 0x4ce   :  { %10186 = vmatprep.subr.bf16.mxu0 %v11010_v47  ;;  %v11060_v47 = vld [vmem:[#allocation12 + $0x4d8] sm:$0xff]  }
 0x4cf   :  { %10209 = vmatpush3.bf16.msra.mxu1 %v11009_v19  ;;  %v11059_v19 = vld [vmem:[#allocation12 + $0x420] sm:$0xff]  }
 0x4d0   :  { %10238 = vmatprep.subr.bf16.mxu1 %v11012_v9  ;;  %v11062_v9 = vld [vmem:[#allocation12 + $0x458] sm:$0xff]  }
 0x4d1   :  { %10187 = vmatpush3.bf16.msra.mxu0 %v11011_v22  ;;  %v11061_v22 = vld [vmem:[#allocation12 + $0x498] sm:$0xff]  }
 0x4d2   :  { %4342 = vmatmul.mubr.bf16.vlgmr.msra.gmra.mxu1 %v4209_v50  ;;  %10216 = vmatprep.subr.bf16.mxu0 %v11014_v41  ;;  %v11064_v41 = vld [vmem:[#allocation12 + $0x4d0] sm:$0xff]  }
 0x4d3   :  { %10239 = vmatpush3.bf16.msra.mxu1 %v11013_v20  ;;  %4689 = vmatprep.mubr.bf16.mxu1 %v4558_v23  ;;  %v11063_v20 = vld [vmem:[#allocation12 + $0x418] sm:$0xff]   ;;  %v11066_v50 = vld [vmem:[#allocation12 + $0x450] sm:$0xff]   ;;  %v11068_v23 = vld [vmem:[#allocation12 + $0x4c8] sm:$0xff]  }
 0x4d4   :  { %4168 = vmatmul.mubr.bf16.vlgmr.msra.gmra.mxu0 %v4035_v45  ;;  %10240 = vmatprep.subr.bf16.mxu1 %v11016_v36  ;;  %v11065_v36 = vld [vmem:[#allocation12 + $0x490] sm:$0xff]   ;;  %v11070_v45 = vld [vmem:[#allocation12 + $0x448] sm:$0xff]  }
 0x4d5   :  { %10217 = vmatpush3.bf16.msra.mxu0 %v11015_v12  ;;  %4515 = vmatprep.mubr.bf16.mxu0 %v4384_v37  ;;  %v11067_v12 = vld [vmem:[#allocation12 + $0x410] sm:$0xff]   ;;  %v11072_v37 = vld [vmem:[#allocation12 + $0x4c0] sm:$0xff]  }
 0x4d6   :  { %10218 = vmatprep.subr.bf16.mxu0 %v11018_v3  ;;  %v11069_v3 = vld [vmem:[#allocation12 + $0x488] sm:$0xff]  }
 0x4d7   :  { %10241 = vmatpush3.bf16.msra.mxu1 %v11017_v38  ;;  %v11071_v38 = vld [vmem:[#allocation12 + $0x408] sm:$0xff]  }
 0x4d8   :  { %10242 = vmatprep.subr.bf16.mxu1 %v11020_v60  ;;  %v11074_v60 = vld [vmem:[#allocation12 + $0x440] sm:$0xff]  }
 0x4d9   :  { %10219 = vmatpush3.bf16.msra.mxu0 %v11019_v51  ;;  %v11073_v51 = vld [vmem:[#allocation12 + $0x480] sm:$0xff]  }
 0x4da   :  { %10220 = vmatprep.subr.bf16.mxu0 %v11022_v57  ;;  %v11076_v57 = vld [vmem:[#allocation12 + $0x5f8] sm:$0xff]  }
 0x4db   :  { %10243 = vmatpush3.bf16.msra.mxu1 %v11021_v53  ;;  %v11075_v53 = vld [vmem:[#allocation12 + $0x400] sm:$0xff]  }
 0x4dc   :  { %10244 = vmatprep.subr.bf16.mxu1 %v11024_v25  ;;  %v11078_v25 = vld [vmem:[#allocation12 + $0x578] sm:$0xff]  }
 0x4dd   :  { %10221 = vmatpush3.bf16.msra.mxu0 %v11023_v43  ;;  %v11077_v43 = vld [vmem:[#allocation12 + $0x5b8] sm:$0xff]  }
 0x4de   :  { %10222 = vmatprep.subr.bf16.mxu0 %v11026_v4  ;;  %v4903_v4 = vrot.slane %v13228_v31, 1 }
 0x4df   :  { %10245 = vmatpush3.bf16.msra.mxu1 %v11025_v58  ;;  %v11080_v58 = vld [vmem:[#allocation12 + $0x5f0] sm:$0xff]  }
 0x4e0   :  { %10246 = vmatprep.subr.bf16.mxu1 %v11028_v49  ;;  %v5252_v49 = vrot.slane %v13231_v55, 3 }
 0x4e1   :  { %10223 = vmatpush3.bf16.msra.mxu0 %v11027_v59  ;;  %v11079_v59 = vld [vmem:[#allocation12 + $0x538] sm:$0xff]  }
 0x4e2   :  { %10224 = vmatprep.subr.bf16.mxu0 %v11030_v54  ;;  %v11082_v54 = vld [vmem:[#allocation12 + $0x570] sm:$0xff]  }
 0x4e3   :  { %10247 = vmatpush3.bf16.msra.mxu1 %v11029_v62  ;;  %v5078_v62 = vrot.slane %v13231_v55, 2 }
 0x4e4   :  { %10248 = vmatprep.subr.bf16.mxu1 %v11032_v13  ;;  %v11081_v13 = vld [vmem:[#allocation12 + $0x5b0] sm:$0xff]  }
 0x4e5   :  { %10225 = vmatpush3.bf16.msra.mxu0 %v11031_v52  ;;  %v11084_v52 = vld [vmem:[#allocation12 + $0x5e8] sm:$0xff]  }
 0x4e6   :  { %10226 = vmatprep.subr.bf16.mxu0 %v11034_v35  ;;  %v11083_v35 = vld [vmem:[#allocation12 + $0x530] sm:$0xff]  }
 0x4e7   :  { %10249 = vmatpush3.bf16.msra.mxu1 %v11033_v5  ;;  %v11086_v5 = vld [vmem:[#allocation12 + $0x568] sm:$0xff]  }
 0x4e8   :  { %10250 = vmatprep.subr.bf16.mxu1 %v11036_v26  ;;  %v11085_v26 = vld [vmem:[#allocation12 + $0x5a8] sm:$0xff]  }
 0x4e9   :  { %10227 = vmatpush3.bf16.msra.mxu0 %v11035_v42  ;;  %v11088_v42 = vld [vmem:[#allocation12 + $0x5e0] sm:$0xff]  }
 0x4ea   :  { %10228 = vmatprep.subr.bf16.mxu0 %v11038_v27  ;;  %v11087_v27 = vld [vmem:[#allocation12 + $0x528] sm:$0xff]  }
 0x4eb   :  { %10251 = vmatpush3.bf16.msra.mxu1 %v11037_v33  ;;  %v11090_v33 = vld [vmem:[#allocation12 + $0x560] sm:$0xff]  }
 0x4ec   :  { %10252 = vmatprep.subr.bf16.mxu1 %v11040_v44  ;;  %v11089_v44 = vld [vmem:[#allocation12 + $0x5a0] sm:$0xff]  }
 0x4ed   :  { %10229 = vmatpush3.bf16.msra.mxu0 %v11039_v46  ;;  %v11092_v46 = vld [vmem:[#allocation12 + $0x5d8] sm:$0xff]  }
 0x4ee   :  { %10230 = vmatprep.subr.bf16.mxu0 %v11042_v39  ;;  %v11091_v39 = vld [vmem:[#allocation12 + $0x520] sm:$0xff]  }
 0x4ef   :  { %10253 = vmatpush3.bf16.msra.mxu1 %v11041_v14  ;;  %v11094_v14 = vld [vmem:[#allocation12 + $0x558] sm:$0xff]  }
 0x4f0   :  { %10282 = vmatprep.subr.bf16.mxu1 %v11044_v6  ;;  %v11093_v6 = vld [vmem:[#allocation12 + $0x598] sm:$0xff]  }
 0x4f1   :  { %10231 = vmatpush3.bf16.msra.mxu0 %v11043_v0  ;;  %v11096_v0 = vld [vmem:[#allocation12 + $0x5d0] sm:$0xff]  }
 0x4f2   :  { %4690 = vmatmul.mubr.bf16.vlgmr.msra.gmra.mxu1 %v4557_v61  ;;  %10260 = vmatprep.subr.bf16.mxu0 %v11046_v34  ;;  %v11095_v34 = vld [vmem:[#allocation12 + $0x518] sm:$0xff]   ;;  %v11097_v61 = vld [vmem:[#allocation12 + $0x590] sm:$0xff]  }
 0x4f3   :  { %10283 = vmatpush3.bf16.msra.mxu1 %v11045_v11  ;;  %5035 = vmatprep.mubr.bf16.mxu1 %v4904_v7  ;;  %v11098_v11 = vld [vmem:[#allocation12 + $0x550] sm:$0xff]  }
 0x4f4   :  { %4516 = vmatmul.mubr.bf16.vlgmr.msra.gmra.mxu0 %v4383_v30  ;;  %10284 = vmatprep.subr.bf16.mxu1 %v11048_v18  ;;  %v11100_v18 = vld [vmem:[#allocation12 + $0x5c8] sm:$0xff]   ;;  %v11099_v7 = vld [vmem:[#allocation12 + $0x510] sm:$0xff]  }
 0x4f5   :  { %10261 = vmatpush3.bf16.msra.mxu0 %v11047_v56  ;;  %4859 = vmatprep.mubr.bf16.mxu0 %v13231_v55  ;;  %v11102_v56 = vld [vmem:[#allocation12 + $0x548] sm:$0xff]  }
 0x4f6   :  { %10262 = vmatprep.subr.bf16.mxu0 %v11050_v28  ;;  %v11101_v30 = vld [vmem:[#allocation12 + $0x588] sm:$0xff]   ;;  %v11104_v28 = vld [vmem:[#allocation12 + $0x5c0] sm:$0xff]  }
 0x4f7   :  { %10285 = vmatpush3.bf16.msra.mxu1 %v11049_v29  ;;  %v11103_v29 = vld [vmem:[#allocation12 + $0x508] sm:$0xff]  }
 0x4f8   :  { %10286 = vmatprep.subr.bf16.mxu1 %v11052_v32  ;;  %v11106_v32 = vld [vmem:[#allocation12 + $0x540] sm:$0xff]  }
 0x4f9   :  { %10263 = vmatpush3.bf16.msra.mxu0 %v11051_v2  ;;  %v11105_v2 = vld [vmem:[#allocation12 + $0x580] sm:$0xff]  }
 0x4fa   :  { %10264 = vmatprep.subr.bf16.mxu0 %v11054_v48  ;;  %v11108_v48 = vld [vmem:[#allocation12 + $0x6f8] sm:$0xff]  }
 0x4fb   :  { %10287 = vmatpush3.bf16.msra.mxu1 %v11053_v8  ;;  %v11107_v8 = vld [vmem:[#allocation12 + $0x500] sm:$0xff]  }
 0x4fc   :  { %10288 = vmatprep.subr.bf16.mxu1 %v11056_v10  ;;  %v11110_v10 = vld [vmem:[#allocation12 + $0x678] sm:$0xff]  }
 0x4fd   :  { %10265 = vmatpush3.bf16.msra.mxu0 %v11055_v24  ;;  %v11109_v24 = vld [vmem:[#allocation12 + $0x6b8] sm:$0xff]  }
 0x4fe   :  { %10266 = vmatprep.subr.bf16.mxu0 %v11058_v21  ;;  %v5251_v21 = vrot.slane %v13228_v31, 3 }
 0x4ff   :  { %10289 = vmatpush3.bf16.msra.mxu1 %v11057_v40  ;;  %v11112_v40 = vld [vmem:[#allocation12 + $0x6f0] sm:$0xff]  }
 0x500   :  { %10290 = vmatprep.subr.bf16.mxu1 %v11060_v47  ;;  %v5600_v47 = vrot.slane %v13231_v55, 5 }
 0x501   :  { %10267 = vmatpush3.bf16.msra.mxu0 %v11059_v19  ;;  %v11111_v19 = vld [vmem:[#allocation12 + $0x638] sm:$0xff]  }
 0x502   :  { %10268 = vmatprep.subr.bf16.mxu0 %v11062_v9  ;;  %v5077_v9 = vrot.slane %v13228_v31, 2 }
 0x503   :  { %10291 = vmatpush3.bf16.msra.mxu1 %v11061_v22  ;;  %v11114_v22 = vld [vmem:[#allocation12 + $0x670] sm:$0xff]  }
 0x504   :  { %10292 = vmatprep.subr.bf16.mxu1 %v11064_v41  ;;  %v5426_v41 = vrot.slane %v13231_v55, 4 }
 0x505   :  { %10269 = vmatpush3.bf16.msra.mxu0 %v11063_v20  ;;  %v11113_v20 = vld [vmem:[#allocation12 + $0x6b0] sm:$0xff]  }
 0x506   :  { %10270 = vmatprep.subr.bf16.mxu0 %v11066_v50  ;;  %v11116_v50 = vld [vmem:[#allocation12 + $0x6e8] sm:$0xff]  }
 0x507   :  { %10293 = vmatpush3.bf16.msra.mxu1 %v11065_v36  ;;  %v11115_v36 = vld [vmem:[#allocation12 + $0x630] sm:$0xff]  }
 0x508   :  { %10294 = vmatprep.subr.bf16.mxu1 %v11068_v23  ;;  %v11118_v23 = vld [vmem:[#allocation12 + $0x668] sm:$0xff]  }
 0x509   :  { %10271 = vmatpush3.bf16.msra.mxu0 %v11067_v12  ;;  %v11117_v12 = vld [vmem:[#allocation12 + $0x6a8] sm:$0xff]  }
 0x50a   :  { %10272 = vmatprep.subr.bf16.mxu0 %v11070_v45  ;;  %v11120_v45 = vld [vmem:[#allocation12 + $0x6e0] sm:$0xff]  }
 0x50b   :  { %10295 = vmatpush3.bf16.msra.mxu1 %v11069_v3  ;;  %v11119_v3 = vld [vmem:[#allocation12 + $0x628] sm:$0xff]  }
 0x50c   :  { %10296 = vmatprep.subr.bf16.mxu1 %v11072_v37  ;;  %v11122_v37 = vld [vmem:[#allocation12 + $0x660] sm:$0xff]  }
 0x50d   :  { %10273 = vmatpush3.bf16.msra.mxu0 %v11071_v38  ;;  %v11121_v38 = vld [vmem:[#allocation12 + $0x6a0] sm:$0xff]  }
 0x50e   :  { %10274 = vmatprep.subr.bf16.mxu0 %v11074_v60  ;;  %v11124_v60 = vld [vmem:[#allocation12 + $0x6d8] sm:$0xff]  }
 0x50f   :  { %10297 = vmatpush3.bf16.msra.mxu1 %v11073_v51  ;;  %v11123_v51 = vld [vmem:[#allocation12 + $0x620] sm:$0xff]  }
 0x510   :  { %10326 = vmatprep.subr.bf16.mxu1 %v11076_v57  ;;  %v11126_v57 = vld [vmem:[#allocation12 + $0x658] sm:$0xff]  }
 0x511   :  { %10275 = vmatpush3.bf16.msra.mxu0 %v11075_v53  ;;  %v11125_v53 = vld [vmem:[#allocation12 + $0x698] sm:$0xff]  }
 0x512   :  { %5036 = vmatmul.mubr.bf16.vlgmr.msra.gmra.mxu1 %v4903_v4  ;;  %10304 = vmatprep.subr.bf16.mxu0 %v11078_v25  ;;  %v11128_v25 = vld [vmem:[#allocation12 + $0x6d0] sm:$0xff]  }
 0x513   :  { %10327 = vmatpush3.bf16.msra.mxu1 %v11077_v43  ;;  %5383 = vmatprep.mubr.bf16.mxu1 %v5252_v49  ;;  %v11127_v43 = vld [vmem:[#allocation12 + $0x618] sm:$0xff]   ;;  %v11130_v4 = vld [vmem:[#allocation12 + $0x650] sm:$0xff]   ;;  %v11132_v49 = vld [vmem:[#allocation12 + $0x6c8] sm:$0xff]  }
 0x514   :  { %4860 = vmatmul.mubr.bf16.vlgmr.msra.gmra.mxu0 %v13228_v31  ;;  %10328 = vmatprep.subr.bf16.mxu1 %v11080_v58  ;;  %v11129_v58 = vld [vmem:[#allocation12 + $0x690] sm:$0xff]  }
 0x515   :  { %10305 = vmatpush3.bf16.msra.mxu0 %v11079_v59  ;;  %5209 = vmatprep.mubr.bf16.mxu0 %v5078_v62  ;;  %v11131_v59 = vld [vmem:[#allocation12 + $0x610] sm:$0xff]   ;;  %v11133_v62 = vld [vmem:[#allocation12 + $0x688] sm:$0xff]  }
 0x516   :  { %10306 = vmatprep.subr.bf16.mxu0 %v11082_v54  ;;  %v11134_v54 = vld [vmem:[#allocation12 + $0x648] sm:$0xff]  }
 0x517   :  { %10329 = vmatpush3.bf16.msra.mxu1 %v11081_v13  ;;  %v11136_v13 = vld [vmem:[#allocation12 + $0x6c0] sm:$0xff]  }
 0x518   :  { %10330 = vmatprep.subr.bf16.mxu1 %v11084_v52  ;;  %v11135_v52 = vld [vmem:[#allocation12 + $0x608] sm:$0xff]  }
 0x519   :  { %10307 = vmatpush3.bf16.msra.mxu0 %v11083_v35  ;;  %v11138_v35 = vld [vmem:[#allocation12 + $0x640] sm:$0xff]  }
 0x51a   :  { %10308 = vmatprep.subr.bf16.mxu0 %v11086_v5  ;;  %v11137_v5 = vld [vmem:[#allocation12 + $0x680] sm:$0xff]  }
 0x51b   :  { %10331 = vmatpush3.bf16.msra.mxu1 %v11085_v26  ;;  %v11140_v26 = vld [vmem:[#allocation12 + $0x7f8] sm:$0xff]  }
 0x51c   :  { %10332 = vmatprep.subr.bf16.mxu1 %v11088_v42  ;;  %v11139_v42 = vld [vmem:[#allocation12 + $0x600] sm:$0xff]  }
 0x51d   :  { %10309 = vmatpush3.bf16.msra.mxu0 %v11087_v27  ;;  %v11142_v27 = vld [vmem:[#allocation12 + $0x778] sm:$0xff]  }
 0x51e   :  { %10310 = vmatprep.subr.bf16.mxu0 %v11090_v33  ;;  %v11141_v33 = vld [vmem:[#allocation12 + $0x7b8] sm:$0xff]  }
 0x51f   :  { %10333 = vmatpush3.bf16.msra.mxu1 %v11089_v44  ;;  %v5599_v44 = vrot.slane %v13228_v31, 5 }
 0x520   :  { %10334 = vmatprep.subr.bf16.mxu1 %v11092_v46  ;;  %v11144_v46 = vld [vmem:[#allocation12 + $0x7f0] sm:$0xff]  }
 0x521   :  { %10311 = vmatpush3.bf16.msra.mxu0 %v11091_v39  ;;  %v5948_v39 = vrot.slane %v13231_v55, 7 }
 0x522   :  { %10312 = vmatprep.subr.bf16.mxu0 %v11094_v14  ;;  %v11143_v14 = vld [vmem:[#allocation12 + $0x738] sm:$0xff]  }
 0x523   :  { %10335 = vmatpush3.bf16.msra.mxu1 %v11093_v6 }
 0x524   :  { %10336 = vmatprep.subr.bf16.mxu1 %v11096_v0  ;;  %v5425_v0 = vrot.slane %v13228_v31, 4 }
 0x525   :  { %10313 = vmatpush3.bf16.msra.mxu0 %v11095_v34  ;;  %v11146_v34 = vld [vmem:[#allocation12 + $0x770] sm:$0xff]  }
 0x526   :  { %10314 = vmatprep.subr.bf16.mxu0 %v11098_v11  ;;  %v5774_v11 = vrot.slane %v13231_v55, 6  ;;  %v11152_v55 = vld [vmem:[#allocation12 + $0x7e0] sm:$0xff]  }
 0x527   :  { %10337 = vmatpush3.bf16.msra.mxu1 %v11097_v61  ;;  %v11145_v61 = vld [vmem:[#allocation12 + $0x7b0] sm:$0xff]  }
 0x528   :  { %10338 = vmatprep.subr.bf16.mxu1 %v11100_v18 }
 0x529   :  { %10315 = vmatpush3.bf16.msra.mxu0 %v11099_v7 }
 0x52a   :  { %10316 = vmatprep.subr.bf16.mxu0 %v11102_v56  ;;  %v11148_v56 = vld [vmem:[#allocation12 + $0x7e8] sm:$0xff]  }
 0x52b   :  { %10339 = vmatpush3.bf16.msra.mxu1 %v11101_v30 }
 0x52c   :  { %10340 = vmatprep.subr.bf16.mxu1 %v11104_v28  ;;  %v11147_v28 = vld [vmem:[#allocation12 + $0x730] sm:$0xff]  }
 0x52d   :  { %10317 = vmatpush3.bf16.msra.mxu0 %v11103_v29 }
 0x52e   :  { %10318 = vmatprep.subr.bf16.mxu0 %v11106_v32 }
 0x52f   :  { %10341 = vmatpush3.bf16.msra.mxu1 %v11105_v2  ;;  %v11150_v2 = vld [vmem:[#allocation12 + $0x768] sm:$0xff]  }
 0x530   :  { %10370 = vmatprep.subr.bf16.mxu1 %v11108_v48 }
 0x531   :  { %10319 = vmatpush3.bf16.msra.mxu0 %v11107_v8  ;;  %v11149_v8 = vld [vmem:[#allocation12 + $0x7a8] sm:$0xff]  }
 0x532   :  { %5384 = vmatmul.mubr.bf16.vlgmr.msra.gmra.mxu1 %v5251_v21  ;;  %10348 = vmatprep.subr.bf16.mxu0 %v11110_v10 }
 0x533   :  { %10371 = vmatpush3.bf16.msra.mxu1 %v11109_v24  ;;  %5731 = vmatprep.mubr.bf16.mxu1 %v5600_v47 }
 0x534   :  { %5210 = vmatmul.mubr.bf16.vlgmr.msra.gmra.mxu0 %v5077_v9  ;;  %10372 = vmatprep.subr.bf16.mxu1 %v11112_v40  ;;  %v11151_v40 = vld [vmem:[#allocation12 + $0x728] sm:$0xff]   ;;  %v11153_v9 = vld [vmem:[#allocation12 + $0x7a0] sm:$0xff]  }
 0x535   :  { %10349 = vmatpush3.bf16.msra.mxu0 %v11111_v19  ;;  %5557 = vmatprep.mubr.bf16.mxu0 %v5426_v41  ;;  %v11154_v19 = vld [vmem:[#allocation12 + $0x760] sm:$0xff]  }
 0x536   :  { %10350 = vmatprep.subr.bf16.mxu0 %v11114_v22  ;;  %v11156_v22 = vld [vmem:[#allocation12 + $0x7d8] sm:$0xff]   ;;  %v11155_v41 = vld [vmem:[#allocation12 + $0x720] sm:$0xff]  }
 0x537   :  { %10373 = vmatpush3.bf16.msra.mxu1 %v11113_v20  ;;  %v11158_v20 = vld [vmem:[#allocation12 + $0x758] sm:$0xff]  }
 0x538   :  { %10374 = vmatprep.subr.bf16.mxu1 %v11116_v50  ;;  %v11157_v50 = vld [vmem:[#allocation12 + $0x798] sm:$0xff]  }
 0x539   :  { %10351 = vmatpush3.bf16.msra.mxu0 %v11115_v36  ;;  %v11160_v36 = vld [vmem:[#allocation12 + $0x7d0] sm:$0xff]  }
 0x53a   :  { %10352 = vmatprep.subr.bf16.mxu0 %v11118_v23  ;;  %v11159_v23 = vld [vmem:[#allocation12 + $0x718] sm:$0xff]  }
 0x53b   :  { %10375 = vmatpush3.bf16.msra.mxu1 %v11117_v12  ;;  %v11162_v12 = vld [vmem:[#allocation12 + $0x750] sm:$0xff]  }
 0x53c   :  { %10376 = vmatprep.subr.bf16.mxu1 %v11120_v45  ;;  %v11161_v45 = vld [vmem:[#allocation12 + $0x790] sm:$0xff]  }
 0x53d   :  { %10353 = vmatpush3.bf16.msra.mxu0 %v11119_v3  ;;  %v11164_v3 = vld [vmem:[#allocation12 + $0x7c8] sm:$0xff]  }
 0x53e   :  { %10354 = vmatprep.subr.bf16.mxu0 %v11122_v37  ;;  %v11163_v37 = vld [vmem:[#allocation12 + $0x710] sm:$0xff]  }
 0x53f   :  { %10377 = vmatpush3.bf16.msra.mxu1 %v11121_v38  ;;  %v11166_v38 = vld [vmem:[#allocation12 + $0x748] sm:$0xff]  }
 0x540   :  { %10378 = vmatprep.subr.bf16.mxu1 %v11124_v60  ;;  %v11165_v60 = vld [vmem:[#allocation12 + $0x788] sm:$0xff]  }
 0x541   :  { %10355 = vmatpush3.bf16.msra.mxu0 %v11123_v51  ;;  %v11168_v51 = vld [vmem:[#allocation12 + $0x7c0] sm:$0xff]  }
 0x542   :  { %10356 = vmatprep.subr.bf16.mxu0 %v11126_v57  ;;  %v11167_v57 = vld [vmem:[#allocation12 + $0x708] sm:$0xff]  }
 0x543   :  { %10379 = vmatpush3.bf16.msra.mxu1 %v11125_v53  ;;  %v11170_v53 = vld [vmem:[#allocation12 + $0x740] sm:$0xff]  }
 0x544   :  { %10380 = vmatprep.subr.bf16.mxu1 %v11128_v25  ;;  %v11169_v25 = vld [vmem:[#allocation12 + $0x780] sm:$0xff]  }
 0x545   :  { %10357 = vmatpush3.bf16.msra.mxu0 %v11127_v43  ;;  %v11172_v43 = vld [vmem:[#allocation12 + $0x8f8] sm:$0xff]  }
 0x546   :  { %10358 = vmatprep.subr.bf16.mxu0 %v11130_v4  ;;  %v11171_v4 = vld [vmem:[#allocation12 + $0x700] sm:$0xff]  }
 0x547   :  { %10381 = vmatpush3.bf16.msra.mxu1 %v11129_v58  ;;  %v11174_v58 = vld [vmem:[#allocation12 + $0x878] sm:$0xff]  }
 0x548   :  { %10382 = vmatprep.subr.bf16.mxu1 %v11132_v49  ;;  %v11173_v49 = vld [vmem:[#allocation12 + $0x8b8] sm:$0xff]  }
 0x549   :  { %10359 = vmatpush3.bf16.msra.mxu0 %v11131_v59  ;;  %v5947_v59 = vrot.slane %v13228_v31, 7 }
 0x54a   :  { %10360 = vmatprep.subr.bf16.mxu0 %v11134_v54  ;;  %v11176_v54 = vld [vmem:[#allocation12 + $0x8f0] sm:$0xff]  }
 0x54b   :  { %10383 = vmatpush3.bf16.msra.mxu1 %v11133_v62  ;;  %v6294_v62 = vrot.slane %v13239_v16, 1 }
 0x54c   :  { %10384 = vmatprep.subr.bf16.mxu1 %v11136_v13  ;;  %v11175_v13 = vld [vmem:[#allocation12 + $0x838] sm:$0xff]  }
 0x54d   :  { %10361 = vmatpush3.bf16.msra.mxu0 %v11135_v52 }
 0x54e   :  { %10362 = vmatprep.subr.bf16.mxu0 %v11138_v35  ;;  %v5773_v35 = vrot.slane %v13228_v31, 6 }
 0x54f   :  { %10385 = vmatpush3.bf16.msra.mxu1 %v11137_v5  ;;  %v11178_v5 = vld [vmem:[#allocation12 + $0x870] sm:$0xff]  }
 0x550   :  { %10414 = vmatprep.subr.bf16.mxu1 %v11140_v26  ;;  %v11177_v26 = vld [vmem:[#allocation12 + $0x8b0] sm:$0xff]  }
 0x551   :  { %10363 = vmatpush3.bf16.msra.mxu0 %v11139_v42 }
 0x552   :  { %5732 = vmatmul.mubr.bf16.vlgmr.msra.gmra.mxu1 %v5599_v44  ;;  %v10122_v6 = vpop.f32.mrf.mxu1  ;;  %10392 = vmatprep.subr.bf16.mxu0 %v11142_v27 }
 0x553   :  { %10415 = vmatpush3.bf16.msra.mxu1 %v11141_v33  ;;  %6079 = vmatprep.mubr.bf16.mxu1 %v5948_v39  ;;  %v11180_v33 = vld [vmem:[#allocation12 + $0x8e8] sm:$0xff]  }
 0x554   :  { %5558 = vmatmul.mubr.bf16.vlgmr.msra.gmra.mxu0 %v5425_v0  ;;  %v10100_v18 = vpop.f32.mrf.mxu0  ;;  %v10123_v7 = vpop.f32.mrf.mxu1  ;;  %10416 = vmatprep.subr.bf16.mxu1 %v11144_v46  ;;  %v11179_v46 = vld [vmem:[#allocation12 + $0x830] sm:$0xff]   ;;  %v11181_v0 = vld [vmem:[#allocation12 + $0x8a8] sm:$0xff]  }
 0x555   :  { %v10124_v30 = vadd.f32 %v10123_v7, %v10122_v6  ;;  %10393 = vmatpush3.bf16.msra.mxu0 %v11143_v14  ;;  %5905 = vmatprep.mubr.bf16.mxu0 %v5774_v11  ;;  %v11182_v6 = vld [vmem:[#allocation12 + $0x868] sm:$0xff]  }
 0x556   :  { %v10101_v29 = vpop.f32.mrf.mxu0  ;;  %v10125_v32 = vpop.f32.mrf.mxu1  ;;  %10394 = vmatprep.subr.bf16.mxu0 %v11146_v34  ;;  %v11183_v7 = vld [vmem:[#allocation12 + $0x828] sm:$0xff]  }
 0x557   :  { %v10102_v48 = vadd.f32 %v10101_v29, %v10100_v18  ;;  %10417 = vmatpush3.bf16.msra.mxu1 %v11145_v61  ;;  %v11184_v61 = vld [vmem:[#allocation12 + $0x8e0] sm:$0xff]   ;;  %v11188_v32 = vld [vmem:[#allocation12 + $0x8d8] sm:$0xff]  }
 0x558   :  { %v10103_v10 = vpop.f32.mrf.mxu0  ;;  %v10126_v24 = vpop.f32.mrf.mxu1  ;;  %10418 = vmatprep.subr.bf16.mxu1 %v11148_v56 }
 0x559   :  { %v13270_v21 = vadd.f32 %v10124_v30, %v10102_v48  ;;  %10395 = vmatpush3.bf16.msra.mxu0 %v11147_v28  ;;  %v11186_v30 = vld [vmem:[#allocation12 + $0x860] sm:$0xff]   ;;  %v11190_v48 = vld [vmem:[#allocation12 + $0x858] sm:$0xff]   ;;  %v11192_v10 = vld [vmem:[#allocation12 + $0x8d0] sm:$0xff]  }
 0x55a   :  { %v10104_v47 = vpop.f32.mrf.mxu0  ;;  %10396 = vmatprep.subr.bf16.mxu0 %v11150_v2  ;;  %v11185_v28 = vld [vmem:[#allocation12 + $0x8a0] sm:$0xff]   ;;  %v11191_v24 = vld [vmem:[#allocation12 + $0x818] sm:$0xff]  }
 0x55b   :  { %10419 = vmatpush3.bf16.msra.mxu1 %v11149_v8  ;;  %v11187_v2 = vld [vmem:[#allocation12 + $0x820] sm:$0xff]   ;;  %v11189_v8 = vld [vmem:[#allocation12 + $0x898] sm:$0xff]   ;;  %v11195_v47 = vld [vmem:[#allocation12 + $0x810] sm:$0xff]  }
 0x55c   :  { %10420 = vmatprep.subr.bf16.mxu1 %v11152_v55  ;;  %v11194_v55 = vld [vmem:[#allocation12 + $0x850] sm:$0xff]  }
 0x55d   :  { %10397 = vmatpush3.bf16.msra.mxu0 %v11151_v40  ;;  %v11196_v40 = vld [vmem:[#allocation12 + $0x8c8] sm:$0xff]  }
 0x55e   :  { %10398 = vmatprep.subr.bf16.mxu0 %v11154_v19  ;;  %v11198_v19 = vld [vmem:[#allocation12 + $0x848] sm:$0xff]  }
 0x55f   :  { %10421 = vmatpush3.bf16.msra.mxu1 %v11153_v9  ;;  %v11197_v9 = vld [vmem:[#allocation12 + $0x888] sm:$0xff]  }
 0x560   :  { %10422 = vmatprep.subr.bf16.mxu1 %v11156_v22  ;;  %v11200_v22 = vld [vmem:[#allocation12 + $0x8c0] sm:$0xff]  }
 0x561   :  { %10399 = vmatpush3.bf16.msra.mxu0 %v11155_v41  ;;  %v11199_v41 = vld [vmem:[#allocation12 + $0x808] sm:$0xff]  }
 0x562   :  { %10400 = vmatprep.subr.bf16.mxu0 %v11158_v20  ;;  %v11202_v20 = vld [vmem:[#allocation12 + $0x840] sm:$0xff]  }
 0x563   :  { %10423 = vmatpush3.bf16.msra.mxu1 %v11157_v50  ;;  %v11201_v50 = vld [vmem:[#allocation12 + $0x880] sm:$0xff]  }
 0x564   :  { %10424 = vmatprep.subr.bf16.mxu1 %v11160_v36  ;;  %v11204_v36 = vld [vmem:[#allocation12 + $0x9f8] sm:$0xff]  }
 0x565   :  { %10401 = vmatpush3.bf16.msra.mxu0 %v11159_v23  ;;  %v11203_v23 = vld [vmem:[#allocation12 + $0x800] sm:$0xff]  }
 0x566   :  { %10402 = vmatprep.subr.bf16.mxu0 %v11162_v12  ;;  %v11206_v12 = vld [vmem:[#allocation12 + $0x978] sm:$0xff]  }
 0x567   :  { %10425 = vmatpush3.bf16.msra.mxu1 %v11161_v45  ;;  %v11205_v45 = vld [vmem:[#allocation12 + $0x9b8] sm:$0xff]  }
 0x568   :  { %10426 = vmatprep.subr.bf16.mxu1 %v11164_v3  ;;  %v6293_v3 = vrot.slane %v13236_v17, 1 }
 0x569   :  { %10403 = vmatpush3.bf16.msra.mxu0 %v11163_v37  ;;  %v11208_v37 = vld [vmem:[#allocation12 + $0x9f0] sm:$0xff]  }
 0x56a   :  { %10404 = vmatprep.subr.bf16.mxu0 %v11166_v38  ;;  %v6642_v38 = vrot.slane %v13239_v16, 3 }
 0x56b   :  { %10427 = vmatpush3.bf16.msra.mxu1 %v11165_v60  ;;  %v11207_v60 = vld [vmem:[#allocation12 + $0x938] sm:$0xff]  }
 0x56c   :  { %10428 = vmatprep.subr.bf16.mxu1 %v11168_v51 }
 0x56d   :  { %10405 = vmatpush3.bf16.msra.mxu0 %v11167_v57  ;;  %v11210_v57 = vld [vmem:[#allocation12 + $0x970] sm:$0xff]  }
 0x56e   :  { %10406 = vmatprep.subr.bf16.mxu0 %v11170_v53  ;;  %v6468_v53 = vrot.slane %v13239_v16, 2 }
 0x56f   :  { %10429 = vmatpush3.bf16.msra.mxu1 %v11169_v25  ;;  %v11209_v25 = vld [vmem:[#allocation12 + $0x9b0] sm:$0xff]  }
 0x570   :  { %10458 = vmatprep.subr.bf16.mxu1 %v11172_v43 }
 0x571   :  { %10407 = vmatpush3.bf16.msra.mxu0 %v11171_v4 }
 0x572   :  { %v10166_v52 = vpop.f32.mrf.mxu1  ;;  %6080 = vmatmul.mubr.bf16.vlgmr.msra.gmra.mxu1 %v5947_v59  ;;  %10436 = vmatprep.subr.bf16.mxu0 %v11174_v58  ;;  %v11212_v58 = vld [vmem:[#allocation12 + $0x9e8] sm:$0xff]   ;;  %v11211_v59 = vld [vmem:[#allocation12 + $0x930] sm:$0xff]  }
 0x573   :  { %10459 = vmatpush3.bf16.msra.mxu1 %v11173_v49  ;;  %6425 = vmatprep.mubr.bf16.mxu1 %v6294_v62 }
 0x574   :  { %v10144_v42 = vpop.f32.mrf.mxu0  ;;  %v10167_v27 = vpop.f32.mrf.mxu1  ;;  %5906 = vmatmul.mubr.bf16.vlgmr.msra.gmra.mxu0 %v5773_v35  ;;  %10460 = vmatprep.subr.bf16.mxu1 %v11176_v54  ;;  %v11213_v35 = vld [vmem:[#allocation12 + $0x9a8] sm:$0xff]  }
 0x575   :  { %v10168_v44 = vadd.f32 %v10167_v27, %v10166_v52  ;;  %10437 = vmatpush3.bf16.msra.mxu0 %v11175_v13  ;;  %6249 = vmatprep.mubr.bf16.mxu0 %v13239_v16  ;;  %v11214_v13 = vld [vmem:[#allocation12 + $0x968] sm:$0xff]  }
 0x576   :  { %v10145_v39 = vpop.f32.mrf.mxu0  ;;  %v10169_v14 = vpop.f32.mrf.mxu1  ;;  %10438 = vmatprep.subr.bf16.mxu0 %v11178_v5 }
 0x577   :  { %v10146_v31 = vadd.f32 %v10145_v39, %v10144_v42  ;;  %10461 = vmatpush3.bf16.msra.mxu1 %v11177_v26  ;;  %v11216_v42 = vld [vmem:[#allocation12 + $0x9e0] sm:$0xff]  }
 0x578   :  { %v10147_v34 = vpop.f32.mrf.mxu0  ;;  %v10170_v11 = vpop.f32.mrf.mxu1  ;;  %10462 = vmatprep.subr.bf16.mxu1 %v11180_v33  ;;  %v11215_v33 = vld [vmem:[#allocation12 + $0x928] sm:$0xff]   ;;  %v11217_v39 = vld [vmem:[#allocation12 + $0x9a0] sm:$0xff]  }
 0x579   :  { %v3827_v18 = vadd.f32 %v10146_v31, %v13270_v21  ;;  %10439 = vmatpush3.bf16.msra.mxu0 %v11179_v46  ;;  %v11193_v21 = vld [vmem:[#allocation12 + $0x890] sm:$0xff]   ;;  %v11218_v46 = vld [vmem:[#allocation12 + $0x960] sm:$0xff]   ;;  %v11221_v34 = vld [vmem:[#allocation12 + $0x998] sm:$0xff]  }
 0x57a   :  { %v10148_v56 = vpop.f32.mrf.mxu0  ;;  %10440 = vmatprep.subr.bf16.mxu0 %v11182_v6  ;;  %v11220_v6 = vld [vmem:[#allocation12 + $0x9d8] sm:$0xff]   ;;  %v11219_v31 = vld [vmem:[#allocation12 + $0x920] sm:$0xff]   ;;  %v11224_v11 = vld [vmem:[#allocation12 + $0x9d0] sm:$0xff]  }
 0x57b   :  { %10463 = vmatpush3.bf16.msra.mxu1 %v11181_v0  ;;  %v13277_v29 = vadd.f32 %v10168_v44, %v3827_v18  ;;  %v11222_v0 = vld [vmem:[#allocation12 + $0x958] sm:$0xff]   ;;  %v11226_v18 = vld [vmem:[#allocation12 + $0x950] sm:$0xff]   ;;  %v11228_v56 = vld [vmem:[#allocation12 + $0x9c8] sm:$0xff]  }
 0x57c   :  { %10464 = vmatprep.subr.bf16.mxu1 %v11184_v61  ;;  %v11223_v61 = vld [vmem:[#allocation12 + $0x918] sm:$0xff]  }
 0x57d   :  { %10441 = vmatpush3.bf16.msra.mxu0 %v11183_v7  ;;  %v11225_v7 = vld [vmem:[#allocation12 + $0x990] sm:$0xff]  }
 0x57e   :  { %10442 = vmatprep.subr.bf16.mxu0 %v11186_v30  ;;  %v11227_v30 = vld [vmem:[#allocation12 + $0x910] sm:$0xff]  }
 0x57f   :  { %10465 = vmatpush3.bf16.msra.mxu1 %v11185_v28  ;;  %v11230_v28 = vld [vmem:[#allocation12 + $0x948] sm:$0xff]  }
 0x580   :  { %10466 = vmatprep.subr.bf16.mxu1 %v11188_v32  ;;  %v11232_v32 = vld [vmem:[#allocation12 + $0x9c0] sm:$0xff]  }
 0x581   :  { %10443 = vmatpush3.bf16.msra.mxu0 %v11187_v2  ;;  %v11231_v2 = vld [vmem:[#allocation12 + $0x908] sm:$0xff]  }
 0x582   :  { %10444 = vmatprep.subr.bf16.mxu0 %v11190_v48  ;;  %v11234_v48 = vld [vmem:[#allocation12 + $0x940] sm:$0xff]  }
 0x583   :  { %10467 = vmatpush3.bf16.msra.mxu1 %v11189_v8  ;;  %v11233_v8 = vld [vmem:[#allocation12 + $0x980] sm:$0xff]  }
 0x584   :  { %10468 = vmatprep.subr.bf16.mxu1 %v11192_v10  ;;  %v11236_v10 = vld [vmem:[#allocation12 + $0xaf8] sm:$0xff]  }
 0x585   :  { %10445 = vmatpush3.bf16.msra.mxu0 %v11191_v24  ;;  %v11235_v24 = vld [vmem:[#allocation12 + $0x900] sm:$0xff]  }
 0x586   :  { %10446 = vmatprep.subr.bf16.mxu0 %v11194_v55  ;;  %v11238_v55 = vld [vmem:[#allocation12 + $0xa78] sm:$0xff]  }
 0x587   :  { %10469 = vmatpush3.bf16.msra.mxu1 %v11193_v21  ;;  %v11237_v21 = vld [vmem:[#allocation12 + $0xab8] sm:$0xff]  }
 0x588   :  { %10470 = vmatprep.subr.bf16.mxu1 %v11196_v40  ;;  %v6641_v40 = vrot.slane %v13236_v17, 3 }
 0x589   :  { %10447 = vmatpush3.bf16.msra.mxu0 %v11195_v47  ;;  %v11240_v47 = vld [vmem:[#allocation12 + $0xaf0] sm:$0xff]  }
 0x58a   :  { %10448 = vmatprep.subr.bf16.mxu0 %v11198_v19  ;;  %v6990_v19 = vrot.slane %v13239_v16, 5 }
 0x58b   :  { %10471 = vmatpush3.bf16.msra.mxu1 %v11197_v9  ;;  %v11239_v9 = vld [vmem:[#allocation12 + $0xa38] sm:$0xff]  }
 0x58c   :  { %10472 = vmatprep.subr.bf16.mxu1 %v11200_v22 }
 0x58d   :  { %10449 = vmatpush3.bf16.msra.mxu0 %v11199_v41  ;;  %v6467_v41 = vrot.slane %v13236_v17, 2 }
 0x58e   :  { %10450 = vmatprep.subr.bf16.mxu0 %v11202_v20  ;;  %v11242_v20 = vld [vmem:[#allocation12 + $0xa70] sm:$0xff]  }
 0x58f   :  { %10473 = vmatpush3.bf16.msra.mxu1 %v11201_v50  ;;  %v6816_v50 = vrot.slane %v13239_v16, 4 }
 0x590   :  { %10502 = vmatprep.subr.bf16.mxu1 %v11204_v36  ;;  %v11241_v36 = vld [vmem:[#allocation12 + $0xab0] sm:$0xff]  }
 0x591   :  { %10451 = vmatpush3.bf16.msra.mxu0 %v11203_v23 }
 0x592   :  { %v10210_v51 = vpop.f32.mrf.mxu1  ;;  %6426 = vmatmul.mubr.bf16.vlgmr.msra.gmra.mxu1 %v6293_v3  ;;  %10480 = vmatprep.subr.bf16.mxu0 %v11206_v12 }
 0x593   :  { %10503 = vmatpush3.bf16.msra.mxu1 %v11205_v45  ;;  %6773 = vmatprep.mubr.bf16.mxu1 %v6642_v38  ;;  %v11244_v45 = vld [vmem:[#allocation12 + $0xae8] sm:$0xff]  }
 0x594   :  { %v10188_v43 = vpop.f32.mrf.mxu0  ;;  %v10211_v4 = vpop.f32.mrf.mxu1  ;;  %6250 = vmatmul.mubr.bf16.vlgmr.msra.gmra.mxu0 %v13236_v17  ;;  %10504 = vmatprep.subr.bf16.mxu1 %v11208_v37  ;;  %v11243_v37 = vld [vmem:[#allocation12 + $0xa30] sm:$0xff]  }
 0x595   :  { %v10212_v49 = vadd.f32 %v10211_v4, %v10210_v51  ;;  %10481 = vmatpush3.bf16.msra.mxu0 %v11207_v60  ;;  %6599 = vmatprep.mubr.bf16.mxu0 %v6468_v53  ;;  %v11246_v51 = vld [vmem:[#allocation12 + $0xa68] sm:$0xff]   ;;  %v11248_v4 = vld [vmem:[#allocation12 + $0xae0] sm:$0xff]  }
 0x596   :  { %v10189_v54 = vpop.f32.mrf.mxu0  ;;  %v10213_v62 = vpop.f32.mrf.mxu1  ;;  %10482 = vmatprep.subr.bf16.mxu0 %v11210_v57  ;;  %v11245_v53 = vld [vmem:[#allocation12 + $0xaa8] sm:$0xff]  }
 0x597   :  { %v10190_v52 = vadd.f32 %v10189_v54, %v10188_v43  ;;  %10505 = vmatpush3.bf16.msra.mxu1 %v11209_v25  ;;  %v11250_v54 = vld [vmem:[#allocation12 + $0xa60] sm:$0xff]  }
 0x598   :  { %v10191_v5 = vpop.f32.mrf.mxu0  ;;  %v10214_v26 = vpop.f32.mrf.mxu1  ;;  %10506 = vmatprep.subr.bf16.mxu1 %v11212_v58  ;;  %v11249_v62 = vld [vmem:[#allocation12 + $0xaa0] sm:$0xff]  }
 0x599   :  { %v4175_v27 = vadd.f32 %v10190_v52, %v13277_v29  ;;  %10483 = vmatpush3.bf16.msra.mxu0 %v11211_v59  ;;  %v11229_v29 = vld [vmem:[#allocation12 + $0x988] sm:$0xff]   ;;  %v11252_v52 = vld [vmem:[#allocation12 + $0xad8] sm:$0xff]  }
 0x59a   :  { %v10192_v44 = vpop.f32.mrf.mxu0  ;;  %10484 = vmatprep.subr.bf16.mxu0 %v11214_v13  ;;  %v11254_v5 = vld [vmem:[#allocation12 + $0xa58] sm:$0xff]  }
 0x59b   :  { %10507 = vmatpush3.bf16.msra.mxu1 %v11213_v35  ;;  %v13284_v14 = vadd.f32 %v10212_v49, %v4175_v27  ;;  %v11247_v49 = vld [vmem:[#allocation12 + $0xa28] sm:$0xff]   ;;  %v11251_v35 = vld [vmem:[#allocation12 + $0xa20] sm:$0xff]   ;;  %v11253_v26 = vld [vmem:[#allocation12 + $0xa98] sm:$0xff]  }
 0x59c   :  { %10508 = vmatprep.subr.bf16.mxu1 %v11216_v42  ;;  %v11256_v42 = vld [vmem:[#allocation12 + $0xad0] sm:$0xff]   ;;  %v11255_v27 = vld [vmem:[#allocation12 + $0xa18] sm:$0xff]  }
 0x59d   :  { %10485 = vmatpush3.bf16.msra.mxu0 %v11215_v33  ;;  %v11258_v33 = vld [vmem:[#allocation12 + $0xa50] sm:$0xff]  }
 0x59e   :  { %10486 = vmatprep.subr.bf16.mxu0 %v11218_v46  ;;  %v11257_v44 = vld [vmem:[#allocation12 + $0xa90] sm:$0xff]   ;;  %v11260_v46 = vld [vmem:[#allocation12 + $0xac8] sm:$0xff]  }
 0x59f   :  { %10509 = vmatpush3.bf16.msra.mxu1 %v11217_v39  ;;  %v11259_v39 = vld [vmem:[#allocation12 + $0xa10] sm:$0xff]  }
 0x5a0   :  { %10510 = vmatprep.subr.bf16.mxu1 %v11220_v6  ;;  %v11261_v6 = vld [vmem:[#allocation12 + $0xa88] sm:$0xff]  }
 0x5a1   :  { %10487 = vmatpush3.bf16.msra.mxu0 %v11219_v31  ;;  %v11264_v31 = vld [vmem:[#allocation12 + $0xac0] sm:$0xff]  }
 0x5a2   :  { %10488 = vmatprep.subr.bf16.mxu0 %v11222_v0  ;;  %v11263_v0 = vld [vmem:[#allocation12 + $0xa08] sm:$0xff]  }
 0x5a3   :  { %10511 = vmatpush3.bf16.msra.mxu1 %v11221_v34  ;;  %v11266_v34 = vld [vmem:[#allocation12 + $0xa40] sm:$0xff]  }
 0x5a4   :  { %10512 = vmatprep.subr.bf16.mxu1 %v11224_v11  ;;  %v11265_v11 = vld [vmem:[#allocation12 + $0xa80] sm:$0xff]  }
 0x5a5   :  { %10489 = vmatpush3.bf16.msra.mxu0 %v11223_v61  ;;  %v11268_v61 = vld [vmem:[#allocation12 + $0xbf8] sm:$0xff]  }
 0x5a6   :  { %10490 = vmatprep.subr.bf16.mxu0 %v11226_v18  ;;  %v11267_v18 = vld [vmem:[#allocation12 + $0xa00] sm:$0xff]  }
 0x5a7   :  { %10513 = vmatpush3.bf16.msra.mxu1 %v11225_v7  ;;  %v11270_v7 = vld [vmem:[#allocation12 + $0xb78] sm:$0xff]  }
 0x5a8   :  { %10514 = vmatprep.subr.bf16.mxu1 %v11228_v56  ;;  %v11269_v56 = vld [vmem:[#allocation12 + $0xbb8] sm:$0xff]  }
 0x5a9   :  { %10491 = vmatpush3.bf16.msra.mxu0 %v11227_v30  ;;  %v6989_v30 = vrot.slane %v13236_v17, 5 }
 0x5aa   :  { %10492 = vmatprep.subr.bf16.mxu0 %v11230_v28  ;;  %v11272_v28 = vld [vmem:[#allocation12 + $0xbf0] sm:$0xff]  }
 0x5ab   :  { %10515 = vmatpush3.bf16.msra.mxu1 %v11229_v29  ;;  %v7338_v29 = vrot.slane %v13239_v16, 7 }
 0x5ac   :  { %10516 = vmatprep.subr.bf16.mxu1 %v11232_v32  ;;  %v11271_v32 = vld [vmem:[#allocation12 + $0xb38] sm:$0xff]  }
 0x5ad   :  { %10493 = vmatpush3.bf16.msra.mxu0 %v11231_v2 }
 0x5ae   :  { %10494 = vmatprep.subr.bf16.mxu0 %v11234_v48  ;;  %v6815_v48 = vrot.slane %v13236_v17, 4 }
 0x5af   :  { %10517 = vmatpush3.bf16.msra.mxu1 %v11233_v8  ;;  %v11274_v8 = vld [vmem:[#allocation12 + $0xb70] sm:$0xff]  }
 0x5b0   :  { %10546 = vmatprep.subr.bf16.mxu1 %v11236_v10  ;;  %v7164_v10 = vrot.slane %v13239_v16, 6  ;;  %v11280_v16 = vld [vmem:[#allocation12 + $0xbe0] sm:$0xff]  }
 0x5b1   :  { %10495 = vmatpush3.bf16.msra.mxu0 %v11235_v24  ;;  %v11273_v24 = vld [vmem:[#allocation12 + $0xbb0] sm:$0xff]  }
 0x5b2   :  { %v10254_v22 = vpop.f32.mrf.mxu1  ;;  %6774 = vmatmul.mubr.bf16.vlgmr.msra.gmra.mxu1 %v6641_v40  ;;  %10524 = vmatprep.subr.bf16.mxu0 %v11238_v55  ;;  %v11276_v40 = vld [vmem:[#allocation12 + $0xbe8] sm:$0xff]  }
 0x5b3   :  { %10547 = vmatpush3.bf16.msra.mxu1 %v11237_v21  ;;  %7121 = vmatprep.mubr.bf16.mxu1 %v6990_v19  ;;  %v11275_v19 = vld [vmem:[#allocation12 + $0xb30] sm:$0xff]  }
 0x5b4   :  { %v10232_v23 = vpop.f32.mrf.mxu0  ;;  %v10255_v12 = vpop.f32.mrf.mxu1  ;;  %6600 = vmatmul.mubr.bf16.vlgmr.msra.gmra.mxu0 %v6467_v41  ;;  %10548 = vmatprep.subr.bf16.mxu1 %v11240_v47  ;;  %v11278_v41 = vld [vmem:[#allocation12 + $0xb68] sm:$0xff]  }
 0x5b5   :  { %v10256_v3 = vadd.f32 %v10255_v12, %v10254_v22  ;;  %10525 = vmatpush3.bf16.msra.mxu0 %v11239_v9  ;;  %6947 = vmatprep.mubr.bf16.mxu0 %v6816_v50  ;;  %v11277_v50 = vld [vmem:[#allocation12 + $0xba8] sm:$0xff]  }
 0x5b6   :  { %v10233_v38 = vpop.f32.mrf.mxu0  ;;  %v10257_v60 = vpop.f32.mrf.mxu1  ;;  %10526 = vmatprep.subr.bf16.mxu0 %v11242_v20 }
 0x5b7   :  { %v10234_v57 = vadd.f32 %v10233_v38, %v10232_v23  ;;  %10549 = vmatpush3.bf16.msra.mxu1 %v11241_v36  ;;  %v11281_v38 = vld [vmem:[#allocation12 + $0xba0] sm:$0xff]  }
 0x5b8   :  { %v10235_v25 = vpop.f32.mrf.mxu0  ;;  %v10258_v43 = vpop.f32.mrf.mxu1  ;;  %10550 = vmatprep.subr.bf16.mxu1 %v11244_v45  ;;  %v11279_v45 = vld [vmem:[#allocation12 + $0xb28] sm:$0xff]  }
 0x5b9   :  { %v4523_v58 = vadd.f32 %v10234_v57, %v13284_v14  ;;  %10527 = vmatpush3.bf16.msra.mxu0 %v11243_v37  ;;  %v11262_v14 = vld [vmem:[#allocation12 + $0xa48] sm:$0xff]   ;;  %v11282_v37 = vld [vmem:[#allocation12 + $0xb60] sm:$0xff]   ;;  %v11285_v25 = vld [vmem:[#allocation12 + $0xb98] sm:$0xff]  }
 0x5ba   :  { %v10236_v59 = vpop.f32.mrf.mxu0  ;;  %10528 = vmatprep.subr.bf16.mxu0 %v11246_v51  ;;  %v11284_v51 = vld [vmem:[#allocation12 + $0xbd8] sm:$0xff]   ;;  %v11283_v57 = vld [vmem:[#allocation12 + $0xb20] sm:$0xff]   ;;  %v11288_v43 = vld [vmem:[#allocation12 + $0xbd0] sm:$0xff]  }
 0x5bb   :  { %10551 = vmatpush3.bf16.msra.mxu1 %v11245_v53  ;;  %v13291_v13 = vadd.f32 %v10256_v3, %v4523_v58  ;;  %v11286_v53 = vld [vmem:[#allocation12 + $0xb58] sm:$0xff]   ;;  %v11290_v58 = vld [vmem:[#allocation12 + $0xb50] sm:$0xff]   ;;  %v11292_v59 = vld [vmem:[#allocation12 + $0xbc8] sm:$0xff]  }
 0x5bc   :  { %10552 = vmatprep.subr.bf16.mxu1 %v11248_v4  ;;  %v11287_v4 = vld [vmem:[#allocation12 + $0xb18] sm:$0xff]  }
 0x5bd   :  { %10529 = vmatpush3.bf16.msra.mxu0 %v11247_v49  ;;  %v11289_v49 = vld [vmem:[#allocation12 + $0xb90] sm:$0xff]  }
 0x5be   :  { %10530 = vmatprep.subr.bf16.mxu0 %v11250_v54  ;;  %v11291_v54 = vld [vmem:[#allocation12 + $0xb10] sm:$0xff]  }
 0x5bf   :  { %10553 = vmatpush3.bf16.msra.mxu1 %v11249_v62  ;;  %v11294_v62 = vld [vmem:[#allocation12 + $0xb48] sm:$0xff]  }
 0x5c0   :  { %10554 = vmatprep.subr.bf16.mxu1 %v11252_v52  ;;  %v11296_v52 = vld [vmem:[#allocation12 + $0xbc0] sm:$0xff]  }
 0x5c1   :  { %10531 = vmatpush3.bf16.msra.mxu0 %v11251_v35  ;;  %v11295_v35 = vld [vmem:[#allocation12 + $0xb08] sm:$0xff]  }
 0x5c2   :  { %10532 = vmatprep.subr.bf16.mxu0 %v11254_v5  ;;  %v11298_v5 = vld [vmem:[#allocation12 + $0xb40] sm:$0xff]  }
 0x5c3   :  { %10555 = vmatpush3.bf16.msra.mxu1 %v11253_v26  ;;  %v11297_v26 = vld [vmem:[#allocation12 + $0xb80] sm:$0xff]  }
 0x5c4   :  { %10556 = vmatprep.subr.bf16.mxu1 %v11256_v42  ;;  %v11300_v42 = vld [vmem:[#allocation12 + $0xcf8] sm:$0xff]  }
 0x5c5   :  { %10533 = vmatpush3.bf16.msra.mxu0 %v11255_v27  ;;  %v11299_v27 = vld [vmem:[#allocation12 + $0xb00] sm:$0xff]  }
 0x5c6   :  { %10534 = vmatprep.subr.bf16.mxu0 %v11258_v33  ;;  %v11302_v33 = vld [vmem:[#allocation12 + $0xc78] sm:$0xff]  }
 0x5c7   :  { %10557 = vmatpush3.bf16.msra.mxu1 %v11257_v44  ;;  %v11301_v44 = vld [vmem:[#allocation12 + $0xcb8] sm:$0xff]  }
 0x5c8   :  { %10558 = vmatprep.subr.bf16.mxu1 %v11260_v46  ;;  %v7337_v46 = vrot.slane %v13236_v17, 7 }
 0x5c9   :  { %10535 = vmatpush3.bf16.msra.mxu0 %v11259_v39  ;;  %v11304_v39 = vld [vmem:[#allocation12 + $0xcf0] sm:$0xff]  }
 0x5ca   :  { %10536 = vmatprep.subr.bf16.mxu0 %v11262_v14  ;;  %v7684_v14 = vrot.slane %v13244_v1, 1 }
 0x5cb   :  { %10559 = vmatpush3.bf16.msra.mxu1 %v11261_v6  ;;  %v11303_v6 = vld [vmem:[#allocation12 + $0xc38] sm:$0xff]  }
 0x5cc   :  { %10560 = vmatprep.subr.bf16.mxu1 %v11264_v31 }
 0x5cd   :  { %10537 = vmatpush3.bf16.msra.mxu0 %v11263_v0  ;;  %v7163_v0 = vrot.slane %v13236_v17, 6 }
 0x5ce   :  { %10538 = vmatprep.subr.bf16.mxu0 %v11266_v34  ;;  %v11306_v34 = vld [vmem:[#allocation12 + $0xc70] sm:$0xff]  }
 0x5cf   :  { %10561 = vmatpush3.bf16.msra.mxu1 %v11265_v11  ;;  %v11305_v11 = vld [vmem:[#allocation12 + $0xcb0] sm:$0xff]  }
 0x5d0   :  { %10590 = vmatprep.subr.bf16.mxu1 %v11268_v61 }
 0x5d1   :  { %10539 = vmatpush3.bf16.msra.mxu0 %v11267_v18 }
 0x5d2   :  { %v10298_v2 = vpop.f32.mrf.mxu1  ;;  %7122 = vmatmul.mubr.bf16.vlgmr.msra.gmra.mxu1 %v6989_v30  ;;  %10568 = vmatprep.subr.bf16.mxu0 %v11270_v7  ;;  %v11308_v7 = vld [vmem:[#allocation12 + $0xce8] sm:$0xff]   ;;  %v11307_v30 = vld [vmem:[#allocation12 + $0xc30] sm:$0xff]  }
 0x5d3   :  { %10591 = vmatpush3.bf16.msra.mxu1 %v11269_v56  ;;  %7469 = vmatprep.mubr.bf16.mxu1 %v7338_v29 }
 0x5d4   :  { %v10276_v55 = vpop.f32.mrf.mxu0  ;;  %v10299_v21 = vpop.f32.mrf.mxu1  ;;  %6948 = vmatmul.mubr.bf16.vlgmr.msra.gmra.mxu0 %v6815_v48  ;;  %10592 = vmatprep.subr.bf16.mxu1 %v11272_v28 }
 0x5d5   :  { %v10300_v47 = vadd.f32 %v10299_v21, %v10298_v2  ;;  %10569 = vmatpush3.bf16.msra.mxu0 %v11271_v32  ;;  %7295 = vmatprep.mubr.bf16.mxu0 %v7164_v10  ;;  %v11310_v32 = vld [vmem:[#allocation12 + $0xc68] sm:$0xff]   ;;  %v11312_v10 = vld [vmem:[#allocation12 + $0xce0] sm:$0xff]  }
 0x5d6   :  { %v10277_v9 = vpop.f32.mrf.mxu0  ;;  %v10301_v22 = vpop.f32.mrf.mxu1  ;;  %10570 = vmatprep.subr.bf16.mxu0 %v11274_v8  ;;  %v11309_v2 = vld [vmem:[#allocation12 + $0xca8] sm:$0xff]  }
 0x5d7   :  { %v10278_v20 = vadd.f32 %v10277_v9, %v10276_v55  ;;  %10593 = vmatpush3.bf16.msra.mxu1 %v11273_v24  ;;  %v11311_v55 = vld [vmem:[#allocation12 + $0xc28] sm:$0xff]   ;;  %v11316_v9 = vld [vmem:[#allocation12 + $0xcd8] sm:$0xff]   ;;  %v11315_v22 = vld [vmem:[#allocation12 + $0xc20] sm:$0xff]  }
 0x5d8   :  { %v10279_v36 = vpop.f32.mrf.mxu0  ;;  %v10302_v23 = vpop.f32.mrf.mxu1  ;;  %10594 = vmatprep.subr.bf16.mxu1 %v11276_v40  ;;  %v11314_v40 = vld [vmem:[#allocation12 + $0xc60] sm:$0xff]  }
 0x5d9   :  { %v4867_v12 = vadd.f32 %v10278_v20, %v13291_v13  ;;  %10571 = vmatpush3.bf16.msra.mxu0 %v11275_v19  ;;  %v11293_v13 = vld [vmem:[#allocation12 + $0xb88] sm:$0xff]   ;;  %v11317_v20 = vld [vmem:[#allocation12 + $0xc98] sm:$0xff]   ;;  %v11322_v23 = vld [vmem:[#allocation12 + $0xc50] sm:$0xff]  }
 0x5da   :  { %v10280_v3 = vpop.f32.mrf.mxu0  ;;  %10572 = vmatprep.subr.bf16.mxu0 %v11278_v41  ;;  %v11318_v41 = vld [vmem:[#allocation12 + $0xc58] sm:$0xff]  }
 0x5db   :  { %10595 = vmatpush3.bf16.msra.mxu1 %v11277_v50  ;;  %v13298_v60 = vadd.f32 %v10300_v47, %v4867_v12  ;;  %v11313_v47 = vld [vmem:[#allocation12 + $0xca0] sm:$0xff]   ;;  %v11320_v50 = vld [vmem:[#allocation12 + $0xcd0] sm:$0xff]   ;;  %v11319_v36 = vld [vmem:[#allocation12 + $0xc18] sm:$0xff]  }
 0x5dc   :  { %10596 = vmatprep.subr.bf16.mxu1 %v11280_v16  ;;  %v11321_v16 = vld [vmem:[#allocation12 + $0xc90] sm:$0xff]   ;;  %v11324_v12 = vld [vmem:[#allocation12 + $0xcc8] sm:$0xff]  }
 0x5dd   :  { %10573 = vmatpush3.bf16.msra.mxu0 %v11279_v45  ;;  %v11323_v45 = vld [vmem:[#allocation12 + $0xc10] sm:$0xff]   ;;  %v11326_v3 = vld [vmem:[#allocation12 + $0xc48] sm:$0xff]  }
 0x5de   :  { %10574 = vmatprep.subr.bf16.mxu0 %v11282_v37  ;;  %v11325_v37 = vld [vmem:[#allocation12 + $0xc88] sm:$0xff]  }
 0x5df   :  { %10597 = vmatpush3.bf16.msra.mxu1 %v11281_v38  ;;  %v11328_v38 = vld [vmem:[#allocation12 + $0xcc0] sm:$0xff]  }
 0x5e0   :  { %10598 = vmatprep.subr.bf16.mxu1 %v11284_v51  ;;  %v11330_v51 = vld [vmem:[#allocation12 + $0xc40] sm:$0xff]  }
 0x5e1   :  { %10575 = vmatpush3.bf16.msra.mxu0 %v11283_v57  ;;  %v11329_v57 = vld [vmem:[#allocation12 + $0xc80] sm:$0xff]  }
 0x5e2   :  { %10576 = vmatprep.subr.bf16.mxu0 %v11286_v53  ;;  %v11332_v53 = vld [vmem:[#allocation12 + $0xdf8] sm:$0xff]  }
 0x5e3   :  { %10599 = vmatpush3.bf16.msra.mxu1 %v11285_v25  ;;  %v11331_v25 = vld [vmem:[#allocation12 + $0xc00] sm:$0xff]  }
 0x5e4   :  { %10600 = vmatprep.subr.bf16.mxu1 %v11288_v43  ;;  %v11334_v43 = vld [vmem:[#allocation12 + $0xd78] sm:$0xff]  }
 0x5e5   :  { %10577 = vmatpush3.bf16.msra.mxu0 %v11287_v4  ;;  %v11333_v4 = vld [vmem:[#allocation12 + $0xdb8] sm:$0xff]  }
 0x5e6   :  { %10578 = vmatprep.subr.bf16.mxu0 %v11290_v58  ;;  %v7683_v58 = vrot.slane %v13242_v63, 1 }
 0x5e7   :  { %10601 = vmatpush3.bf16.msra.mxu1 %v11289_v49  ;;  %v11336_v49 = vld [vmem:[#allocation12 + $0xdf0] sm:$0xff]  }
 0x5e8   :  { %10602 = vmatprep.subr.bf16.mxu1 %v11292_v59  ;;  %v8032_v59 = vrot.slane %v13244_v1, 3 }
 0x5e9   :  { %10579 = vmatpush3.bf16.msra.mxu0 %v11291_v54  ;;  %v11335_v54 = vld [vmem:[#allocation12 + $0xd38] sm:$0xff]  }
 0x5ea   :  { %10580 = vmatprep.subr.bf16.mxu0 %v11294_v62 }
 0x5eb   :  { %10603 = vmatpush3.bf16.msra.mxu1 %v11293_v13  ;;  %v11338_v13 = vld [vmem:[#allocation12 + $0xd70] sm:$0xff]  }
 0x5ec   :  { %10604 = vmatprep.subr.bf16.mxu1 %v11296_v52  ;;  %v7858_v52 = vrot.slane %v13244_v1, 2 }
 0x5ed   :  { %10581 = vmatpush3.bf16.msra.mxu0 %v11295_v35  ;;  %v11337_v35 = vld [vmem:[#allocation12 + $0xdb0] sm:$0xff]  }
 0x5ee   :  { %10582 = vmatprep.subr.bf16.mxu0 %v11298_v5 }
 0x5ef   :  { %10605 = vmatpush3.bf16.msra.mxu1 %v11297_v26 }
 0x5f0   :  { %10634 = vmatprep.subr.bf16.mxu1 %v11300_v42  ;;  %v11340_v42 = vld [vmem:[#allocation12 + $0xde8] sm:$0xff]  }
 0x5f1   :  { %10583 = vmatpush3.bf16.msra.mxu0 %v11299_v27 }
 0x5f2   :  { %v10342_v31 = vpop.f32.mrf.mxu1  ;;  %7470 = vmatmul.mubr.bf16.vlgmr.msra.gmra.mxu1 %v7337_v46  ;;  %10612 = vmatprep.subr.bf16.mxu0 %v11302_v33  ;;  %v11339_v33 = vld [vmem:[#allocation12 + $0xd30] sm:$0xff]  }
 0x5f3   :  { %10635 = vmatpush3.bf16.msra.mxu1 %v11301_v44  ;;  %7815 = vmatprep.mubr.bf16.mxu1 %v7684_v14 }
 0x5f4   :  { %v10320_v61 = vpop.f32.mrf.mxu0  ;;  %v10343_v18 = vpop.f32.mrf.mxu1  ;;  %7296 = vmatmul.mubr.bf16.vlgmr.msra.gmra.mxu0 %v7163_v0  ;;  %10636 = vmatprep.subr.bf16.mxu1 %v11304_v39  ;;  %v11342_v39 = vld [vmem:[#allocation12 + $0xd68] sm:$0xff]  }
 0x5f5   :  { %v10344_v56 = vadd.f32 %v10343_v18, %v10342_v31  ;;  %10613 = vmatpush3.bf16.msra.mxu0 %v11303_v6  ;;  %7639 = vmatprep.mubr.bf16.mxu0 %v13244_v1  ;;  %v11341_v6 = vld [vmem:[#allocation12 + $0xda8] sm:$0xff]  }
 0x5f6   :  { %v10321_v28 = vpop.f32.mrf.mxu0  ;;  %v10345_v29 = vpop.f32.mrf.mxu1  ;;  %10614 = vmatprep.subr.bf16.mxu0 %v11306_v34  ;;  %v11344_v34 = vld [vmem:[#allocation12 + $0xde0] sm:$0xff]  }
 0x5f7   :  { %v10322_v17 = vadd.f32 %v10321_v28, %v10320_v61  ;;  %10637 = vmatpush3.bf16.msra.mxu1 %v11305_v11  ;;  %v11343_v61 = vld [vmem:[#allocation12 + $0xd28] sm:$0xff]   ;;  %v11348_v28 = vld [vmem:[#allocation12 + $0xdd8] sm:$0xff]   ;;  %v11347_v29 = vld [vmem:[#allocation12 + $0xd20] sm:$0xff]  }
 0x5f8   :  { %v10323_v48 = vpop.f32.mrf.mxu0  ;;  %v10346_v8 = vpop.f32.mrf.mxu1  ;;  %10638 = vmatprep.subr.bf16.mxu1 %v11308_v7  ;;  %v11346_v7 = vld [vmem:[#allocation12 + $0xd60] sm:$0xff]  }
 0x5f9   :  { %v5217_v24 = vadd.f32 %v10322_v17, %v13298_v60  ;;  %10615 = vmatpush3.bf16.msra.mxu0 %v11307_v30  ;;  %v11327_v60 = vld [vmem:[#allocation12 + $0xc08] sm:$0xff]   ;;  %v11349_v17 = vld [vmem:[#allocation12 + $0xd98] sm:$0xff]   ;;  %v11354_v8 = vld [vmem:[#allocation12 + $0xd50] sm:$0xff]  }
 0x5fa   :  { %v10324_v21 = vpop.f32.mrf.mxu0  ;;  %10616 = vmatprep.subr.bf16.mxu0 %v11310_v32  ;;  %v11350_v32 = vld [vmem:[#allocation12 + $0xd58] sm:$0xff]  }
 0x5fb   :  { %10639 = vmatpush3.bf16.msra.mxu1 %v11309_v2  ;;  %v13305_v19 = vadd.f32 %v10344_v56, %v5217_v24  ;;  %v11345_v56 = vld [vmem:[#allocation12 + $0xda0] sm:$0xff]   ;;  %v11352_v2 = vld [vmem:[#allocation12 + $0xdd0] sm:$0xff]   ;;  %v11351_v48 = vld [vmem:[#allocation12 + $0xd18] sm:$0xff]  }
 0x5fc   :  { %10640 = vmatprep.subr.bf16.mxu1 %v11312_v10  ;;  %v11353_v10 = vld [vmem:[#allocation12 + $0xd90] sm:$0xff]   ;;  %v11356_v24 = vld [vmem:[#allocation12 + $0xdc8] sm:$0xff]  }
 0x5fd   :  { %10617 = vmatpush3.bf16.msra.mxu0 %v11311_v55  ;;  %v11355_v55 = vld [vmem:[#allocation12 + $0xd10] sm:$0xff]   ;;  %v11358_v21 = vld [vmem:[#allocation12 + $0xd48] sm:$0xff]  }
 0x5fe   :  { %10618 = vmatprep.subr.bf16.mxu0 %v11314_v40  ;;  %v11357_v40 = vld [vmem:[#allocation12 + $0xd88] sm:$0xff]  }
 0x5ff   :  { %10641 = vmatpush3.bf16.msra.mxu1 %v11313_v47  ;;  %v11360_v47 = vld [vmem:[#allocation12 + $0xdc0] sm:$0xff]  }
 0x600   :  { %10642 = vmatprep.subr.bf16.mxu1 %v11316_v9  ;;  %v11362_v9 = vld [vmem:[#allocation12 + $0xd40] sm:$0xff]  }
 0x601   :  { %10619 = vmatpush3.bf16.msra.mxu0 %v11315_v22  ;;  %v11361_v22 = vld [vmem:[#allocation12 + $0xd80] sm:$0xff]  }
 0x602   :  { %10620 = vmatprep.subr.bf16.mxu0 %v11318_v41  ;;  %v11364_v41 = vld [vmem:[#allocation12 + $0xef8] sm:$0xff]  }
 0x603   :  { %10643 = vmatpush3.bf16.msra.mxu1 %v11317_v20  ;;  %v11363_v20 = vld [vmem:[#allocation12 + $0xd00] sm:$0xff]  }
 0x604   :  { %10644 = vmatprep.subr.bf16.mxu1 %v11320_v50  ;;  %v11366_v50 = vld [vmem:[#allocation12 + $0xe78] sm:$0xff]  }
 0x605   :  { %10621 = vmatpush3.bf16.msra.mxu0 %v11319_v36  ;;  %v11365_v36 = vld [vmem:[#allocation12 + $0xeb8] sm:$0xff]  }
 0x606   :  { %10622 = vmatprep.subr.bf16.mxu0 %v11322_v23  ;;  %v8031_v23 = vrot.slane %v13242_v63, 3 }
 0x607   :  { %10645 = vmatpush3.bf16.msra.mxu1 %v11321_v16  ;;  %v11368_v16 = vld [vmem:[#allocation12 + $0xef0] sm:$0xff]  }
 0x608   :  { %10646 = vmatprep.subr.bf16.mxu1 %v11324_v12  ;;  %v8380_v12 = vrot.slane %v13244_v1, 5 }
 0x609   :  { %10623 = vmatpush3.bf16.msra.mxu0 %v11323_v45  ;;  %v11367_v45 = vld [vmem:[#allocation12 + $0xe38] sm:$0xff]  }
 0x60a   :  { %10624 = vmatprep.subr.bf16.mxu0 %v11326_v3 }
 0x60b   :  { %10647 = vmatpush3.bf16.msra.mxu1 %v11325_v37  ;;  %v7857_v37 = vrot.slane %v13242_v63, 2 }
 0x60c   :  { %10648 = vmatprep.subr.bf16.mxu1 %v11328_v38  ;;  %v11370_v38 = vld [vmem:[#allocation12 + $0xe70] sm:$0xff]  }
 0x60d   :  { %10625 = vmatpush3.bf16.msra.mxu0 %v11327_v60  ;;  %v8206_v60 = vrot.slane %v13244_v1, 4 }
 0x60e   :  { %10626 = vmatprep.subr.bf16.mxu0 %v11330_v51  ;;  %v11369_v51 = vld [vmem:[#allocation12 + $0xeb0] sm:$0xff]  }
 0x60f   :  { %10649 = vmatpush3.bf16.msra.mxu1 %v11329_v57 }
 0x610   :  { %10678 = vmatprep.subr.bf16.mxu1 %v11332_v53 }
 0x611   :  { %10627 = vmatpush3.bf16.msra.mxu0 %v11331_v25  ;;  %v11372_v25 = vld [vmem:[#allocation12 + $0xee8] sm:$0xff]  }
 0x612   :  { %v10386_v62 = vpop.f32.mrf.mxu1  ;;  %7816 = vmatmul.mubr.bf16.vlgmr.msra.gmra.mxu1 %v7683_v58  ;;  %10656 = vmatprep.subr.bf16.mxu0 %v11334_v43 }
 0x613   :  { %10679 = vmatpush3.bf16.msra.mxu1 %v11333_v4  ;;  %8163 = vmatprep.mubr.bf16.mxu1 %v8032_v59  ;;  %v11371_v4 = vld [vmem:[#allocation12 + $0xe30] sm:$0xff]   ;;  %v11374_v59 = vld [vmem:[#allocation12 + $0xe68] sm:$0xff]  }
 0x614   :  { %v10364_v5 = vpop.f32.mrf.mxu0  ;;  %v10387_v26 = vpop.f32.mrf.mxu1  ;;  %7640 = vmatmul.mubr.bf16.vlgmr.msra.gmra.mxu0 %v13242_v63  ;;  %10680 = vmatprep.subr.bf16.mxu1 %v11336_v49 }
 0x615   :  { %v10388_v27 = vadd.f32 %v10387_v26, %v10386_v62  ;;  %10657 = vmatpush3.bf16.msra.mxu0 %v11335_v54  ;;  %7989 = vmatprep.mubr.bf16.mxu0 %v7858_v52  ;;  %v11373_v62 = vld [vmem:[#allocation12 + $0xea8] sm:$0xff]  }
 0x616   :  { %v10365_v44 = vpop.f32.mrf.mxu0  ;;  %v10389_v46 = vpop.f32.mrf.mxu1  ;;  %10658 = vmatprep.subr.bf16.mxu0 %v11338_v13  ;;  %v11375_v26 = vld [vmem:[#allocation12 + $0xe28] sm:$0xff]  }
 0x617   :  { %v10366_v14 = vadd.f32 %v10365_v44, %v10364_v5  ;;  %10681 = vmatpush3.bf16.msra.mxu1 %v11337_v35  ;;  %v11376_v35 = vld [vmem:[#allocation12 + $0xee0] sm:$0xff]   ;;  %v11380_v46 = vld [vmem:[#allocation12 + $0xed8] sm:$0xff]  }
 0x618   :  { %v10367_v31 = vpop.f32.mrf.mxu0  ;;  %v10390_v0 = vpop.f32.mrf.mxu1  ;;  %10682 = vmatprep.subr.bf16.mxu1 %v11340_v42 }
 0x619   :  { %v5565_v11 = vadd.f32 %v10366_v14, %v13305_v19  ;;  %10659 = vmatpush3.bf16.msra.mxu0 %v11339_v33  ;;  %v11359_v19 = vld [vmem:[#allocation12 + $0xd08] sm:$0xff]   ;;  %v11377_v33 = vld [vmem:[#allocation12 + $0xea0] sm:$0xff]   ;;  %v11382_v14 = vld [vmem:[#allocation12 + $0xe58] sm:$0xff]  }
 0x61a   :  { %v10368_v18 = vpop.f32.mrf.mxu0  ;;  %10660 = vmatprep.subr.bf16.mxu0 %v11342_v39  ;;  %v11379_v39 = vld [vmem:[#allocation12 + $0xe20] sm:$0xff]   ;;  %v11384_v31 = vld [vmem:[#allocation12 + $0xed0] sm:$0xff]   ;;  %v11383_v0 = vld [vmem:[#allocation12 + $0xe18] sm:$0xff]  }
 0x61b   :  { %10683 = vmatpush3.bf16.msra.mxu1 %v11341_v6  ;;  %v13312_v30 = vadd.f32 %v10388_v27, %v5565_v11  ;;  %v11378_v27 = vld [vmem:[#allocation12 + $0xe60] sm:$0xff]   ;;  %v11381_v6 = vld [vmem:[#allocation12 + $0xe98] sm:$0xff]   ;;  %v11385_v11 = vld [vmem:[#allocation12 + $0xe90] sm:$0xff]  }
 0x61c   :  { %10684 = vmatprep.subr.bf16.mxu1 %v11344_v34  ;;  %v11386_v34 = vld [vmem:[#allocation12 + $0xe50] sm:$0xff]  }
 0x61d   :  { %10661 = vmatpush3.bf16.msra.mxu0 %v11343_v61  ;;  %v11388_v61 = vld [vmem:[#allocation12 + $0xec8] sm:$0xff]   ;;  %v11387_v18 = vld [vmem:[#allocation12 + $0xe10] sm:$0xff]  }
 0x61e   :  { %10662 = vmatprep.subr.bf16.mxu0 %v11346_v7  ;;  %v11390_v7 = vld [vmem:[#allocation12 + $0xe48] sm:$0xff]  }
 0x61f   :  { %10685 = vmatpush3.bf16.msra.mxu1 %v11345_v56  ;;  %v11389_v56 = vld [vmem:[#allocation12 + $0xe88] sm:$0xff]  }
 0x620   :  { %10686 = vmatprep.subr.bf16.mxu1 %v11348_v28  ;;  %v11391_v28 = vld [vmem:[#allocation12 + $0xe08] sm:$0xff]  }
 0x621   :  { %10663 = vmatpush3.bf16.msra.mxu0 %v11347_v29  ;;  %v11394_v29 = vld [vmem:[#allocation12 + $0xe40] sm:$0xff]  }
 0x622   :  { %10664 = vmatprep.subr.bf16.mxu0 %v11350_v32  ;;  %v11393_v32 = vld [vmem:[#allocation12 + $0xe80] sm:$0xff]  }
 0x623   :  { %10687 = vmatpush3.bf16.msra.mxu1 %v11349_v17  ;;  %v11396_v17 = vld [vmem:[#allocation12 + $0xff8] sm:$0xff]  }
 0x624   :  { %10688 = vmatprep.subr.bf16.mxu1 %v11352_v2  ;;  %v11395_v2 = vld [vmem:[#allocation12 + $0xe00] sm:$0xff]  }
 0x625   :  { %10665 = vmatpush3.bf16.msra.mxu0 %v11351_v48  ;;  %v11398_v48 = vld [vmem:[#allocation12 + $0xf78] sm:$0xff]  }
 0x626   :  { %10666 = vmatprep.subr.bf16.mxu0 %v11354_v8  ;;  %v11397_v8 = vld [vmem:[#allocation12 + $0xfb8] sm:$0xff]  }
 0x627   :  { %10689 = vmatpush3.bf16.msra.mxu1 %v11353_v10  ;;  %v8379_v10 = vrot.slane %v13242_v63, 5 }
 0x628   :  { %10690 = vmatprep.subr.bf16.mxu1 %v11356_v24  ;;  %v11400_v24 = vld [vmem:[#allocation12 + $0xff0] sm:$0xff]  }
 0x629   :  { %10667 = vmatpush3.bf16.msra.mxu0 %v11355_v55  ;;  %v8728_v55 = vrot.slane %v13244_v1, 7 }
 0x62a   :  { %10668 = vmatprep.subr.bf16.mxu0 %v11358_v21  ;;  %v11399_v21 = vld [vmem:[#allocation12 + $0xf38] sm:$0xff]  }
 0x62b   :  { %10691 = vmatpush3.bf16.msra.mxu1 %v11357_v40 }
 0x62c   :  { %10692 = vmatprep.subr.bf16.mxu1 %v11360_v47  ;;  %v8205_v47 = vrot.slane %v13242_v63, 4 }
 0x62d   :  { %10669 = vmatpush3.bf16.msra.mxu0 %v11359_v19  ;;  %v11402_v19 = vld [vmem:[#allocation12 + $0xf70] sm:$0xff]  }
 0x62e   :  { %10670 = vmatprep.subr.bf16.mxu0 %v11362_v9  ;;  %v8554_v9 = vrot.slane %v13244_v1, 6  ;;  %v11408_v1 = vld [vmem:[#allocation12 + $0xfe0] sm:$0xff]  }
 0x62f   :  { %10693 = vmatpush3.bf16.msra.mxu1 %v11361_v22  ;;  %v11401_v22 = vld [vmem:[#allocation12 + $0xfb0] sm:$0xff]  }
 0x630   :  { %10722 = vmatprep.subr.bf16.mxu1 %v11364_v41 }
 0x631   :  { %10671 = vmatpush3.bf16.msra.mxu0 %v11363_v20 }
 0x632   :  { %v10430_v3 = vpop.f32.mrf.mxu1  ;;  %8164 = vmatmul.mubr.bf16.vlgmr.msra.gmra.mxu1 %v8031_v23  ;;  %10700 = vmatprep.subr.bf16.mxu0 %v11366_v50  ;;  %v11404_v50 = vld [vmem:[#allocation12 + $0xfe8] sm:$0xff]   ;;  %v11403_v23 = vld [vmem:[#allocation12 + $0xf30] sm:$0xff]  }
 0x633   :  { %10723 = vmatpush3.bf16.msra.mxu1 %v11365_v36  ;;  %8511 = vmatprep.mubr.bf16.mxu1 %v8380_v12 }
 0x634   :  { %v10408_v57 = vpop.f32.mrf.mxu0  ;;  %v10431_v53 = vpop.f32.mrf.mxu1  ;;  %7990 = vmatmul.mubr.bf16.vlgmr.msra.gmra.mxu0 %v7857_v37  ;;  %10724 = vmatprep.subr.bf16.mxu1 %v11368_v16  ;;  %v11405_v37 = vld [vmem:[#allocation12 + $0xfa8] sm:$0xff]  }
 0x635   :  { %v10432_v43 = vadd.f32 %v10431_v53, %v10430_v3  ;;  %10701 = vmatpush3.bf16.msra.mxu0 %v11367_v45  ;;  %8337 = vmatprep.mubr.bf16.mxu0 %v8206_v60  ;;  %v11406_v45 = vld [vmem:[#allocation12 + $0xf68] sm:$0xff]  }
 0x636   :  { %v10409_v58 = vpop.f32.mrf.mxu0  ;;  %v10433_v49 = vpop.f32.mrf.mxu1  ;;  %10702 = vmatprep.subr.bf16.mxu0 %v11370_v38 }
 0x637   :  { %v10410_v54 = vadd.f32 %v10409_v58, %v10408_v57  ;;  %10725 = vmatpush3.bf16.msra.mxu1 %v11369_v51  ;;  %v11407_v57 = vld [vmem:[#allocation12 + $0xf28] sm:$0xff]   ;;  %v11412_v58 = vld [vmem:[#allocation12 + $0xfd8] sm:$0xff]   ;;  %v11411_v49 = vld [vmem:[#allocation12 + $0xf20] sm:$0xff]  }
 0x638   :  { %v10411_v13 = vpop.f32.mrf.mxu0  ;;  %v10434_v52 = vpop.f32.mrf.mxu1  ;;  %10726 = vmatprep.subr.bf16.mxu1 %v11372_v25  ;;  %v11410_v25 = vld [vmem:[#allocation12 + $0xf60] sm:$0xff]  }
 0x639   :  { %v5913_v5 = vadd.f32 %v10410_v54, %v13312_v30  ;;  %10703 = vmatpush3.bf16.msra.mxu0 %v11371_v4  ;;  %v11392_v30 = vld [vmem:[#allocation12 + $0xec0] sm:$0xff]   ;;  %v11413_v54 = vld [vmem:[#allocation12 + $0xf98] sm:$0xff]   ;;  %v11418_v52 = vld [vmem:[#allocation12 + $0xf50] sm:$0xff]  }
 0x63a   :  { %v10412_v42 = vpop.f32.mrf.mxu0  ;;  %10704 = vmatprep.subr.bf16.mxu0 %v11374_v59  ;;  %v11414_v59 = vld [vmem:[#allocation12 + $0xf58] sm:$0xff]  }
 0x63b   :  { %10727 = vmatpush3.bf16.msra.mxu1 %v11373_v62  ;;  %v13319_v44 = vadd.f32 %v10432_v43, %v5913_v5  ;;  %v11409_v43 = vld [vmem:[#allocation12 + $0xfa0] sm:$0xff]   ;;  %v11416_v62 = vld [vmem:[#allocation12 + $0xfd0] sm:$0xff]   ;;  %v11415_v13 = vld [vmem:[#allocation12 + $0xf18] sm:$0xff]  }
 0x63c   :  { %10728 = vmatprep.subr.bf16.mxu1 %v11376_v35  ;;  %v11417_v35 = vld [vmem:[#allocation12 + $0xf90] sm:$0xff]   ;;  %v11420_v5 = vld [vmem:[#allocation12 + $0xfc8] sm:$0xff]  }
 0x63d   :  { %10705 = vmatpush3.bf16.msra.mxu0 %v11375_v26  ;;  %v11419_v26 = vld [vmem:[#allocation12 + $0xf10] sm:$0xff]   ;;  %v11422_v42 = vld [vmem:[#allocation12 + $0xf48] sm:$0xff]  }
 0x63e   :  { %10706 = vmatprep.subr.bf16.mxu0 %v11378_v27  ;;  %v11421_v27 = vld [vmem:[#allocation12 + $0xf88] sm:$0xff]  }
 0x63f   :  { %10729 = vmatpush3.bf16.msra.mxu1 %v11377_v33  ;;  %v11424_v33 = vld [vmem:[#allocation12 + $0xfc0] sm:$0xff]  }
 0x640   :  { %10730 = vmatprep.subr.bf16.mxu1 %v11380_v46  ;;  %v11426_v46 = vld [vmem:[#allocation12 + $0xf40] sm:$0xff]  }
 0x641   :  { %10707 = vmatpush3.bf16.msra.mxu0 %v11379_v39  ;;  %v11425_v39 = vld [vmem:[#allocation12 + $0xf80] sm:$0xff]  }
 0x642   :  { %10708 = vmatprep.subr.bf16.mxu0 %v11382_v14  ;;  %v11427_v14 = vld [vmem:[#allocation12 + $0xf00] sm:$0xff]  }
 0x643   :  { %10731 = vmatpush3.bf16.msra.mxu1 %v11381_v6  ;;  %v8727_v6 = vrot.slane %v13242_v63, 7 }
 0x644   :  { %10732 = vmatprep.subr.bf16.mxu1 %v11384_v31  ;;  %v11428_v31 = vld [vmem:[#allocation8 + $0x38] sm:$0xff]  }
 0x645   :  { %10709 = vmatpush3.bf16.msra.mxu0 %v11383_v0 }
 0x646   :  { %10710 = vmatprep.subr.bf16.mxu0 %v11386_v34  ;;  %v8553_v34 = vrot.slane %v13242_v63, 6 }
 0x647   :  { %10733 = vmatpush3.bf16.msra.mxu1 %v11385_v11 }
 0x648   :  { %10734 = vmatprep.subr.bf16.mxu1 %v11388_v61 }
 0x649   :  { %10711 = vmatpush3.bf16.msra.mxu0 %v11387_v18 }
 0x64a   :  { %10712 = vmatprep.subr.bf16.mxu0 %v11390_v7  ;;  %v11429_v7 = vld [vmem:[#allocation8 + $0x30] sm:$0xff]  }
 0x64b   :  { %10735 = vmatpush3.bf16.msra.mxu1 %v11389_v56 }
 0x64c   :  { %10736 = vmatprep.subr.bf16.mxu1 %v11392_v30 }
 0x64d   :  { %10713 = vmatpush3.bf16.msra.mxu0 %v11391_v28 }
 0x64e   :  { %10714 = vmatprep.subr.bf16.mxu0 %v11394_v29 }
 0x64f   :  { %10737 = vmatpush3.bf16.msra.mxu1 %v11393_v32 }
 0x650   :  { %10766 = vmatprep.subr.bf16.mxu1 %v11396_v17  ;;  %v11430_v17 = vld [vmem:[#allocation8 + $0x28] sm:$0xff]  }
 0x651   :  { %10715 = vmatpush3.bf16.msra.mxu0 %v11395_v2 }
 0x652   :  { %v10474_v40 = vpop.f32.mrf.mxu1  ;;  %8512 = vmatmul.mubr.bf16.vlgmr.msra.gmra.mxu1 %v8379_v10  ;;  %10744 = vmatprep.subr.bf16.mxu0 %v11398_v48  ;;  %v11432_v10 = vld [vmem:[#allocation8 + $0x18] sm:$0xff]  }
 0x653   :  { %10767 = vmatpush3.bf16.msra.mxu1 %v11397_v8  ;;  %8859 = vmatprep.mubr.bf16.mxu1 %v8728_v55  ;;  %v11431_v8 = vld [vmem:[#allocation8 + $0x20] sm:$0xff]   ;;  %v11434_v55 = vld [vmem:[#allocation8 + $0x8] sm:$0xff]  }
 0x654   :  { %v10452_v41 = vpop.f32.mrf.mxu0  ;;  %v10475_v20 = vpop.f32.mrf.mxu1  ;;  %8338 = vmatmul.mubr.bf16.vlgmr.msra.gmra.mxu0 %v8205_v47  ;;  %10768 = vmatprep.subr.bf16.mxu1 %v11400_v24  ;;  %v11433_v24 = vld [vmem:[#allocation8 + $0x10] sm:$0xff]  }
 0x655   :  { %v10476_v36 = vadd.f32 %v10475_v20, %v10474_v40  ;;  %10745 = vmatpush3.bf16.msra.mxu0 %v11399_v21  ;;  %8685 = vmatprep.mubr.bf16.mxu0 %v8554_v9  ;;  %v11435_v21 = vld [vmem:[#allocation8] sm:$0xff]   ;;  %v8868_v40 = vld [vmem:[#allocation3] sm:$0x3] }
 0x656   :  { %v10453_v16 = vpop.f32.mrf.mxu0  ;;  %v10477_v12 = vpop.f32.mrf.mxu1  ;;  %10746 = vmatprep.subr.bf16.mxu0 %v11402_v19  ;;  %v8869_v47 = vpack.c.bf16 %v8868_v40, %v8868_v40 }
 0x657   :  { %v10454_v3 = vadd.f32 %v10453_v16, %v10452_v41  ;;  %10769 = vmatpush3.bf16.msra.mxu1 %v11401_v22 }
 0x658   :  { %v10455_v38 = vpop.f32.mrf.mxu0  ;;  %v10478_v60 = vpop.f32.mrf.mxu1  ;;  %10770 = vmatprep.subr.bf16.mxu1 %v11404_v50 }
 0x659   :  { %v6257_v51 = vadd.f32 %v10454_v3, %v13319_v44  ;;  %10747 = vmatpush3.bf16.msra.mxu0 %v11403_v23  ;;  %v11423_v44 = vld [vmem:[#allocation12 + $0xf08] sm:$0xff]  }
 0x65a   :  { %v10456_v53 = vpop.f32.mrf.mxu0  ;;  %10748 = vmatprep.subr.bf16.mxu0 %v11406_v45 }
 0x65b   :  { %10771 = vmatpush3.bf16.msra.mxu1 %v11405_v37  ;;  %v6433_v4 = vadd.f32 %v10476_v36, %v6257_v51 }
 0x65c   :  { %10772 = vmatprep.subr.bf16.mxu1 %v11408_v1 }
 0x65d   :  { %10749 = vmatpush3.bf16.msra.mxu0 %v11407_v57 }
 0x65e   :  { %10750 = vmatprep.subr.bf16.mxu0 %v11410_v25 }
 0x65f   :  { %10773 = vmatpush3.bf16.msra.mxu1 %v11409_v43 }
 0x660   :  { %10774 = vmatprep.subr.bf16.mxu1 %v11412_v58 }
 0x661   :  { %10751 = vmatpush3.bf16.msra.mxu0 %v11411_v49  ;;  %v11436_v49 = vld [vmem:[%s13429_s9 + $0x38] sm:$0xff]  }
 0x662   :  { %10752 = vmatprep.subr.bf16.mxu0 %v11414_v59 }
 0x663   :  { %10775 = vmatpush3.bf16.msra.mxu1 %v11413_v54  ;;  %v11437_v54 = vld [vmem:[%s13429_s9 + $0x30] sm:$0xff]  }
 0x664   :  { %10776 = vmatprep.subr.bf16.mxu1 %v11416_v62  ;;  %v11438_v62 = vld [vmem:[%s13429_s9 + $0x28] sm:$0xff]  }
 0x665   :  { %10753 = vmatpush3.bf16.msra.mxu0 %v11415_v13  ;;  %v11439_v13 = vld [vmem:[%s13429_s9 + $0x20] sm:$0xff]  }
 0x666   :  { %10754 = vmatprep.subr.bf16.mxu0 %v11418_v52  ;;  %v11440_v52 = vld [vmem:[%s13429_s9 + $0x18] sm:$0xff]  }
 0x667   :  { %10777 = vmatpush3.bf16.msra.mxu1 %v11417_v35  ;;  %v11441_v35 = vld [vmem:[%s13429_s9 + $0x10] sm:$0xff]  }
 0x668   :  { %10778 = vmatprep.subr.bf16.mxu1 %v11420_v5 }
 0x669   :  { %10755 = vmatpush3.bf16.msra.mxu0 %v11419_v26 }
 0x66a   :  { %10756 = vmatprep.subr.bf16.mxu0 %v11422_v42 }
 0x66b   :  { %10779 = vmatpush3.bf16.msra.mxu1 %v11421_v27 }
 0x66c   :  { %10780 = vmatprep.subr.bf16.mxu1 %v11424_v33 }
 0x66d   :  { %10757 = vmatpush3.bf16.msra.mxu0 %v11423_v44 }
 0x66e   :  { %10758 = vmatprep.subr.bf16.mxu0 %v11426_v46 }
 0x66f   :  { %10781 = vmatpush3.bf16.msra.mxu1 %v11425_v39 }
 0x670   :  { %10838 = vmatprep.subr.bf16.mxu1 %v12175_v15 }
 0x671   :  { %10759 = vmatpush3.bf16.msra.mxu0 %v11427_v14 }
 0x672   :  { %v10518_v0 = vpop.f32.mrf.mxu1  ;;  %8860 = vmatmul.mubr.bf16.vlgmr.msra.gmra.mxu1 %v8727_v6  ;;  %10818 = vmatprep.subr.bf16.mxu0 %v12175_v15  ;;  %v11442_v6 = vld [vmem:[%s13429_s9 + $0x8] sm:$0xff]  }
 0x673   :  { %10854 = vmatprep.mubr.msk.bf16.mxu1 %vm11694_vm14, %v12175_v15  ;;  %10839 = vmatpush3.bf16.msra.mxu1 %v11436_v49 }
 0x674   :  { %v10496_v11 = vpop.f32.mrf.mxu0  ;;  %v10519_v61 = vpop.f32.mrf.mxu1  ;;  %8686 = vmatmul.mubr.bf16.vlgmr.msra.gmra.mxu0 %v8553_v34  ;;  %10840 = vmatprep.subr.bf16.mxu1 %v12175_v15  ;;  %v11443_v34 = vld [vmem:[%s13429_s9] sm:$0xff]  }
 0x675   :  { %v10520_v18 = vadd.f32 %v10519_v61, %v10518_v0  ;;  %10819 = vmatpush3.bf16.msra.mxu0 %v11428_v31  ;;  %10834 = vmatprep.mubr.msk.bf16.mxu0 %vm11694_vm14, %v12175_v15 }
 0x676   :  { %v10497_v56 = vpop.f32.mrf.mxu0  ;;  %v10521_v30 = vpop.f32.mrf.mxu1  ;;  %10820 = vmatprep.subr.bf16.mxu0 %v12175_v15 }
 0x677   :  { %v10498_v63 = vadd.f32 %v10497_v56, %v10496_v11  ;;  %10841 = vmatpush3.bf16.msra.mxu1 %v11437_v54  ;;  %v11444_v54 = vld [vmem:[#allocation14 + $0x8] sm:$0xff]  }
 0x678   :  { %v10499_v28 = vpop.f32.mrf.mxu0  ;;  %v10522_v29 = vpop.f32.mrf.mxu1  ;;  %10842 = vmatprep.subr.bf16.mxu1 %v12175_v15 }
 0x679   :  { %v6607_v32 = vadd.f32 %v10498_v63, %v6433_v4  ;;  %10821 = vmatpush3.bf16.msra.mxu0 %v11429_v7 }
 0x67a   :  { %v10500_v2 = vpop.f32.mrf.mxu0  ;;  %10822 = vmatprep.subr.bf16.mxu0 %v12175_v15 }
 0x67b   :  { %v6781_v48 = vadd.f32 %v10520_v18, %v6607_v32  ;;  %10843 = vmatpush3.bf16.msra.mxu1 %v11438_v62  ;;  %v11445_v62 = vld [vmem:[#allocation14] sm:$0xff]  }
 0x67c   :  { %10844 = vmatprep.subr.bf16.mxu1 %v12175_v15 }
 0x67d   :  { %10823 = vmatpush3.bf16.msra.mxu0 %v11430_v17 }
 0x67e   :  { %10824 = vmatprep.subr.bf16.mxu0 %v12175_v15 }
 0x67f   :  { %10845 = vmatpush3.bf16.msra.mxu1 %v11439_v13  ;;  %v10062_v13 = vld [vmem:[#allocation11] ss:$0 sm:$0xff] }
 0x680   :  { %10846 = vmatprep.subr.bf16.mxu1 %v12175_v15 }
 0x681   :  { %10825 = vmatpush3.bf16.msra.mxu0 %v11431_v8 }
 0x682   :  { %10826 = vmatprep.subr.bf16.mxu0 %v12175_v15 }
 0x683   :  { %10847 = vmatpush3.bf16.msra.mxu1 %v11440_v52 }
 0x684   :  { %10848 = vmatprep.subr.bf16.mxu1 %v12175_v15 }
 0x685   :  { %10827 = vmatpush3.bf16.msra.mxu0 %v11432_v10 }
 0x686   :  { %10828 = vmatprep.subr.bf16.mxu0 %v12175_v15 }
 0x687   :  { %10849 = vmatpush3.bf16.msra.mxu1 %v11441_v35 }
 0x688   :  { %10850 = vmatprep.subr.bf16.mxu1 %v12175_v15 }
 0x689   :  { %10829 = vmatpush3.bf16.msra.mxu0 %v11433_v24 }
 0x68a   :  { %10830 = vmatprep.subr.bf16.mxu0 %v12175_v15 }
 0x68b   :  { %10851 = vmatpush3.bf16.msra.mxu1 %v11442_v6  ;;  %v11450_v6 = vld [vmem:[%s13434_s14 + $0x18] sm:$0xff]  }
 0x68c   :  { %10852 = vmatprep.subr.bf16.mxu1 %v12175_v15 }
 0x68d   :  { %10831 = vmatpush3.bf16.msra.mxu0 %v11434_v55 }
 0x68e   :  { %10832 = vmatprep.subr.bf16.mxu0 %v12175_v15 }
 0x68f   :  { %10853 = vmatpush3.bf16.msra.mxu1 %v11443_v34  ;;  %v11453_v34 = vld [vmem:[%s13434_s14] sm:$0xff]  }
 0x691   :  { %10833 = vmatpush3.bf16.msra.mxu0 %v11435_v21 }
 0x692   :  { %v10562_v19 = vpop.f32.mrf.mxu1  ;;  %10858 = vmatprep.subr.bf16.mxu0 %v12175_v15 }
 0x694   :  { %v10540_v9 = vpop.f32.mrf.mxu0  ;;  %v10563_v22 = vpop.f32.mrf.mxu1  ;;  %10835 = vmatmul.mubr.bf16.vlgmr.msra.gmra.mxu0 %v8869_v47 }
 0x695   :  { %v10564_v41 = vadd.f32 %v10563_v22, %v10562_v19  ;;  %10862 = vmatprep.mubr.msk.bf16.mxu0 %vm11694_vm14, %v12175_v15  ;;  %10859 = vmatpush3.bf16.msra.mxu0 %v11444_v54 }
 0x696   :  { %v10541_v20 = vpop.f32.mrf.mxu0  ;;  %v10565_v50 = vpop.f32.mrf.mxu1  ;;  %10860 = vmatprep.subr.bf16.mxu0 %v12175_v15 }
 0x697   :  { %v10542_v36 = vadd.f32 %v10541_v20, %v10540_v9 }
 0x698   :  { %v10543_v23 = vpop.f32.mrf.mxu0  ;;  %v10566_v16 = vpop.f32.mrf.mxu1 }
 0x699   :  { %v6955_v12 = vadd.f32 %v10542_v36, %v6781_v48  ;;  %10861 = vmatpush3.bf16.msra.mxu0 %v11445_v62 }
 0x69a   :  { %v10544_v45 = vpop.f32.mrf.mxu0  ;;  %10866 = vmatprep.subr.bf16.mxu0 %v12175_v15 }
 0x69b   :  { %v7129_v3 = vadd.f32 %v10564_v41, %v6955_v12 }
 0x6b2   :  { %v10606_v37 = vpop.f32.mrf.mxu1 }
 0x6b4   :  { %v10584_v38 = vpop.f32.mrf.mxu0  ;;  %v10607_v60 = vpop.f32.mrf.mxu1 }
 0x6b5   :  { %v10608_v1 = vadd.f32 %v10607_v60, %v10606_v37 }
 0x6b6   :  { %v10585_v51 = vpop.f32.mrf.mxu0  ;;  %v10609_v57 = vpop.f32.mrf.mxu1 }
 0x6b7   :  { %v10586_v53 = vadd.f32 %v10585_v51, %v10584_v38  ;;  %v10053_v57 = vld [vmem:[#allocation9] ss:$0 sm:$0xff] }
 0x6b8   :  { %v10587_v25 = vpop.f32.mrf.mxu0  ;;  %v10610_v43 = vpop.f32.mrf.mxu1 }
 0x6b9   :  { %v7303_v4 = vadd.f32 %v10586_v53, %v7129_v3 }
 0x6ba   :  { %v10588_v58 = vpop.f32.mrf.mxu0 }
 0x6bb   :  { %v7477_v59 = vadd.f32 %v10608_v1, %v7303_v4 }
 0x6d2   :  { %v10650_v5 = vpop.f32.mrf.mxu1 }
 0x6d4   :  { %v10628_v26 = vpop.f32.mrf.mxu0  ;;  %v10651_v42 = vpop.f32.mrf.mxu1 }
 0x6d5   :  { %v10652_v27 = vadd.f32 %v10651_v42, %v10650_v5 }
 0x6d6   :  { %v10629_v33 = vpop.f32.mrf.mxu0  ;;  %v10653_v44 = vpop.f32.mrf.mxu1 }
 0x6d7   :  { %v10630_v46 = vadd.f32 %v10629_v33, %v10628_v26 }
 0x6d8   :  { %v10631_v39 = vpop.f32.mrf.mxu0  ;;  %v10654_v14 = vpop.f32.mrf.mxu1 }
 0x6d9   :  { %v7647_v31 = vadd.f32 %v10630_v46, %v7477_v59  ;;  %v11447_v46 = vld [vmem:[%s13434_s14 + $0x30] sm:$0xff]   ;;  %v11448_v39 = vld [vmem:[%s13434_s14 + $0x28] sm:$0xff]   ;;  %v11449_v14 = vld [vmem:[%s13434_s14 + $0x20] sm:$0xff]  }
 0x6da   :  { %v10632_v0 = vpop.f32.mrf.mxu0 }
 0x6db   :  { %v7823_v11 = vadd.f32 %v10652_v27, %v7647_v31  ;;  %v11446_v27 = vld [vmem:[%s13434_s14 + $0x38] sm:$0xff]   ;;  %v11451_v31 = vld [vmem:[%s13434_s14 + $0x10] sm:$0xff]   ;;  %v11452_v0 = vld [vmem:[%s13434_s14 + $0x8] sm:$0xff]   ;;  %s11695_s14 = smov 125  }
 0x6f2   :  { %v10694_v61 = vpop.f32.mrf.mxu1 }
 0x6f4   :  { %v10672_v18 = vpop.f32.mrf.mxu0  ;;  %v10695_v7 = vpop.f32.mrf.mxu1 }
 0x6f5   :  { %v10696_v56 = vadd.f32 %v10695_v7, %v10694_v61  ;;  %v10074_v61 = vld [vmem:[#allocation15] ss:$0 sm:$0xff] }
 0x6f6   :  { %v10673_v30 = vpop.f32.mrf.mxu0  ;;  %v10697_v63 = vpop.f32.mrf.mxu1 }
 0x6f7   :  { %v10674_v28 = vadd.f32 %v10673_v30, %v10672_v18 }
 0x6f8   :  { %v10675_v29 = vpop.f32.mrf.mxu0  ;;  %v10698_v32 = vpop.f32.mrf.mxu1 }
 0x6f9   :  { %v7997_v17 = vadd.f32 %v10674_v28, %v7823_v11  ;;  %v10075_v32 = vld [vmem:[#allocation17] ss:$0 sm:$0xff] }
 0x6fa   :  { %v10676_v2 = vpop.f32.mrf.mxu0 }
 0x6fb   :  { %v8171_v48 = vadd.f32 %v10696_v56, %v7997_v17 }
 0x712   :  { %v10738_v8 = vpop.f32.mrf.mxu1 }
 0x714   :  { %v10716_v10 = vpop.f32.mrf.mxu0  ;;  %v10739_v24 = vpop.f32.mrf.mxu1 }
 0x715   :  { %v10740_v55 = vadd.f32 %v10739_v24, %v10738_v8 }
 0x716   :  { %v10717_v21 = vpop.f32.mrf.mxu0  ;;  %v10741_v40 = vpop.f32.mrf.mxu1 }
 0x717   :  { %v10718_v47 = vadd.f32 %v10717_v21, %v10716_v10 }
 0x718   :  { %v10719_v19 = vpop.f32.mrf.mxu0  ;;  %v10742_v9 = vpop.f32.mrf.mxu1 }
 0x719   :  { %v8345_v22 = vadd.f32 %v10718_v47, %v8171_v48 }
 0x71a   :  { %v10720_v41 = vpop.f32.mrf.mxu0 }
 0x71b   :  { %v8519_v20 = vadd.f32 %v10740_v55, %v8345_v22 }
 0x732   :  { %v10782_v50 = vpop.f32.mrf.mxu1 }
 0x734   :  { %v10760_v36 = vpop.f32.mrf.mxu0  ;;  %v10783_v23 = vpop.f32.mrf.mxu1 }
 0x735   :  { %v10784_v16 = vadd.f32 %v10783_v23, %v10782_v50 }
 0x736   :  { %v10761_v12 = vpop.f32.mrf.mxu0  ;;  %v10785_v45 = vpop.f32.mrf.mxu1 }
 0x737   :  { %v10762_v3 = vadd.f32 %v10761_v12, %v10760_v36 }
 0x738   :  { %v10763_v37 = vpop.f32.mrf.mxu0  ;;  %v10786_v38 = vpop.f32.mrf.mxu1 }
 0x739   :  { %v8693_v60 = vadd.f32 %v10762_v3, %v8519_v20 }
 0x73a   :  { %v10764_v1 = vpop.f32.mrf.mxu0 }
 0x73b   :  { %v8867_v51 = vadd.f32 %v10784_v16, %v8693_v60 }
 0x754   :  { %v8975_v53 = vpop.f32.mrf.mxu0 }
 0x755   :  { %v8976_v25 = vadd.f32 %v10053_v57, %v8975_v53 }
 0x756   :  { %v10836_v43 = vpop.f32.mrf.mxu0 }
 0x757   :  { %v8981_v4 = vmax.f32 %v8976_v25, 0.0 }
 0x758   :  { %v8978_v58 = vpop.f32.mrf.mxu0 }
 0x759   :  { %v8982_v49 = vpack.c.bf16 %v8981_v4, %v8981_v4 }
 0x75a   :  { %v10837_v59 = vpop.f32.mrf.mxu0 }
 0x75b   :  { %10855 = vmatmul.mubr.bf16.vlgmr.msra.gmra.mxu1 %v8982_v49 }
 0x81b   :  { %v9088_v52 = vpop.f32.mrf.mxu1 }
 0x81c   :  { %v9089_v35 = vadd.f32 %v10062_v13, %v9088_v52 }
 0x81d   :  { %v10856_v5 = vpop.f32.mrf.mxu1 }
 0x81e   :  { %v9094_v26 = vmax.f32 %v9089_v35, 0.0 }
 0x81f   :  { %v9091_v42 = vpop.f32.mrf.mxu1 }
 0x820   :  { %v9095_v33 = vpack.c.bf16 %v9094_v26, %v9094_v26 }
 0x821   :  { %v10857_v44 = vpop.f32.mrf.mxu1 }
 0x822   :  { %10863 = vmatmul.mubr.msk.bf16.vlgmr.msra.gmra.mxu0 %vm1534_vm13, %v9095_v33 }
 0x823   :  { %10867 = vmatpush3.bf16.msra.mxu0 %v11446_v27  ;;  %10882 = vmatprep.mubr.msk.bf16.mxu0 %vm11694_vm14, %v12175_v15 }
 0x824   :  { %10868 = vmatprep.subr.bf16.mxu0 %v12175_v15 }
 0x827   :  { %10869 = vmatpush3.bf16.msra.mxu0 %v11447_v46 }
 0x828   :  { %10870 = vmatprep.subr.bf16.mxu0 %v12175_v15 }
 0x82b   :  { %10871 = vmatpush3.bf16.msra.mxu0 %v11448_v39 }
 0x82c   :  { %10872 = vmatprep.subr.bf16.mxu0 %v12175_v15 }
 0x82f   :  { %10873 = vmatpush3.bf16.msra.mxu0 %v11449_v14 }
 0x830   :  { %10874 = vmatprep.subr.bf16.mxu0 %v12175_v15 }
 0x833   :  { %10875 = vmatpush3.bf16.msra.mxu0 %v11450_v6 }
 0x834   :  { %10876 = vmatprep.subr.bf16.mxu0 %v12175_v15 }
 0x837   :  { %10877 = vmatpush3.bf16.msra.mxu0 %v11451_v31 }
 0x838   :  { %10878 = vmatprep.subr.bf16.mxu0 %v12175_v15 }
 0x83b   :  { %10879 = vmatpush3.bf16.msra.mxu0 %v11452_v0 }
 0x83c   :  { %10880 = vmatprep.subr.bf16.mxu0 %v12175_v15 }
 0x83f   :  { %10881 = vmatpush3.bf16.msra.mxu0 %v11453_v34 }
 0x8e2   :  { %v9149_v11 = vpop.f32.mrf.mxu0 }
 0x8e3   :  { %v9155_v18 = vadd.f32 %v9149_v11, %v8867_v51 }
 0x8e4   :  { %v10864_v7 = vpop.f32.mrf.mxu0 }
 0x8e5   :  { %v9163_v56 = vadd.f32 %v10074_v61, %v9155_v18 }
 0x8e6   :  { %v9152_v30 = vpop.f32.mrf.mxu0 }
 0x8e7   :  { %v9164_v63 = vmax.f32 %v9163_v56, 0.0 }
 0x8e8   :  { %v10865_v28 = vpop.f32.mrf.mxu0 }
 0x8e9   :  { %v9165_v29 = vpack.c.bf16 %v9164_v63, %v9164_v63 }
 0x8eb   :  { %10883 = vmatmul.mubr.bf16.vlgmr.msra.gmra.mxu0 %v9165_v29 }
 0x9ab   :  { %v9271_v17 = vpop.f32.mrf.mxu0 }
 0x9ac   :  { %v9272_v2 = vadd.f32 %v10075_v32, %v9271_v17 }
 0x9ad   :  { %v10884_v48 = vpop.f32.mrf.mxu0 }
 0x9ae   :  { %v9278_v8 = vsel %vm9277_vm15, %v9272_v2, -inf }
 0x9af   :  { %9279 = vmax.xlane.f32.xlu1 %v9278_v8  ;;  %v9274_v15 = vpop.f32.mrf.mxu0 }
 0x9b1   :  { %v10885_v10 = vpop.f32.mrf.mxu0 }
 0xa38   :  { %v9280_v24 = vpop.xlane.xlu1 %9279 }
 0xa39   :  { %v9281_v55 = vsub.f32 %v9272_v2, %v9280_v24 }
 0xa3b   :  { %v9282_v21 = vmul.f32 1.442695, %v9281_v55 }
 0xa3d   :  { %11454 = vpow2.f32 %v9282_v21 }
 0xa4a   :  { %v11455_v40 = vpop.eup %11454 }
 0xa4b   :  { %v9284_v47 = vsel %vm9277_vm15, %v11455_v40, 0.0 }
 0xa4c   :  { %9285 = vadd.xlane.f32.xlu0 %v9284_v47 }
 0xa62   :  { %9291 = vrot.lane.b32.xlu0 %v9272_v2, %s11695_s14 }
 0xad5   :  { %v9286_v19 = vpop.xlane.xlu0 %9285 }
 0xad6   :  { %11456 = vrcp.f32 %v9286_v19 }
 0xad9   :  { %v9292_v9 = vpop.permute.xlu0 %9291 }
 0xada   :  { %9295 = vst.msk [vmem:[%s13437_s17] sm:$0x3] %vm9294_vm0, %v9292_v9 }
 0xae3   :  { %v11457_v22 = vpop.eup %11456 }
 0xae4   :  { %v9288_v41 = vmul.f32 %v11457_v22, %v11455_v40 }
 0xae6   :  { %9289 = vst.msk [vmem:[#allocation18] sm:$0x3] %vm9277_vm15, %v9288_v41 }
 0xae7   :  { %11651 = shalt.err (!%p11648_p7)
}
 0xae8   :  { %9305 = dma.vmem_to_hbm [thread:$0]  %s9303_s10, 32, %s13436_s16, [#allocation5]  }
 0xae9   :  { %11670 = dma.done.wait [#allocation5], 32  }
 0xaea   :  { %11671 = vsyncadd [#allocation5], 4294967264 }
 0xaeb   :  { %9313 = vsyncpa [#allocation4], 1 }
 0xaec   :  { %9314 = vsyncpa [#allocation7], 1 }
 0xaed   :  { %9315 = vsyncpa [#allocation10], 1 }
 0xaee   :  { %9316 = vsyncpa [#allocation13], 1 }
 0xaef   :  { %9317 = vsyncpa [#allocation16], 1 }
 0xaf0   :  { %9318 = vsyncpa [#allocation5], 1 }

</bundles_post_ra>
